<compile_context>
chip_gen: v7x
topology: tpu7x:2x2x1
jax: 0.10.0
libtpu: 0.0.40
codegen_flags: <defaults>
</compile_context>

<pallas_src>
import functools

import jax
import jax.numpy as jnp
from jax.experimental import pallas as pl
from jax.experimental.pallas import tpu as pltpu

TM_TARGET = 512            # row-tile target for the matmul / pool kernels
BN_EPS = 1e-3              # matches BasicConv2d's BatchNorm2d(eps=0.001)
VMEM_LIMIT = 32 * 1024 * 1024


def _round_up(v, m):
    return ((v + m - 1) // m) * m


def _row_tile(m, target=TM_TARGET):
    """Row tile: multiple of 16, <= target, and (when possible) chosen so the
    'parallel' grid has >= 2 steps (so both v7x TensorCores get work)."""
    if m >= 2 * target:
        return target
    half = _round_up(max(1, (m + 1) // 2), 16)
    return min(target, half)


def _compiler_params():
    return pltpu.CompilerParams(
        dimension_semantics=("parallel",),
        vmem_limit_bytes=VMEM_LIMIT,
    )


# ---------------------------------------------------------------------------
# Pallas kernels
# ---------------------------------------------------------------------------
def _matmul_bias_relu_kernel(p_ref, w_ref, b_ref, o_ref):
    # p_ref: (TM, K) patches tile (f32 or bf16 -> cast to bf16 for the MXU)
    # w_ref: (K, Cp) bf16 weights with the BN scale already folded in
    # b_ref: (1, Cp)  f32 folded-BN bias
    a = p_ref[...].astype(jnp.bfloat16)
    acc = jnp.dot(a, w_ref[...], preferred_element_type=jnp.float32)
    o_ref[...] = jnp.maximum(acc + b_ref[...], 0.0).astype(o_ref.dtype)


def _max3_kernel(x_ref, o_ref):
    # x_ref: (3, TM, C) -- 3 window taps for TM output pixels
    o_ref[...] = jnp.max(x_ref[...], axis=0)


# ---------------------------------------------------------------------------
# Shared matmul wrapper: relu(p @ w + bias), output channels padded to 128k
# ---------------------------------------------------------------------------
def _matmul_bias_relu(p, w_bf16, bias_f32):
    M, K = p.shape
    Cp = w_bf16.shape[1]
    tm = _row_tile(M)
    return pl.pallas_call(
        _matmul_bias_relu_kernel,
        out_shape=jax.ShapeDtypeStruct((M, Cp), jnp.float32),
        grid=(pl.cdiv(M, tm),),
        in_specs=[
            pl.BlockSpec((tm, K), lambda i: (i, 0)),
            pl.BlockSpec((K, Cp), lambda i: (0, 0)),   # resident weights
            pl.BlockSpec((1, Cp), lambda i: (0, 0)),   # resident bias
        ],
        out_specs=pl.BlockSpec((tm, Cp), lambda i: (i, 0)),
        compiler_params=_compiler_params(),
    )(p, w_bf16, bias_f32)


# ---------------------------------------------------------------------------
# Glue: im2col patch extraction (pure data movement, stays in plain JAX).
# Patches are materialized in bf16 (half the HBM bytes of the old f32 path).
# ---------------------------------------------------------------------------
def _extract_patches(x, kh, kw, stride, pad_h, pad_w):
    """x: NHWC -> patches (N, Ho, Wo, kh*kw*C) ordered as (dy, dx, c), bf16."""
    x = x.astype(jnp.bfloat16)
    x = jnp.pad(x, ((0, 0), (pad_h, pad_h), (pad_w, pad_w), (0, 0)))
    N, H, W, C = x.shape
    Ho = (H - kh) // stride + 1
    Wo = (W - kw) // stride + 1
    taps = []
    for dy in range(kh):
        for dx in range(kw):
            taps.append(
                jax.lax.slice(
                    x,
                    (0, dy, dx, 0),
                    (N, dy + stride * (Ho - 1) + 1, dx + stride * (Wo - 1) + 1, C),
                    (1, stride, stride, 1),
                )
            )
    p = jnp.stack(taps, axis=3)                      # (N, Ho, Wo, kh*kw, C)
    return p.reshape(N, Ho, Wo, kh * kw * C), Ho, Wo


def _fold_bn(w, gamma, beta, mean, var):
    """Fold eval-mode BN into the conv weights.  Returns (K, Cout) wm, bias."""
    Cout, Cin, kh, kw = w.shape
    scale = gamma / jnp.sqrt(var + BN_EPS)
    bias = beta - mean * scale
    wm = jnp.transpose(w, (2, 3, 1, 0)).reshape(kh * kw * Cin, Cout)
    return wm * scale[None, :], bias


# ---------------------------------------------------------------------------
# Fused conv + BN + ReLU  (BasicConv2d, eval-mode BN)
# ---------------------------------------------------------------------------
def conv_bn_relu(x, w, gamma, beta, mean, var, *, stride=1, padding=(0, 0)):
    """x: NHWC float32.  w: PyTorch layout (Cout, Cin, kh, kw)."""
    Cout, Cin, kh, kw = w.shape
    patches, Ho, Wo = _extract_patches(x, kh, kw, stride, padding[0], padding[1])
    N = x.shape[0]
    M = N * Ho * Wo
    K = kh * kw * Cin

    wm, bias = _fold_bn(w, gamma, beta, mean, var)
    cp = _round_up(Cout, 128)                         # lane-dense output stores
    wm = jnp.pad(wm, ((0, 0), (0, cp - Cout)))
    bias = jnp.pad(bias, (0, cp - Cout))

    out = _matmul_bias_relu(
        patches.reshape(M, K),
        wm.astype(jnp.bfloat16),
        bias.reshape(1, cp).astype(jnp.float32),
    )
    return out[:, :Cout].reshape(N, Ho, Wo, Cout)


def fused_1x1_convs(x, p3, p7):
    """branch3x3_1 and branch7x7x3_1 are both 1x1 convs on the same input:
    run them as one matmul with Cout = 192 + 192 = 384 (= 3 * 128)."""
    N, H, W, Cin = x.shape
    M = N * H * W

    wm3, b3 = _fold_bn(*p3)
    wm7, b7 = _fold_bn(*p7)
    c3, c7 = wm3.shape[1], wm7.shape[1]
    wm = jnp.concatenate([wm3, wm7], axis=1)
    bias = jnp.concatenate([b3, b7])
    cp = _round_up(c3 + c7, 128)
    wm = jnp.pad(wm, ((0, 0), (0, cp - (c3 + c7))))
    bias = jnp.pad(bias, (0, cp - (c3 + c7)))

    out = _matmul_bias_relu(
        x.reshape(M, Cin),                            # f32; cast to bf16 in-kernel
        wm.astype(jnp.bfloat16),
        bias.reshape(1, cp).astype(jnp.float32),
    )
    out3 = out[:, :c3].reshape(N, H, W, c3)
    out7 = out[:, c3:c3 + c7].reshape(N, H, W, c7)
    return out3, out7


# ---------------------------------------------------------------------------
# 3x3 / stride-2 max pool (valid padding): vertical 3-tap max then horizontal
# 3-tap max, each a Pallas reduction (vs. 9x-stacked HBM input before).
# ---------------------------------------------------------------------------
def _max3_rows(stacked):
    # stacked: (3, M, C) -> (M, C)
    _, M, C = stacked.shape
    tm = _row_tile(M)
    return pl.pallas_call(
        _max3_kernel,
        out_shape=jax.ShapeDtypeStruct((M, C), stacked.dtype),
        grid=(pl.cdiv(M, tm),),
        in_specs=[pl.BlockSpec((3, tm, C), lambda i: (0, i, 0))],
        out_specs=pl.BlockSpec((tm, C), lambda i: (i, 0)),
        compiler_params=_compiler_params(),
    )(stacked)


def maxpool3x3s2(x):
    N, H, W, C = x.shape
    Ho = (H - 3) // 2 + 1
    Wo = (W - 3) // 2 + 1

    # vertical max over 3 row taps, stride 2 along H
    v_taps = [
        jax.lax.slice(x, (0, dy, 0, 0),
                      (N, dy + 2 * (Ho - 1) + 1, W, C), (1, 2, 1, 1))
        for dy in range(3)
    ]
    v = _max3_rows(jnp.stack(v_taps, axis=0).reshape(3, N * Ho * W, C))
    v = v.reshape(N, Ho, W, C)

    # horizontal max over 3 column taps, stride 2 along W
    h_taps = [
        jax.lax.slice(v, (0, 0, dx, 0),
                      (N, Ho, dx + 2 * (Wo - 1) + 1, C), (1, 1, 2, 1))
        for dx in range(3)
    ]
    out = _max3_rows(jnp.stack(h_taps, axis=0).reshape(3, N * Ho * Wo, C))
    return out.reshape(N, Ho, Wo, C)


# ---------------------------------------------------------------------------
# InceptionD forward
# ---------------------------------------------------------------------------
def inception_d_forward(x_nchw, params):
    x = jnp.transpose(x_nchw, (0, 2, 3, 1))          # NCHW -> NHWC

    # fused 1x1 stem (branch3x3_1 + branch7x7x3_1 share the same input)
    b3, b7 = fused_1x1_convs(x, params["branch3x3_1"], params["branch7x7x3_1"])

    b3 = conv_bn_relu(b3, *params["branch3x3_2"], stride=2, padding=(0, 0))

    b7 = conv_bn_relu(b7, *params["branch7x7x3_2"], stride=1, padding=(0, 3))
    b7 = conv_bn_relu(b7, *params["branch7x7x3_3"], stride=1, padding=(3, 0))
    b7 = conv_bn_relu(b7, *params["branch7x7x3_4"], stride=2, padding=(0, 0))

    bp = maxpool3x3s2(x)

    out = jnp.concatenate([b3, b7, bp], axis=-1)      # torch.cat(dim=1) in NHWC
    return jnp.transpose(out, (0, 3, 1, 2))           # NHWC -> NCHW


# ---------------------------------------------------------------------------
# Deterministic parameter construction (synthetic — no checkpoint load)
# ---------------------------------------------------------------------------
def make_params(key, in_channels):
    shapes = {
        "branch3x3_1": (192, in_channels, 1, 1),
        "branch3x3_2": (320, 192, 3, 3),
        "branch7x7x3_1": (192, in_channels, 1, 1),
        "branch7x7x3_2": (192, 192, 1, 7),
        "branch7x7x3_3": (192, 192, 7, 1),
        "branch7x7x3_4": (192, 192, 3, 3),
    }
    params = {}
    for name, shp in shapes.items():
        cout = shp[0]
        key, k_w, k_g, k_b, k_m, k_v = jax.random.split(key, 6)
        w = 0.05 * jax.random.normal(k_w, shp, jnp.float32)
        gamma = 1.0 + 0.1 * jax.random.normal(k_g, (cout,), jnp.float32)
        beta = 0.1 * jax.random.normal(k_b, (cout,), jnp.float32)
        mean = 0.05 * jax.random.normal(k_m, (cout,), jnp.float32)
        var = 1.0 + 0.5 * jax.random.uniform(k_v, (cout,), jnp.float32)
        params[name] = (w, gamma, beta, mean, var)
    return params


# ---------------------------------------------------------------------------
# Pure-JAX reference (for correctness check)
# ---------------------------------------------------------------------------
def _ref_conv_bn_relu(x, w, gamma, beta, mean, var, *, stride=1, padding=(0, 0)):
    y = jax.lax.conv_general_dilated(
        x,
        jnp.transpose(w, (2, 3, 1, 0)),
        window_strides=(stride, stride),
        padding=((padding[0], padding[0]), (padding[1], padding[1])),
        dimension_numbers=("NHWC", "HWIO", "NHWC"),
    )
    scale = gamma / jnp.sqrt(var + BN_EPS)
    bias = beta - mean * scale
    return jnp.maximum(y * scale + bias, 0.0)


def _ref_forward(x_nchw, params):
    x = jnp.transpose(x_nchw, (0, 2, 3, 1))
    b3 = _ref_conv_bn_relu(x, *params["branch3x3_1"])
    b3 = _ref_conv_bn_relu(b3, *params["branch3x3_2"], stride=2)
    b7 = _ref_conv_bn_relu(x, *params["branch7x7x3_1"])
    b7 = _ref_conv_bn_relu(b7, *params["branch7x7x3_2"], padding=(0, 3))
    b7 = _ref_conv_bn_relu(b7, *params["branch7x7x3_3"], padding=(3, 0))
    b7 = _ref_conv_bn_relu(b7, *params["branch7x7x3_4"], stride=2)
    bp = jax.lax.reduce_window(
        x, -jnp.inf, jax.lax.max, (1, 3, 3, 1), (1, 2, 2, 1), "VALID"
    )
    out = jnp.concatenate([b3, b7, bp], axis=-1)
    return jnp.transpose(out, (0, 3, 1, 2))


if __name__ == "__main__":
    key = jax.random.PRNGKey(0)
    k_x, k_p = jax.random.split(key)

    N, C_in, H, W = 2, 8, 9, 9                 # small NCHW input
    x = jax.random.normal(k_x, (N, C_in, H, W), jnp.float32)
    params = make_params(k_p, C_in)

    fwd = jax.jit(functools.partial(inception_d_forward, params=params))
    out = jax.block_until_ready(fwd(x))

    # expected output: (N, 320 + 192 + C_in, 4, 4)
    assert out.shape == (N, 320 + 192 + C_in, (H - 3) // 2 + 1, (W - 3) // 2 + 1), out.shape

    ref = jax.block_until_ready(_ref_forward(x, params))
    err = float(jnp.max(jnp.abs(out - ref)))
    assert jnp.allclose(out, ref, atol=2e-2, rtol=2e-2), err

    print("KERNEL_OK")
</pallas_src>

<mosaic_0001>
module attributes {stable_mosaic.version = 11 : i64} {
  func.func @_matmul_bias_relu_kernel(%arg0: i32, %arg1: memref<96x8xf32, #tpu.memory_space<vmem>>, %arg2: memref<8x384xbf16, #tpu.memory_space<vmem>>, %arg3: memref<1x384xf32, #tpu.memory_space<vmem>>, %arg4: memref<96x384xf32, #tpu.memory_space<vmem>>) attributes {dimension_semantics = [#tpu.dimension_semantics<parallel>], iteration_bounds = array<i64: 2>, scalar_prefetch = 0 : i64, scratch_operands = 0 : i64, tpu.core_type = #tpu.core_type<tc>, window_params = [{transform_indices = @transform_0, window_bounds = array<i64: 96, 8>}, {pipeline_mode = #tpu.pipeline_mode<synchronous>, transform_indices = @transform_1, window_bounds = array<i64: 8, 384>}, {pipeline_mode = #tpu.pipeline_mode<synchronous>, transform_indices = @transform_2, window_bounds = array<i64: 1, 384>}, {transform_indices = @transform_3, window_bounds = array<i64: 96, 384>}]} {
    %c0 = arith.constant 0 : index
    %c0_0 = arith.constant 0 : index
    %0 = vector.load %arg1[%c0, %c0_0] : memref<96x8xf32, #tpu.memory_space<vmem>>, vector<96x8xf32>
    %1 = arith.truncf %0 : vector<96x8xf32> to vector<96x8xbf16>
    %c0_1 = arith.constant 0 : index
    %c0_2 = arith.constant 0 : index
    %2 = vector.load %arg2[%c0_1, %c0_2] : memref<8x384xbf16, #tpu.memory_space<vmem>>, vector<8x384xbf16>
    %cst = arith.constant dense<0.000000e+00> : vector<96x384xf32>
    %3 = tpu.matmul %1, %2, %cst {dimension_numbers = #tpu.dot_dimension_numbers<[1], [0], [0], [1], [0, 0, 1, 1], [], []>} : vector<96x8xbf16>, vector<8x384xbf16>, vector<96x384xf32> -> vector<96x384xf32>
    %c0_3 = arith.constant 0 : index
    %c0_4 = arith.constant 0 : index
    %4 = vector.load %arg3[%c0_3, %c0_4] : memref<1x384xf32, #tpu.memory_space<vmem>>, vector<1x384xf32>
    %5 = vector.broadcast %4 : vector<1x384xf32> to vector<96x384xf32>
    %6 = arith.addf %3, %5 : vector<96x384xf32>
    %cst_5 = arith.constant 0.000000e+00 : f32
    %7 = vector.broadcast %cst_5 : f32 to vector<96x384xf32>
    %8 = arith.maximumf %6, %7 : vector<96x384xf32>
    %c0_6 = arith.constant 0 : index
    %c0_7 = arith.constant 0 : index
    %9 = vector.load %arg4[%c0_6, %c0_7] : memref<96x384xf32, #tpu.memory_space<vmem>>, vector<96x384xf32>
    tpu.vector_store %arg4[%c0_6, %c0_7], %8 {strides = array<i32>} : memref<96x384xf32, #tpu.memory_space<vmem>>, vector<96x384xf32>,
    return
  }
  func.func @transform_0(%arg0: i32) -> (i32, i32) {
    %c0_i32 = arith.constant 0 : i32
    %c0_i32_0 = arith.constant 0 : i32
    return %arg0, %c0_i32 : i32, i32
  }
  func.func @transform_1(%arg0: i32) -> (i32, i32) {
    %c0_i32 = arith.constant 0 : i32
    %c0_i32_0 = arith.constant 0 : i32
    %c0_i32_1 = arith.constant 0 : i32
    return %c0_i32, %c0_i32_0 : i32, i32
  }
  func.func @transform_2(%arg0: i32) -> (i32, i32) {
    %c0_i32 = arith.constant 0 : i32
    %c0_i32_0 = arith.constant 0 : i32
    %c0_i32_1 = arith.constant 0 : i32
    return %c0_i32, %c0_i32_0 : i32, i32
  }
  func.func @transform_3(%arg0: i32) -> (i32, i32) {
    %c0_i32 = arith.constant 0 : i32
    %c0_i32_0 = arith.constant 0 : i32
    return %arg0, %c0_i32 : i32, i32
  }
}

module attributes {stable_mosaic.version = 11 : i64} {
  func.func @_matmul_bias_relu_kernel(%arg0: i32, %arg1: memref<96x1344xbf16, #tpu.memory_space<vmem>>, %arg2: memref<1344x256xbf16, #tpu.memory_space<vmem>>, %arg3: memref<1x256xf32, #tpu.memory_space<vmem>>, %arg4: memref<96x256xf32, #tpu.memory_space<vmem>>) attributes {dimension_semantics = [#tpu.dimension_semantics<parallel>], iteration_bounds = array<i64: 2>, scalar_prefetch = 0 : i64, scratch_operands = 0 : i64, tpu.core_type = #tpu.core_type<tc>, window_params = [{transform_indices = @transform_0, window_bounds = array<i64: 96, 1344>}, {pipeline_mode = #tpu.pipeline_mode<synchronous>, transform_indices = @transform_1, window_bounds = array<i64: 1344, 256>}, {pipeline_mode = #tpu.pipeline_mode<synchronous>, transform_indices = @transform_2, window_bounds = array<i64: 1, 256>}, {transform_indices = @transform_3, window_bounds = array<i64: 96, 256>}]} {
    %c0 = arith.constant 0 : index
    %c0_0 = arith.constant 0 : index
    %0 = vector.load %arg1[%c0, %c0_0] : memref<96x1344xbf16, #tpu.memory_space<vmem>>, vector<96x1344xbf16>
    %c0_1 = arith.constant 0 : index
    %c0_2 = arith.constant 0 : index
    %1 = vector.load %arg2[%c0_1, %c0_2] : memref<1344x256xbf16, #tpu.memory_space<vmem>>, vector<1344x256xbf16>
    %cst = arith.constant dense<0.000000e+00> : vector<96x256xf32>
    %2 = tpu.matmul %0, %1, %cst {dimension_numbers = #tpu.dot_dimension_numbers<[1], [0], [0], [1], [0, 0, 1, 1], [], []>} : vector<96x1344xbf16>, vector<1344x256xbf16>, vector<96x256xf32> -> vector<96x256xf32>
    %c0_3 = arith.constant 0 : index
    %c0_4 = arith.constant 0 : index
    %3 = vector.load %arg3[%c0_3, %c0_4] : memref<1x256xf32, #tpu.memory_space<vmem>>, vector<1x256xf32>
    %4 = vector.broadcast %3 : vector<1x256xf32> to vector<96x256xf32>
    %5 = arith.addf %2, %4 : vector<96x256xf32>
    %cst_5 = arith.constant 0.000000e+00 : f32
    %6 = vector.broadcast %cst_5 : f32 to vector<96x256xf32>
    %7 = arith.maximumf %5, %6 : vector<96x256xf32>
    %c0_6 = arith.constant 0 : index
    %c0_7 = arith.constant 0 : index
    %8 = vector.load %arg4[%c0_6, %c0_7] : memref<96x256xf32, #tpu.memory_space<vmem>>, vector<96x256xf32>
    tpu.vector_store %arg4[%c0_6, %c0_7], %7 {strides = array<i32>} : memref<96x256xf32, #tpu.memory_space<vmem>>, vector<96x256xf32>,
    return
  }
  func.func @transform_0(%arg0: i32) -> (i32, i32) {
    %c0_i32 = arith.constant 0 : i32
    %c0_i32_0 = arith.constant 0 : i32
    return %arg0, %c0_i32 : i32, i32
  }
  func.func @transform_1(%arg0: i32) -> (i32, i32) {
    %c0_i32 = arith.constant 0 : i32
    %c0_i32_0 = arith.constant 0 : i32
    %c0_i32_1 = arith.constant 0 : i32
    return %c0_i32, %c0_i32_0 : i32, i32
  }
  func.func @transform_2(%arg0: i32) -> (i32, i32) {
    %c0_i32 = arith.constant 0 : i32
    %c0_i32_0 = arith.constant 0 : i32
    %c0_i32_1 = arith.constant 0 : i32
    return %c0_i32, %c0_i32_0 : i32, i32
  }
  func.func @transform_3(%arg0: i32) -> (i32, i32) {
    %c0_i32 = arith.constant 0 : i32
    %c0_i32_0 = arith.constant 0 : i32
    return %arg0, %c0_i32 : i32, i32
  }
}

module attributes {stable_mosaic.version = 11 : i64} {
  func.func @_matmul_bias_relu_kernel(%arg0: i32, %arg1: memref<16x1728xbf16, #tpu.memory_space<vmem>>, %arg2: memref<1728x256xbf16, #tpu.memory_space<vmem>>, %arg3: memref<1x256xf32, #tpu.memory_space<vmem>>, %arg4: memref<16x256xf32, #tpu.memory_space<vmem>>) attributes {dimension_semantics = [#tpu.dimension_semantics<parallel>], iteration_bounds = array<i64: 2>, scalar_prefetch = 0 : i64, scratch_operands = 0 : i64, tpu.core_type = #tpu.core_type<tc>, window_params = [{transform_indices = @transform_0, window_bounds = array<i64: 16, 1728>}, {pipeline_mode = #tpu.pipeline_mode<synchronous>, transform_indices = @transform_1, window_bounds = array<i64: 1728, 256>}, {pipeline_mode = #tpu.pipeline_mode<synchronous>, transform_indices = @transform_2, window_bounds = array<i64: 1, 256>}, {transform_indices = @transform_3, window_bounds = array<i64: 16, 256>}]} {
    %c0 = arith.constant 0 : index
    %c0_0 = arith.constant 0 : index
    %0 = vector.load %arg1[%c0, %c0_0] : memref<16x1728xbf16, #tpu.memory_space<vmem>>, vector<16x1728xbf16>
    %c0_1 = arith.constant 0 : index
    %c0_2 = arith.constant 0 : index
    %1 = vector.load %arg2[%c0_1, %c0_2] : memref<1728x256xbf16, #tpu.memory_space<vmem>>, vector<1728x256xbf16>
    %cst = arith.constant dense<0.000000e+00> : vector<16x256xf32>
    %2 = tpu.matmul %0, %1, %cst {dimension_numbers = #tpu.dot_dimension_numbers<[1], [0], [0], [1], [0, 0, 1, 1], [], []>} : vector<16x1728xbf16>, vector<1728x256xbf16>, vector<16x256xf32> -> vector<16x256xf32>
    %c0_3 = arith.constant 0 : index
    %c0_4 = arith.constant 0 : index
    %3 = vector.load %arg3[%c0_3, %c0_4] : memref<1x256xf32, #tpu.memory_space<vmem>>, vector<1x256xf32>
    %4 = vector.broadcast %3 : vector<1x256xf32> to vector<16x256xf32>
    %5 = arith.addf %2, %4 : vector<16x256xf32>
    %cst_5 = arith.constant 0.000000e+00 : f32
    %6 = vector.broadcast %cst_5 : f32 to vector<16x256xf32>
    %7 = arith.maximumf %5, %6 : vector<16x256xf32>
    %c0_6 = arith.constant 0 : index
    %c0_7 = arith.constant 0 : index
    %8 = vector.load %arg4[%c0_6, %c0_7] : memref<16x256xf32, #tpu.memory_space<vmem>>, vector<16x256xf32>
    tpu.vector_store %arg4[%c0_6, %c0_7], %7 {strides = array<i32>} : memref<16x256xf32, #tpu.memory_space<vmem>>, vector<16x256xf32>,
    return
  }
  func.func @transform_0(%arg0: i32) -> (i32, i32) {
    %c0_i32 = arith.constant 0 : i32
    %c0_i32_0 = arith.constant 0 : i32
    return %arg0, %c0_i32 : i32, i32
  }
  func.func @transform_1(%arg0: i32) -> (i32, i32) {
    %c0_i32 = arith.constant 0 : i32
    %c0_i32_0 = arith.constant 0 : i32
    %c0_i32_1 = arith.constant 0 : i32
    return %c0_i32, %c0_i32_0 : i32, i32
  }
  func.func @transform_2(%arg0: i32) -> (i32, i32) {
    %c0_i32 = arith.constant 0 : i32
    %c0_i32_0 = arith.constant 0 : i32
    %c0_i32_1 = arith.constant 0 : i32
    return %c0_i32, %c0_i32_0 : i32, i32
  }
  func.func @transform_3(%arg0: i32) -> (i32, i32) {
    %c0_i32 = arith.constant 0 : i32
    %c0_i32_0 = arith.constant 0 : i32
    return %arg0, %c0_i32 : i32, i32
  }
}

module attributes {stable_mosaic.version = 11 : i64} {
  func.func @_matmul_bias_relu_kernel(%arg0: i32, %arg1: memref<16x1728xbf16, #tpu.memory_space<vmem>>, %arg2: memref<1728x384xbf16, #tpu.memory_space<vmem>>, %arg3: memref<1x384xf32, #tpu.memory_space<vmem>>, %arg4: memref<16x384xf32, #tpu.memory_space<vmem>>) attributes {dimension_semantics = [#tpu.dimension_semantics<parallel>], iteration_bounds = array<i64: 2>, scalar_prefetch = 0 : i64, scratch_operands = 0 : i64, tpu.core_type = #tpu.core_type<tc>, window_params = [{transform_indices = @transform_0, window_bounds = array<i64: 16, 1728>}, {pipeline_mode = #tpu.pipeline_mode<synchronous>, transform_indices = @transform_1, window_bounds = array<i64: 1728, 384>}, {pipeline_mode = #tpu.pipeline_mode<synchronous>, transform_indices = @transform_2, window_bounds = array<i64: 1, 384>}, {transform_indices = @transform_3, window_bounds = array<i64: 16, 384>}]} {
    %c0 = arith.constant 0 : index
    %c0_0 = arith.constant 0 : index
    %0 = vector.load %arg1[%c0, %c0_0] : memref<16x1728xbf16, #tpu.memory_space<vmem>>, vector<16x1728xbf16>
    %c0_1 = arith.constant 0 : index
    %c0_2 = arith.constant 0 : index
    %1 = vector.load %arg2[%c0_1, %c0_2] : memref<1728x384xbf16, #tpu.memory_space<vmem>>, vector<1728x384xbf16>
    %cst = arith.constant dense<0.000000e+00> : vector<16x384xf32>
    %2 = tpu.matmul %0, %1, %cst {dimension_numbers = #tpu.dot_dimension_numbers<[1], [0], [0], [1], [0, 0, 1, 1], [], []>} : vector<16x1728xbf16>, vector<1728x384xbf16>, vector<16x384xf32> -> vector<16x384xf32>
    %c0_3 = arith.constant 0 : index
    %c0_4 = arith.constant 0 : index
    %3 = vector.load %arg3[%c0_3, %c0_4] : memref<1x384xf32, #tpu.memory_space<vmem>>, vector<1x384xf32>
    %4 = vector.broadcast %3 : vector<1x384xf32> to vector<16x384xf32>
    %5 = arith.addf %2, %4 : vector<16x384xf32>
    %cst_5 = arith.constant 0.000000e+00 : f32
    %6 = vector.broadcast %cst_5 : f32 to vector<16x384xf32>
    %7 = arith.maximumf %5, %6 : vector<16x384xf32>
    %c0_6 = arith.constant 0 : index
    %c0_7 = arith.constant 0 : index
    %8 = vector.load %arg4[%c0_6, %c0_7] : memref<16x384xf32, #tpu.memory_space<vmem>>, vector<16x384xf32>
    tpu.vector_store %arg4[%c0_6, %c0_7], %7 {strides = array<i32>} : memref<16x384xf32, #tpu.memory_space<vmem>>, vector<16x384xf32>,
    return
  }
  func.func @transform_0(%arg0: i32) -> (i32, i32) {
    %c0_i32 = arith.constant 0 : i32
    %c0_i32_0 = arith.constant 0 : i32
    return %arg0, %c0_i32 : i32, i32
  }
  func.func @transform_1(%arg0: i32) -> (i32, i32) {
    %c0_i32 = arith.constant 0 : i32
    %c0_i32_0 = arith.constant 0 : i32
    %c0_i32_1 = arith.constant 0 : i32
    return %c0_i32, %c0_i32_0 : i32, i32
  }
  func.func @transform_2(%arg0: i32) -> (i32, i32) {
    %c0_i32 = arith.constant 0 : i32
    %c0_i32_0 = arith.constant 0 : i32
    %c0_i32_1 = arith.constant 0 : i32
    return %c0_i32, %c0_i32_0 : i32, i32
  }
  func.func @transform_3(%arg0: i32) -> (i32, i32) {
    %c0_i32 = arith.constant 0 : i32
    %c0_i32_0 = arith.constant 0 : i32
    return %arg0, %c0_i32 : i32, i32
  }
}

module attributes {stable_mosaic.version = 11 : i64} {
  func.func @_max3_kernel(%arg0: i32, %arg1: memref<3x48x8xf32, #tpu.memory_space<vmem>>, %arg2: memref<48x8xf32, #tpu.memory_space<vmem>>) attributes {dimension_semantics = [#tpu.dimension_semantics<parallel>], iteration_bounds = array<i64: 2>, scalar_prefetch = 0 : i64, scratch_operands = 0 : i64, tpu.core_type = #tpu.core_type<tc>, window_params = [{transform_indices = @transform_0, window_bounds = array<i64: 3, 48, 8>}, {transform_indices = @transform_1, window_bounds = array<i64: 48, 8>}]} {
    %c0 = arith.constant 0 : index
    %c0_0 = arith.constant 0 : index
    %c0_1 = arith.constant 0 : index
    %0 = vector.load %arg1[%c0, %c0_0, %c0_1] : memref<3x48x8xf32, #tpu.memory_space<vmem>>, vector<3x48x8xf32>
    %cst = arith.constant dense<0xFF800000> : vector<48x8xf32>
    %1 = vector.multi_reduction <maximumf>, %0, %cst [0] : vector<3x48x8xf32> to vector<48x8xf32>
    %c0_2 = arith.constant 0 : index
    %c0_3 = arith.constant 0 : index
    %2 = vector.load %arg2[%c0_2, %c0_3] : memref<48x8xf32, #tpu.memory_space<vmem>>, vector<48x8xf32>
    tpu.vector_store %arg2[%c0_2, %c0_3], %1 {strides = array<i32>} : memref<48x8xf32, #tpu.memory_space<vmem>>, vector<48x8xf32>,
    return
  }
  func.func @transform_0(%arg0: i32) -> (i32, i32, i32) {
    %c0_i32 = arith.constant 0 : i32
    %c0_i32_0 = arith.constant 0 : i32
    %c0_i32_1 = arith.constant 0 : i32
    return %c0_i32, %arg0, %c0_i32_0 : i32, i32, i32
  }
  func.func @transform_1(%arg0: i32) -> (i32, i32) {
    %c0_i32 = arith.constant 0 : i32
    %c0_i32_0 = arith.constant 0 : i32
    return %arg0, %c0_i32 : i32, i32
  }
}

module attributes {stable_mosaic.version = 11 : i64} {
  func.func @_max3_kernel(%arg0: i32, %arg1: memref<3x16x8xf32, #tpu.memory_space<vmem>>, %arg2: memref<16x8xf32, #tpu.memory_space<vmem>>) attributes {dimension_semantics = [#tpu.dimension_semantics<parallel>], iteration_bounds = array<i64: 2>, scalar_prefetch = 0 : i64, scratch_operands = 0 : i64, tpu.core_type = #tpu.core_type<tc>, window_params = [{transform_indices = @transform_0, window_bounds = array<i64: 3, 16, 8>}, {transform_indices = @transform_1, window_bounds = array<i64: 16, 8>}]} {
    %c0 = arith.constant 0 : index
    %c0_0 = arith.constant 0 : index
    %c0_1 = arith.constant 0 : index
    %0 = vector.load %arg1[%c0, %c0_0, %c0_1] : memref<3x16x8xf32, #tpu.memory_space<vmem>>, vector<3x16x8xf32>
    %cst = arith.constant dense<0xFF800000> : vector<16x8xf32>
    %1 = vector.multi_reduction <maximumf>, %0, %cst [0] : vector<3x16x8xf32> to vector<16x8xf32>
    %c0_2 = arith.constant 0 : index
    %c0_3 = arith.constant 0 : index
    %2 = vector.load %arg2[%c0_2, %c0_3] : memref<16x8xf32, #tpu.memory_space<vmem>>, vector<16x8xf32>
    tpu.vector_store %arg2[%c0_2, %c0_3], %1 {strides = array<i32>} : memref<16x8xf32, #tpu.memory_space<vmem>>, vector<16x8xf32>,
    return
  }
  func.func @transform_0(%arg0: i32) -> (i32, i32, i32) {
    %c0_i32 = arith.constant 0 : i32
    %c0_i32_0 = arith.constant 0 : i32
    %c0_i32_1 = arith.constant 0 : i32
    return %c0_i32, %arg0, %c0_i32_0 : i32, i32, i32
  }
  func.func @transform_1(%arg0: i32) -> (i32, i32) {
    %c0_i32 = arith.constant 0 : i32
    %c0_i32_0 = arith.constant 0 : i32
    return %arg0, %c0_i32 : i32, i32
  }
}

</mosaic_0001>

<bundles_post_ra>
// kernel: inception_d_forward.7
= control target key start
LH: loop header
LB: loop body
LE: loop exit
PB: predicated region body
PF: predicated region fallthrough
CT: control target
= control target key end

     0   :  { %8 = vsyncpa [#allocation3], 0  ;;  %s1534_s0 = inlined_call_operand.vmem [shape: f32[162,8], index: 0, kind: input, shape index: {}]   ;;  %s1535_s1 = inlined_call_operand.hbm [shape: bf16[8,384], index: 1, kind: input, shape index: {}]   ;;  %s1536_s2 = inlined_call_operand.hbm [shape: f32[1,384], index: 2, kind: input, shape index: {}]   ;;  %s1537_s3 = inlined_call_operand.vmem [shape: f32[162,384], index: 3, kind: output, shape index: {}]  }
   0x1   :  { %9 = vsyncpa [#allocation5], 0  ;;  %s1149_s12 = smov 0   ;;  %s1151_s13 = smov 0  }
   0x2   :  { %s1153_s14 = smov 0  }
   0x3 LB: > { %s1162_s15 = sadd.s32 4294967295, %s1092_s14   ;;  %s1164_s16 = sadd.s32 1, %s1092_s14   ;;  %s1092_s14 = sphi %s1153_s14, %s1557_s14   ;;  %s1088_s13 = sphi %s1151_s13, %s1556_s13   ;;  %s1084_s12 = sphi %s1149_s12, %s1555_s12  }
   0x4   : > { %s87_s17 = ssub.s32 %s1092_s14, %s1164_s16  ;;  %s90_s18 = sadd.s32 1, %s1088_s13 }
   0x5   : > { %p88_p0 = scmp.eq.s32.totalorder %s87_s17, 0  ;;  %p100_p1 = scmp.ne.s32.totalorder %s1088_s13, %s1084_s12 }
   0x6   : > { %p101_p2 = scmp.eq.s32.totalorder %s1162_s15, 1  ;;  %p794_p3 = scmp.ge.s32.totalorder %s1092_s14, 1 }
   0x7   : > { %s1172_s19 = scalar_select %p88_p0, %s1088_s13, %s90_s18  }
   0x8   : > { %p1174_p4 = por %p101_p2, %p100_p1  ;;  %p114_p5 = scmp.lt.s32.totalorder %s1092_s14, 3 }
   0x9   : > { %p1538_p6 = scmp.eq.s32.totalorder %s1162_s15, 0  ;;  %s1126_s22 = smov [#allocation2]  }
   0xa   : > { %s1540_s20 = scalar_select %p1174_p4, 1, 0 }
   0xb   : > { %p1179_p7 = pnand %p794_p3, %p114_p5  ;;  %s127_s23 = sshll.u32 %s1126_s22, 4  ;;  %s128_s23 = int_to_ptr.vmem [resolvable:$true] %s127_s23 }
   0xc   : > { %s1127_s24 = smov [#allocation4]   ;;  %s974_s29 = scalar_lea.hbm %s1535_s1, 192 }
   0xd   : > { %s1541_s21 = scalar_select %p1179_p7, 1, 0 }
   0xe   : > { %p863_p8 = pneg %p1179_p7  ;;  %s138_s25 = sshll.u32 %s1127_s24, 4  ;;  %s1191_s25 = int_to_ptr.vmem [resolvable:$true] %s138_s25 }
   0xf   : > { %p975_p10 = scmp.ne.s32.totalorder %s1535_s1, %s974_s29  ;;  %p981_p0 = scmp.lt.u32.totalorder %s974_s29, %s1535_s1 }
  0x10   : > { %p1187_p9 = pnand %p1538_p6, %p863_p8 }
  0x12   : > { %p976_p11 = pneg %p1187_p9 }
  0x14   : > { %p977_p12 = pnand %p976_p11, %p975_p10 }
  0x16   : > { %p978_p13 = pneg %p977_p12 }
  0x18   : > { %p983_p1 = pnand %p981_p0, %p978_p13 }
  0x1a   : > { %986 = shalt.err (!%p983_p1)
}
  0x1b   : > { %s987_s7 = scalar_lea.vmem %s128_s23, 192  ;;  %p995_p8 = scmp.lt.s32.totalorder %s128_s23, %s128_s23 }
  0x1c   : > { %p988_p2 = scmp.ne.s32.totalorder %s128_s23, %s987_s7  ;;  %p996_p6 = scmp.lt.s32.totalorder %s987_s7, %s987_s7 }
  0x1e   : > { %p990_p3 = pnand %p988_p2, %p976_p11  ;;  %p997_p4 = por %p996_p6, %p995_p8 }
  0x20   : > { %p991_p5 = pneg %p990_p3 }
  0x22   : > { %p998_p7 = pnand %p997_p4, %p991_p5 }
  0x24   : > { %1001 = shalt.err (!%p998_p7)
}
  0x25   : > { %866 = dma.hbm_to_vmem [thread:$0]  (!%p1187_p9), %s1535_s1, 192, %s128_s23, [#allocation3]  }
  0x26   : > { %s1002_s14 = scalar_lea.hbm %s1536_s2, 48 }
  0x27   : > { %p1003_p10 = scmp.ne.s32.totalorder %s1536_s2, %s1002_s14  ;;  %p1009_p7 = scmp.lt.u32.totalorder %s1002_s14, %s1536_s2 }
  0x29   : > { %p1005_p6 = pnand %p1003_p10, %p976_p11 }
  0x2b   : > { %p1006_p4 = pneg %p1005_p6 }
  0x2d   : > { %p1011_p12 = pnand %p1009_p7, %p1006_p4 }
  0x2f   : > { %1014 = shalt.err (!%p1011_p12)
}
  0x30   : > { %s1015_s23 = scalar_lea.vmem %s1191_s25, 48  ;;  %s1022_s27 = scalar_lea.vmem %s1191_s25, 64 }
  0x31   : > { %p1016_p13 = scmp.ne.s32.totalorder %s1191_s25, %s1015_s23  ;;  %p1023_p2 = scmp.lt.s32.totalorder %s1191_s25, %s1191_s25 }
  0x32   : > { %p1024_p3 = scmp.lt.s32.totalorder %s1022_s27, %s1015_s23 }
  0x33   : > { %p1018_p0 = pnand %p1016_p13, %p976_p11 }
  0x34   : > { %p1025_p5 = por %p1024_p3, %p1023_p2 }
  0x35   : > { %p1019_p1 = pneg %p1018_p0 }
  0x37   : > { %p1026_p8 = pnand %p1025_p5, %p1019_p1 }
  0x39   : > { %1029 = shalt.err (!%p1026_p8)
}
  0x3a   : > { %869 = dma.hbm_to_vmem [thread:$0]  (!%p1187_p9), %s1536_s2, 48, %s1191_s25, [#allocation5]  }
  0x3b   : > { %p1543_p10 = scmp.ne.s32.totalorder %s1541_s21, 0 }
  0x3c   : > { %p1544_p11 = scmp.eq.s32.totalorder (!%p1543_p10), %s1162_s15, 0 }
  0x3d   : > { %168 = sbr.rel (%p1543_p10) target bundleno = 407 (0x197), region = 32 }
  0x44   : > { %1075 = dma.done.wait (%p1544_p11), [#allocation3], 192   ;;  %p1545_p6 = pmov %p1544_p11 }
  0x46   : > { %1077 = vsyncadd (%p1545_p6), [#allocation3], 4294967104  ;;  %p1546_p4 = pmov %p1545_p6 }
  0x48   : > { %1079 = dma.done.wait (%p1546_p4), [#allocation5], 48   ;;  %p1547_p7 = pmov %p1546_p4 }
  0x49   : > { %s1252_s26 = smul.u32 12, %s1162_s15  ;;  %v1128_v0 = vmov 0   ;;  %v238_v1 = vld [vmem:[#allocation2] sm:$0xff]  ;;  %vm284_vm0 = vcmask 1043456   ;;  %v969_v2 = vld [vmem:[#allocation2 + $0x8] ss:$0 sps:$4 sm:$0xff]   ;;  %v242_v25 = vlaneseq }
  0x4a   : > { %1081 = vsyncadd (%p1547_p7), [#allocation5], 4294967248  ;;  %326 = vmatprep.mubr.bf16.mxu0 %v1128_v0  ;;  %376 = vmatprep.mubr.bf16.mxu1 %v1128_v0  ;;  %v803_v3 = vcombine.high %v238_v1, %v238_v1  ;;  %v802_v4 = vcombine.low %v238_v1, %v238_v1  ;;  %vm265_vm1 = vcmask 64512   ;;  %v292_v12 = vsel %vm284_vm0, %v969_v2, 0  ;;  %v240_v28 = vld [vmem:[#allocation4] sm:$0x7] }
  0x4b   : > { %p204_p9 = scmp.lt.s32.totalorder %s1252_s26, 20  ;;  %v243_v26 = vshrl.u32 %v242_v25, 7  ;;  %s196_s6 = sand.u32 1, %s1084_s12  }
  0x4c   : > { %805 = vmatprep.subr.msk.bf16.mxu0 %vm284_vm0, %v803_v3  ;;  %v286_v9 = vsel %vm284_vm0, %v802_v4, 0  ;;  %850 = vmatprep.subr.msk.bf16.mxu1 %vm284_vm0, %v803_v3  ;;  %s853_s7 = smul.u32 288, %s196_s6  ;;  %p1548_p12 = scmp.ne.s32.totalorder %s1540_s20, 0 }
  0x4d   : > { %s205_s21 = scalar_select %p204_p9, %s1252_s26, 20  ;;  %295 = vmatpush1.bf16.msra.mxu0 %v286_v9  ;;  %851 = vmatpush1.bf16.msra.mxu1 %v286_v9  ;;  %v244_v27 = vsub.s32 0, %v243_v26  ;;  %v248_v29 = vsub.s32 1, %v243_v26  ;;  %v252_v38 = vsub.s32 2, %v243_v26 }
  0x4e   : > { %852 = vmatprep.subr.msk.bf16.mxu1 %vm284_vm0, %v969_v2  ;;  %s1303_s12 = scalar_lea.vmem [#allocation6], %s853_s7   ;;  %s548_s8 = ssub.s32 (%p1548_p12), 21, %s1252_s26 }
  0x4f   : > { %s801_s25 = sshll.u32 %s205_s21, 3  ;;  %v1291_v30 = vrot.slane %v240_v28, %v244_v27  ;;  %v1293_v31 = vrot.slane %v240_v28, %v248_v29  ;;  %v1307_v55 = vrot.slane %v240_v28, %v252_v38  ;;  %s874_s9 = smul.u32 (%p1548_p12), 288, %s1162_s15 }
  0x50   : > { %s1259_s5 = scalar_lea.vmem %s1534_s0, %s801_s25  ;;  %p549_p13 = scmp.lt.s32.totalorder (%p1548_p12), %s548_s8, 12 }
  0x51   : > { %v220_v5 = vld [vmem:[%s1259_s5] sm:$0xff]  ;;  %v221_v6 = vld [vmem:[%s1259_s5 + $0x8] sm:$0xff]  ;;  %v230_v7 = vld [vmem:[%s1259_s5 + $0x50] sm:$0xff]  ;;  %s1378_s14 = scalar_lea.vmem (%p1548_p12), %s1537_s3, %s874_s9  }
  0x52   : > { %v231_v8 = vld [vmem:[%s1259_s5 + $0x58] sm:$0xff]  ;;  %v232_v10 = vpack.c.bf16 %v221_v6, %v220_v5  ;;  %v222_v13 = vld [vmem:[%s1259_s5 + $0x10] sm:$0xff]  ;;  %v224_v16 = vld [vmem:[%s1259_s5 + $0x20] sm:$0xff] }
  0x53   : > { %v237_v11 = vpack.c.bf16 %v231_v8, %v230_v7  ;;  %v223_v14 = vld [vmem:[%s1259_s5 + $0x18] sm:$0xff]  ;;  %v225_v17 = vld [vmem:[%s1259_s5 + $0x28] sm:$0xff]  ;;  %v226_v19 = vld [vmem:[%s1259_s5 + $0x30] sm:$0xff] }
  0x54   : > { %806 = vmatmul.mubr.msk.bf16.vlgmr.msra.gmra.mrb[0].mxu0 %vm265_vm1, %v232_v10  ;;  %v233_v15 = vpack.c.bf16 %v223_v14, %v222_v13  ;;  %v234_v18 = vpack.c.bf16 %v225_v17, %v224_v16  ;;  %v227_v20 = vld [vmem:[%s1259_s5 + $0x38] sm:$0xff]  ;;  %v228_v21 = vld [vmem:[%s1259_s5 + $0x40] sm:$0xff]  ;;  %v229_v22 = vld [vmem:[%s1259_s5 + $0x48] sm:$0xff] }
  0x55   : > { %811 = vmatmul.mubr.msk.bf16.vlgmr.msra.gmra.mrb[0].mxu1 %vm265_vm1, %v237_v11  ;;  %336 = vmatprep.mubr.bf16.mxu0 %v1128_v0  ;;  %v235_v23 = vpack.c.bf16 %v227_v20, %v226_v19  ;;  %v236_v24 = vpack.c.bf16 %v229_v22, %v228_v21 }
  0x56   : > { %837 = vmatpush3.bf16.msra.mxu1 %v292_v12  ;;  %838 = vmatprep.mubr.msk.bf16.mxu1 %vm265_vm1, %v232_v10 }
  0x5c   : > { %807 = vmatmul.mubr.msk.bf16.gmra.mrb[4].mxu0 %vm265_vm1, %v233_v15 }
  0x5d   : > { %839 = vmatmul.mubr.msk.bf16.vlgmr.msra.gmra.mrb[4].mxu1 %vm265_vm1, %v233_v15  ;;  %346 = vmatprep.mubr.bf16.mxu0 %v1128_v0 }
  0x5e   : > { %842 = vmatprep.mubr.msk.bf16.mxu1 %vm265_vm1, %v234_v18 }
  0x64   : > { %808 = vmatmul.mubr.msk.bf16.gmra.mrb[8].mxu0 %vm265_vm1, %v234_v18 }
  0x65   : > { %843 = vmatmul.mubr.msk.bf16.gmra.mrb[8].mxu1 %vm265_vm1, %v235_v23  ;;  %356 = vmatprep.mubr.bf16.mxu0 %v1128_v0 }
  0x66   : > { %846 = vmatprep.mubr.msk.bf16.mxu1 %vm265_vm1, %v236_v24 }
  0x6c   : > { %809 = vmatmul.mubr.msk.bf16.gmra.mrb[12].mxu0 %vm265_vm1, %v235_v23 }
  0x6d   : > { %847 = vmatmul.mubr.msk.bf16.gmra.mrb[12].mxu1 %vm265_vm1, %v237_v11  ;;  %366 = vmatprep.mubr.bf16.mxu0 %v1128_v0 }
  0x74   : > { %810 = vmatmul.mubr.msk.bf16.gmra.mrb[16].mxu0 %vm265_vm1, %v236_v24 }
 0x127   : > { %v328_v32 = vpop.f32.mrb[0].mxu0 }
 0x128   : > { %v378_v33 = vpop.f32.mrb[0].mxu1  ;;  %v329_v34 = vadd.f32 %v328_v32, %v1291_v30  ;;  %v330_v35 = vpop.f32.mrb[1].mxu0 }
 0x129   : > { %v379_v36 = vadd.f32 %v378_v33, %v1291_v30  ;;  %v380_v37 = vpop.f32.mrb[1].mxu1  ;;  %v331_v39 = vadd.f32 %v330_v35, %v1293_v31  ;;  %v332_v40 = vpop.f32.mrb[2].mxu0 }
 0x12a   : > { %v381_v41 = vadd.f32 %v380_v37, %v1293_v31  ;;  %v382_v42 = vpop.f32.mrb[2].mxu1  ;;  %v468_v43 = vmax.f32 %v329_v34, 0.0  ;;  %v333_v44 = vadd.f32 %v332_v40, %v1291_v30  ;;  %v334_v45 = vpop.f32.mrb[3].mxu0 }
 0x12b   : > { %v498_v46 = vmax.f32 %v379_v36, 0.0  ;;  %v383_v47 = vadd.f32 %v382_v42, %v1291_v30  ;;  %v384_v48 = vpop.f32.mrb[3].mxu1  ;;  %v469_v49 = vmax.f32 %v331_v39, 0.0  ;;  %v335_v50 = vadd.f32 %v334_v45, %v1293_v31 }
 0x12c   : > { %v499_v51 = vmax.f32 %v381_v41, 0.0  ;;  %v385_v52 = vadd.f32 %v384_v48, %v1293_v31  ;;  %504 = vst [vmem:[%s1303_s12] sm:$0xff] %v468_v43  ;;  %v471_v53 = vmax.f32 %v333_v44, 0.0 }
 0x12d   : > { %534 = vst [vmem:[%s1303_s12 + $0xf0] sm:$0xff] %v498_v46  ;;  %v501_v54 = vmax.f32 %v383_v47, 0.0  ;;  %505 = vst [vmem:[%s1303_s12 + $0x8] sm:$0xff] %v469_v49  ;;  %v472_v56 = vmax.f32 %v335_v50, 0.0 }
 0x12e   : > { %535 = vst [vmem:[%s1303_s12 + $0xf8] sm:$0xff] %v499_v51  ;;  %v502_v57 = vmax.f32 %v385_v52, 0.0  ;;  %507 = vst [vmem:[%s1303_s12 + $0x18] sm:$0xff] %v471_v53 }
 0x12f   : > { %537 = vst [vmem:[%s1303_s12 + $0x108] sm:$0xff] %v501_v54  ;;  %508 = vst [vmem:[%s1303_s12 + $0x20] sm:$0xff] %v472_v56  ;;  %v338_v58 = vpop.f32.mrb[4].mxu0 }
 0x130   : > { %538 = vst [vmem:[%s1303_s12 + $0x110] sm:$0xff] %v502_v57  ;;  %v840_v59 = vpop.f32.mrb[4].mxu1  ;;  %v339_v60 = vadd.f32 %v338_v58, %v1291_v30  ;;  %v340_v61 = vpop.f32.mrb[5].mxu0 }
 0x131   : > { %v430_v62 = vadd.f32 %v840_v59, %v1307_v55  ;;  %v421_v63 = vpop.f32.mrb[5].mxu1  ;;  %v341_v0 = vadd.f32 %v340_v61, %v1293_v31  ;;  %v342_v1 = vpop.f32.mrb[6].mxu0 }
 0x132   : > { %v422_v2 = vadd.f32 %v421_v63, %v1307_v55  ;;  %v841_v3 = vpop.f32.mrb[6].mxu1  ;;  %v474_v4 = vmax.f32 %v339_v60, 0.0  ;;  %v343_v5 = vadd.f32 %v342_v1, %v1291_v30  ;;  %v344_v6 = vpop.f32.mrb[7].mxu0 }
 0x133   : > { %v476_v7 = vmax.f32 %v430_v62, 0.0  ;;  %v433_v8 = vadd.f32 %v841_v3, %v1307_v55  ;;  %v424_v9 = vpop.f32.mrb[7].mxu1  ;;  %v475_v10 = vmax.f32 %v341_v0, 0.0  ;;  %v345_v11 = vadd.f32 %v344_v6, %v1293_v31 }
 0x134   : > { %v470_v12 = vmax.f32 %v422_v2, 0.0  ;;  %v425_v13 = vadd.f32 %v424_v9, %v1307_v55  ;;  %510 = vst [vmem:[%s1303_s12 + $0x30] sm:$0xff] %v474_v4  ;;  %v477_v14 = vmax.f32 %v343_v5, 0.0 }
 0x135   : > { %512 = vst [vmem:[%s1303_s12 + $0x40] sm:$0xff] %v476_v7  ;;  %v479_v15 = vmax.f32 %v433_v8, 0.0  ;;  %511 = vst [vmem:[%s1303_s12 + $0x38] sm:$0xff] %v475_v10  ;;  %v478_v16 = vmax.f32 %v345_v11, 0.0 }
 0x136   : > { %506 = vst [vmem:[%s1303_s12 + $0x10] sm:$0xff] %v470_v12  ;;  %v473_v17 = vmax.f32 %v425_v13, 0.0  ;;  %513 = vst [vmem:[%s1303_s12 + $0x48] sm:$0xff] %v477_v14 }
 0x137   : > { %515 = vst [vmem:[%s1303_s12 + $0x58] sm:$0xff] %v479_v15  ;;  %514 = vst [vmem:[%s1303_s12 + $0x50] sm:$0xff] %v478_v16  ;;  %v348_v18 = vpop.f32.mrb[8].mxu0 }
 0x138   : > { %509 = vst [vmem:[%s1303_s12 + $0x28] sm:$0xff] %v473_v17  ;;  %v844_v19 = vpop.f32.mrb[8].mxu1  ;;  %v349_v20 = vadd.f32 %v348_v18, %v1291_v30  ;;  %v350_v21 = vpop.f32.mrb[9].mxu0 }
 0x139   : > { %v446_v22 = vadd.f32 %v844_v19, %v1307_v55  ;;  %v437_v23 = vpop.f32.mrb[9].mxu1  ;;  %v351_v24 = vadd.f32 %v350_v21, %v1293_v31  ;;  %v352_v25 = vpop.f32.mrb[10].mxu0 }
 0x13a   : > { %v438_v26 = vadd.f32 %v437_v23, %v1307_v55  ;;  %v845_v27 = vpop.f32.mrb[10].mxu1  ;;  %v480_v28 = vmax.f32 %v349_v20, 0.0  ;;  %v353_v29 = vadd.f32 %v352_v25, %v1291_v30  ;;  %v354_v32 = vpop.f32.mrb[11].mxu0 }
 0x13b   : > { %v488_v33 = vmax.f32 %v446_v22, 0.0  ;;  %v449_v34 = vadd.f32 %v845_v27, %v1307_v55  ;;  %v440_v35 = vpop.f32.mrb[11].mxu1  ;;  %v481_v36 = vmax.f32 %v351_v24, 0.0  ;;  %v355_v37 = vadd.f32 %v354_v32, %v1293_v31 }
 0x13c   : > { %v482_v38 = vmax.f32 %v438_v26, 0.0  ;;  %v441_v39 = vadd.f32 %v440_v35, %v1307_v55  ;;  %516 = vst [vmem:[%s1303_s12 + $0x60] sm:$0xff] %v480_v28  ;;  %v483_v40 = vmax.f32 %v353_v29, 0.0 }
 0x13d   : > { %524 = vst [vmem:[%s1303_s12 + $0xa0] sm:$0xff] %v488_v33  ;;  %v491_v41 = vmax.f32 %v449_v34, 0.0  ;;  %517 = vst [vmem:[%s1303_s12 + $0x68] sm:$0xff] %v481_v36  ;;  %v484_v42 = vmax.f32 %v355_v37, 0.0 }
 0x13e   : > { %518 = vst [vmem:[%s1303_s12 + $0x70] sm:$0xff] %v482_v38  ;;  %v485_v43 = vmax.f32 %v441_v39, 0.0  ;;  %519 = vst [vmem:[%s1303_s12 + $0x78] sm:$0xff] %v483_v40 }
 0x13f   : > { %527 = vst [vmem:[%s1303_s12 + $0xb8] sm:$0xff] %v491_v41  ;;  %520 = vst [vmem:[%s1303_s12 + $0x80] sm:$0xff] %v484_v42  ;;  %v358_v44 = vpop.f32.mrb[12].mxu0 }
 0x140   : > { %521 = vst [vmem:[%s1303_s12 + $0x88] sm:$0xff] %v485_v43  ;;  %v848_v45 = vpop.f32.mrb[12].mxu1  ;;  %v359_v46 = vadd.f32 %v358_v44, %v1291_v30  ;;  %v360_v47 = vpop.f32.mrb[13].mxu0 }
 0x141   : > { %v462_v48 = vadd.f32 %v848_v45, %v1307_v55  ;;  %v453_v49 = vpop.f32.mrb[13].mxu1  ;;  %v361_v50 = vadd.f32 %v360_v47, %v1293_v31  ;;  %v362_v51 = vpop.f32.mrb[14].mxu0 }
 0x142   : > { %v454_v52 = vadd.f32 %v453_v49, %v1307_v55  ;;  %v849_v53 = vpop.f32.mrb[14].mxu1  ;;  %v486_v54 = vmax.f32 %v359_v46, 0.0  ;;  %v363_v56 = vadd.f32 %v362_v51, %v1291_v30  ;;  %v364_v57 = vpop.f32.mrb[15].mxu0 }
 0x143   : > { %v500_v58 = vmax.f32 %v462_v48, 0.0  ;;  %v465_v59 = vadd.f32 %v849_v53, %v1307_v55  ;;  %v456_v60 = vpop.f32.mrb[15].mxu1  ;;  %v487_v61 = vmax.f32 %v361_v50, 0.0  ;;  %v365_v62 = vadd.f32 %v364_v57, %v1293_v31 }
 0x144   : > { %v494_v63 = vmax.f32 %v454_v52, 0.0  ;;  %v457_v0 = vadd.f32 %v456_v60, %v1307_v55  ;;  %522 = vst [vmem:[%s1303_s12 + $0x90] sm:$0xff] %v486_v54  ;;  %v489_v1 = vmax.f32 %v363_v56, 0.0 }
 0x145   : > { %536 = vst [vmem:[%s1303_s12 + $0x100] sm:$0xff] %v500_v58  ;;  %v503_v2 = vmax.f32 %v465_v59, 0.0  ;;  %523 = vst [vmem:[%s1303_s12 + $0x98] sm:$0xff] %v487_v61  ;;  %v490_v3 = vmax.f32 %v365_v62, 0.0 }
 0x146   : > { %530 = vst [vmem:[%s1303_s12 + $0xd0] sm:$0xff] %v494_v63  ;;  %v497_v4 = vmax.f32 %v457_v0, 0.0  ;;  %525 = vst [vmem:[%s1303_s12 + $0xa8] sm:$0xff] %v489_v1 }
 0x147   : > { %539 = vst [vmem:[%s1303_s12 + $0x118] sm:$0xff] %v503_v2  ;;  %526 = vst [vmem:[%s1303_s12 + $0xb0] sm:$0xff] %v490_v3  ;;  %v368_v5 = vpop.f32.mrb[16].mxu0 }
 0x148   : > { %533 = vst [vmem:[%s1303_s12 + $0xe8] sm:$0xff] %v497_v4  ;;  %v369_v6 = vadd.f32 %v368_v5, %v1291_v30  ;;  %v370_v55 = vpop.f32.mrb[17].mxu0 }
 0x149   : > { %v371_v7 = vadd.f32 %v370_v55, %v1293_v31  ;;  %v372_v8 = vpop.f32.mrb[18].mxu0  ;;  %546 = sbr.rel (!%p1548_p12) target bundleno = 407 (0x197), region = 44 }
 0x14a   : > { %v492_v9 = vmax.f32 %v369_v6, 0.0  ;;  %v373_v10 = vadd.f32 %v372_v8, %v1291_v30  ;;  %v374_v11 = vpop.f32.mrb[19].mxu0 }
 0x14b   : > { %v493_v12 = vmax.f32 %v371_v7, 0.0  ;;  %v375_v13 = vadd.f32 %v374_v11, %v1293_v31 }
 0x14c   : > { %528 = vst [vmem:[%s1303_s12 + $0xc0] sm:$0xff] %v492_v9  ;;  %v495_v14 = vmax.f32 %v373_v10, 0.0 }
 0x14d   : > { %529 = vst [vmem:[%s1303_s12 + $0xc8] sm:$0xff] %v493_v12  ;;  %v496_v15 = vmax.f32 %v375_v13, 0.0 }
 0x14e   : > { %531 = vst [vmem:[%s1303_s12 + $0xd8] sm:$0xff] %v495_v14 }
 0x14f   : > { %532 = vst [vmem:[%s1303_s12 + $0xe0] sm:$0xff] %v496_v15 }
 0x150   : > { %s1559_s8 = smov (!%p549_p13, %s548_s8), 12 }
 0x151   : > { %s819_s17 = smul.u32 384, %s1559_s8 }
 0x153   : > { %p822_p0 = scmp.eq.s32.totalorder %s819_s17, 0 }
 0x154   : > { %970 = sdivrem.u32 (!%p822_p0), %s1559_s8, 12 }
 0x155   : > { %559 = sbr.rel (%p822_p0) target bundleno = 407 (0x197), region = 48 }
 0x15d   : > { %s1384_s20 = spop.drf %970 }
 0x15e   : > { %p823_p1 = scmp.le.s32.totalorder %s1384_s20, 0 }
 0x15f   : > { %s1549_s15 = smov (!%p823_p1), %s1378_s14  ;;  %s1550_s18 = smov (!%p823_p1), %s1303_s12 }
 0x160   : > { %731 = sbr.rel (%p823_p1) target bundleno = 378 (0x17a), region = 97  ;;  %s1393_s22 = smov (!%p823_p1), 0  }
 0x161   : > { %s1395_s24 = smov (!%p823_p1), 0  }
 0x167 LB: >> { %v573_v30 = vld [vmem:[%s1100_s18] sm:$0xff]  ;;  %v575_v31 = vld [vmem:[%s1100_s18 + $0x18] sm:$0xff]  ;;  %v577_v16 = vld [vmem:[%s1100_s18 + $0x30] sm:$0xff]  ;;  %s645_s23 = sadd.s32 1, %s1104_s22  ;;  %s567_s24 = sadd.s32 1, %s1108_s24   ;;  %s1108_s24 = sphi %s1395_s24, %s567_s24   ;;  %s1104_s22 = sphi %s1393_s22, %s1553_s22   ;;  %s1100_s18 = sphi %s1550_s18, %s1552_s18   ;;  %s1096_s15 = sphi %s1549_s15, %s1551_s15  }
 0x168   : >> { %574 = vst [vmem:[%s1096_s15] sm:$0xff] %v573_v30  ;;  %576 = vst [vmem:[%s1096_s15 + $0x18] sm:$0xff] %v575_v31  ;;  %v579_v17 = vld [vmem:[%s1100_s18 + $0x48] sm:$0xff]  ;;  %v581_v18 = vld [vmem:[%s1100_s18 + $0x60] sm:$0xff]  ;;  %p646_p2 = scmp.ge.s32.totalorder %s645_s23, %s1384_s20  ;;  %p566_p3 = scmp.ge.s32.totalorder %s567_s24, %s1384_s20 }
 0x169   : >> { %578 = vst [vmem:[%s1096_s15 + $0x30] sm:$0xff] %v577_v16  ;;  %v583_v19 = vld [vmem:[%s1100_s18 + $0x78] sm:$0xff]  ;;  %580 = vst [vmem:[%s1096_s15 + $0x48] sm:$0xff] %v579_v17  ;;  %v585_v20 = vld [vmem:[%s1100_s18 + $0x90] sm:$0xff] }
 0x16a   : >> { %582 = vst [vmem:[%s1096_s15 + $0x60] sm:$0xff] %v581_v18  ;;  %584 = vst [vmem:[%s1096_s15 + $0x78] sm:$0xff] %v583_v19  ;;  %v587_v21 = vld [vmem:[%s1100_s18 + $0xa8] sm:$0xff]  ;;  %v589_v22 = vld [vmem:[%s1100_s18 + $0xc0] sm:$0xff]  ;;  %s1561_s23 = smov (%p646_p2, %s645_s23), 0 }
 0x16b   : >> { %586 = vst [vmem:[%s1096_s15 + $0x90] sm:$0xff] %v585_v20  ;;  %588 = vst [vmem:[%s1096_s15 + $0xa8] sm:$0xff] %v587_v21  ;;  %v591_v23 = vld [vmem:[%s1100_s18 + $0xd8] sm:$0xff]  ;;  %v593_v24 = vld [vmem:[%s1100_s18 + $0xf0] sm:$0xff]  ;;  %s648_s27 = smul.u32 288, %s1561_s23  ;;  %s1553_s22 = smov %s1561_s23 }
 0x16c   : >> { %590 = vst [vmem:[%s1096_s15 + $0xc0] sm:$0xff] %v589_v22  ;;  %v595_v25 = vld [vmem:[%s1100_s18 + $0x108] sm:$0xff]  ;;  %592 = vst [vmem:[%s1096_s15 + $0xd8] sm:$0xff] %v591_v23  ;;  %v599_v27 = vld [vmem:[%s1100_s18 + $0x20] sm:$0xff] }
 0x16d   : >> { %594 = vst [vmem:[%s1096_s15 + $0xf0] sm:$0xff] %v593_v24  ;;  %596 = vst [vmem:[%s1096_s15 + $0x108] sm:$0xff] %v595_v25  ;;  %v597_v26 = vld [vmem:[%s1100_s18 + $0x8] sm:$0xff]  ;;  %v601_v28 = vld [vmem:[%s1100_s18 + $0x38] sm:$0xff]  ;;  %s1457_s28 = scalar_lea.vmem %s1303_s12, %s648_s27 [#allocation6]   ;;  %s1460_s29 = scalar_lea.vmem %s1378_s14, %s648_s27  }
 0x16e   : >> { %598 = vst [vmem:[%s1096_s15 + $0x8] sm:$0xff] %v597_v26  ;;  %600 = vst [vmem:[%s1096_s15 + $0x20] sm:$0xff] %v599_v27  ;;  %v603_v29 = vld [vmem:[%s1100_s18 + $0x50] sm:$0xff]  ;;  %v605_v32 = vld [vmem:[%s1100_s18 + $0x68] sm:$0xff] }
 0x16f   : >> { %602 = vst [vmem:[%s1096_s15 + $0x38] sm:$0xff] %v601_v28  ;;  %v607_v33 = vld [vmem:[%s1100_s18 + $0x80] sm:$0xff]  ;;  %604 = vst [vmem:[%s1096_s15 + $0x50] sm:$0xff] %v603_v29  ;;  %v609_v34 = vld [vmem:[%s1100_s18 + $0x98] sm:$0xff] }
 0x170   : >> { %606 = vst [vmem:[%s1096_s15 + $0x68] sm:$0xff] %v605_v32  ;;  %608 = vst [vmem:[%s1096_s15 + $0x80] sm:$0xff] %v607_v33  ;;  %v611_v35 = vld [vmem:[%s1100_s18 + $0xb0] sm:$0xff]  ;;  %v613_v36 = vld [vmem:[%s1100_s18 + $0xc8] sm:$0xff] }
 0x171   : >> { %610 = vst [vmem:[%s1096_s15 + $0x98] sm:$0xff] %v609_v34  ;;  %612 = vst [vmem:[%s1096_s15 + $0xb0] sm:$0xff] %v611_v35  ;;  %v615_v37 = vld [vmem:[%s1100_s18 + $0xe0] sm:$0xff]  ;;  %v617_v38 = vld [vmem:[%s1100_s18 + $0xf8] sm:$0xff] }
 0x172   : >> { %614 = vst [vmem:[%s1096_s15 + $0xc8] sm:$0xff] %v613_v36  ;;  %v619_v39 = vld [vmem:[%s1100_s18 + $0x110] sm:$0xff]  ;;  %616 = vst [vmem:[%s1096_s15 + $0xe0] sm:$0xff] %v615_v37  ;;  %v623_v41 = vld [vmem:[%s1100_s18 + $0x28] sm:$0xff] }
 0x173   : >> { %618 = vst [vmem:[%s1096_s15 + $0xf8] sm:$0xff] %v617_v38  ;;  %620 = vst [vmem:[%s1096_s15 + $0x110] sm:$0xff] %v619_v39  ;;  %v621_v40 = vld [vmem:[%s1100_s18 + $0x10] sm:$0xff]  ;;  %v625_v42 = vld [vmem:[%s1100_s18 + $0x40] sm:$0xff]  ;;  %569 = sbr.rel (!%p566_p3) target bundleno = 359 (0x167), region = 103 }
 0x174   : >> { %622 = vst [vmem:[%s1096_s15 + $0x10] sm:$0xff] %v621_v40  ;;  %624 = vst [vmem:[%s1096_s15 + $0x28] sm:$0xff] %v623_v41  ;;  %v627_v43 = vld [vmem:[%s1100_s18 + $0x58] sm:$0xff]  ;;  %v629_v44 = vld [vmem:[%s1100_s18 + $0x70] sm:$0xff] }
 0x175   : >> { %626 = vst [vmem:[%s1096_s15 + $0x40] sm:$0xff] %v625_v42  ;;  %v631_v45 = vld [vmem:[%s1100_s18 + $0x88] sm:$0xff]  ;;  %628 = vst [vmem:[%s1096_s15 + $0x58] sm:$0xff] %v627_v43  ;;  %v633_v46 = vld [vmem:[%s1100_s18 + $0xa0] sm:$0xff] }
 0x176   : >> { %630 = vst [vmem:[%s1096_s15 + $0x70] sm:$0xff] %v629_v44  ;;  %632 = vst [vmem:[%s1096_s15 + $0x88] sm:$0xff] %v631_v45  ;;  %v635_v47 = vld [vmem:[%s1100_s18 + $0xb8] sm:$0xff]  ;;  %v637_v48 = vld [vmem:[%s1100_s18 + $0xd0] sm:$0xff] }
 0x177   : >> { %634 = vst [vmem:[%s1096_s15 + $0xa0] sm:$0xff] %v633_v46  ;;  %636 = vst [vmem:[%s1096_s15 + $0xb8] sm:$0xff] %v635_v47  ;;  %v639_v49 = vld [vmem:[%s1100_s18 + $0xe8] sm:$0xff]  ;;  %v641_v50 = vld [vmem:[%s1100_s18 + $0x100] sm:$0xff] }
 0x178   : >> { %638 = vst [vmem:[%s1096_s15 + $0xd0] sm:$0xff] %v637_v48  ;;  %v643_v51 = vld [vmem:[%s1100_s18 + $0x118] sm:$0xff]  ;;  %640 = vst [vmem:[%s1096_s15 + $0xe8] sm:$0xff] %v639_v49  ;;  %s1552_s18 = smov %s1457_s28 }
 0x179   : >> { %642 = vst [vmem:[%s1096_s15 + $0x100] sm:$0xff] %v641_v50  ;;  %644 = vst [vmem:[%s1096_s15 + $0x118] sm:$0xff] %v643_v51  ;;  %s1551_s15 = smov %s1460_s29 }
 0x17a PF: > { %972 = sdivrem.u32 %s1559_s8, 12 }
 0x17b   : > { %s824_s26 = smul.u32 288, %s1384_s20 }
 0x17d   : > { %s1505_s21 = scalar_lea.vmem %s1303_s12, %s824_s26 [#allocation6]   ;;  %s1508_s25 = scalar_lea.vmem %s1378_s14, %s824_s26  }
 0x183   : > { %s1510_s30 = spop.drf %972 }
 0x184   : > { %p826_p5 = scmp.le.s32.totalorder %s1510_s30, 0 }
 0x185   : > { %s1554_s4 = smov (!%p826_p5), %s1508_s25  ;;  %s1114_s5 = smov (!%p826_p5), %s1505_s21  }
 0x186   : > { %745 = sbr.rel (%p826_p5) target bundleno = 407 (0x197), region = 108  ;;  %s1118_s6 = smov (!%p826_p5), 0  }
 0x187   : > { %s1122_s7 = smov (!%p826_p5), 0  }
 0x18d LB: >> { %v668_v52 = vld [vmem:[%s1116_s5] sm:$0xff]  ;;  %v670_v53 = vld [vmem:[%s1116_s5 + $0x8] sm:$0xff]  ;;  %v672_v54 = vld [vmem:[%s1116_s5 + $0x10] sm:$0xff]  ;;  %s674_s12 = sadd.s32 1, %s1120_s6  ;;  %s662_s7 = sadd.s32 1, %s1124_s7   ;;  %s1124_s7 = sphi %s1122_s7, %s662_s7   ;;  %s1120_s6 = sphi %s1118_s6, %s1119_s6   ;;  %s1116_s5 = sphi %s1114_s5, %s679_s5   ;;  %s1112_s4 = sphi %s1554_s4, %s680_s4  }
 0x18e   : >> { %669 = vst [vmem:[%s1112_s4] sm:$0xff] %v668_v52  ;;  %671 = vst [vmem:[%s1112_s4 + $0x8] sm:$0xff] %v670_v53  ;;  %p675_p8 = scmp.ge.s32.totalorder %s674_s12, %s1510_s30  ;;  %p661_p10 = scmp.ge.s32.totalorder %s662_s7, %s1510_s30 }
 0x18f   : >> { %673 = vst [vmem:[%s1112_s4 + $0x10] sm:$0xff] %v672_v54 }
 0x190   : >> { %s1563_s12 = smov (%p675_p8, %s674_s12), 0  ;;  %664 = sbr.rel (!%p661_p10) target bundleno = 397 (0x18d), region = 114 }
 0x191   : >> { %s677_s8 = smul.u32 24, %s1563_s12  ;;  %s1119_s6 = smov %s1563_s12  }
 0x193   : >> { %s679_s5 = scalar_lea.vmem %s1505_s21, %s677_s8 [#allocation6]   ;;  %s680_s4 = scalar_lea.vmem %s1508_s25, %s677_s8  }
 0x197 PF: > { %p12_p11 = scmp.ge.s32.totalorder %s1164_s16, 4   ;;  %s1555_s12 = smov %s1088_s13 }
 0x198   : > { %s1556_s13 = smov %s1172_s19  ;;  %s1557_s14 = smov %s1164_s16 }
 0x199   :  { %14 = sbr.rel (!%p12_p11) target bundleno = 3 (0x3), region = 125 }
 0x1a0   :  { %696 = vsyncpa [#allocation3], 1 }
 0x1a1   :  { %698 = vsyncpa [#allocation3 + $0x1], 1 }
 0x1a2   :  { %699 = vsyncpa [#allocation5], 1 }

// kernel: inception_d_forward.9
= control target key start
LH: loop header
LB: loop body
LE: loop exit
PB: predicated region body
PF: predicated region fallthrough
CT: control target
= control target key end

     0   :  { %s3414_s12 = smov 0   ;;  %s3416_s13 = smov 0   ;;  %s4210_s0 = inlined_call_operand.vmem [shape: bf16[162,1344], index: 0, kind: input, shape index: {}]   ;;  %s4211_s1 = inlined_call_operand.vmem [shape: bf16[1344,256], index: 1, kind: input, shape index: {}]   ;;  %s4212_s2 = inlined_call_operand.vmem [shape: f32[1,256], index: 2, kind: input, shape index: {}]   ;;  %s4213_s3 = inlined_call_operand.vmem [shape: f32[162,256], index: 3, kind: output, shape index: {}]  }
   0x1   :  { %s3418_s14 = smov 0  }
   0x2 LB: > { %s3427_s15 = sadd.s32 4294967295, %s3359_s14   ;;  %s3429_s16 = sadd.s32 1, %s3359_s14   ;;  %s3359_s14 = sphi %s3418_s14, %s4221_s14   ;;  %s3355_s13 = sphi %s3416_s13, %s4220_s13   ;;  %s3351_s12 = sphi %s3414_s12, %s4219_s12  }
   0x3   : > { %s85_s17 = ssub.s32 %s3359_s14, %s3429_s16  ;;  %s88_s18 = sadd.s32 1, %s3355_s13 }
   0x4   : > { %p86_p0 = scmp.eq.s32.totalorder %s85_s17, 0  ;;  %p98_p1 = scmp.ne.s32.totalorder %s3355_s13, %s3351_s12 }
   0x5   : > { %p99_p2 = scmp.eq.s32.totalorder %s3427_s15, 1  ;;  %p2457_p3 = scmp.ge.s32.totalorder %s3359_s14, 1 }
   0x6   : > { %s3437_s19 = scalar_select %p86_p0, %s3355_s13, %s88_s18  }
   0x7   : > { %p3439_p4 = por %p99_p2, %p98_p1  ;;  %p149_p5 = scmp.lt.s32.totalorder %s3359_s14, 3 }
   0x9   : > { %p150_p6 = pnand %p2457_p3, %p149_p5 }
   0xa   : > { %v2953_v0 = vld [vmem:[%s4211_s1 + $0x4] ss:$8 sps:$4 sm:$0xff] (!%p150_p6)   ;;  %v2957_v2 = vld [vmem:[%s4211_s1] ss:$8 sps:$4 sm:$0xff] (!%p150_p6)   ;;  %v2959_v4 = vld [vmem:[%s4211_s1 + $0x14] ss:$8 sps:$4 sm:$0xff] (!%p150_p6)  }
   0xb   : > { %153 = sbr.rel (%p150_p6) target bundleno = 529 (0x211), region = 32  ;;  %v2955_v1 = vld [vmem:[%s4211_s1 + $0x304] ss:$8 sps:$4 sm:$0xff] (!%p150_p6)   ;;  %1643 = vmatprep.subr.bf16.mxu1 (!%p150_p6), %v2953_v0  ;;  %v2958_v3 = vld [vmem:[%s4211_s1 + $0x300] ss:$8 sps:$4 sm:$0xff] (!%p150_p6)   ;;  %vm1624_vm0 = vcmask (!%p150_p6), 523264  }
   0xc   : > { %1922 = vmatprep.subr.bf16.mxu0 (!%p150_p6), %v2955_v1  ;;  %1644 = vmatpush1.bf16.msra.mxu1 (!%p150_p6), %v2957_v2  ;;  %v2961_v5 = vld [vmem:[%s4211_s1 + $0x314] ss:$8 sps:$4 sm:$0xff] (!%p150_p6)   ;;  %v2963_v6 = vld [vmem:[%s4211_s1 + $0x10] ss:$8 sps:$4 sm:$0xff] (!%p150_p6)   ;;  %v2965_v8 = vld [vmem:[%s4211_s1 + $0x24] ss:$8 sps:$4 sm:$0xff] (!%p150_p6)  }
   0xd   : > { %1923 = vmatpush1.bf16.msra.mxu0 (!%p150_p6), %v2958_v3  ;;  %1645 = vmatprep.subr.bf16.mxu1 (!%p150_p6), %v2959_v4  ;;  %v2964_v7 = vld [vmem:[%s4211_s1 + $0x310] ss:$8 sps:$4 sm:$0xff] (!%p150_p6)   ;;  %v2967_v9 = vld [vmem:[%s4211_s1 + $0x324] ss:$8 sps:$4 sm:$0xff] (!%p150_p6)   ;;  %v2969_v10 = vld [vmem:[%s4211_s1 + $0x20] ss:$8 sps:$4 sm:$0xff] (!%p150_p6)  }
   0xe   : > { %1924 = vmatprep.subr.bf16.mxu0 (!%p150_p6), %v2961_v5  ;;  %v2970_v11 = vld [vmem:[%s4211_s1 + $0x320] ss:$8 sps:$4 sm:$0xff] (!%p150_p6)   ;;  %v2971_v12 = vld [vmem:[%s4211_s1 + $0x34] ss:$8 sps:$4 sm:$0xff] (!%p150_p6)   ;;  %v2975_v14 = vld [vmem:[%s4211_s1 + $0x30] ss:$8 sps:$4 sm:$0xff] (!%p150_p6)  }
   0xf   : > { %v2973_v13 = vld [vmem:[%s4211_s1 + $0x334] ss:$8 sps:$4 sm:$0xff] (!%p150_p6)   ;;  %v2976_v15 = vld [vmem:[%s4211_s1 + $0x330] ss:$8 sps:$4 sm:$0xff] (!%p150_p6)   ;;  %v2977_v16 = vld [vmem:[%s4211_s1 + $0x44] ss:$8 sps:$4 sm:$0xff] (!%p150_p6)  }
  0x10   : > { %1646 = vmatpush1.bf16.msra.mxu1 (!%p150_p6), %v2963_v6  ;;  %v2979_v17 = vld [vmem:[%s4211_s1 + $0x344] ss:$8 sps:$4 sm:$0xff] (!%p150_p6)   ;;  %v2981_v18 = vld [vmem:[%s4211_s1 + $0x40] ss:$8 sps:$4 sm:$0xff] (!%p150_p6)   ;;  %v2983_v20 = vld [vmem:[%s4211_s1 + $0x54] ss:$8 sps:$4 sm:$0xff] (!%p150_p6)  }
  0x11   : > { %1925 = vmatpush1.bf16.msra.mxu0 (!%p150_p6), %v2964_v7  ;;  %1647 = vmatprep.subr.bf16.mxu1 (!%p150_p6), %v2965_v8  ;;  %v2982_v19 = vld [vmem:[%s4211_s1 + $0x340] ss:$8 sps:$4 sm:$0xff] (!%p150_p6)   ;;  %v2985_v21 = vld [vmem:[%s4211_s1 + $0x354] ss:$8 sps:$4 sm:$0xff] (!%p150_p6)   ;;  %v2987_v22 = vld [vmem:[%s4211_s1 + $0x50] ss:$8 sps:$4 sm:$0xff] (!%p150_p6)  }
  0x12   : > { %1926 = vmatprep.subr.bf16.mxu0 %v2967_v9  ;;  %v2988_v23 = vld [vmem:[%s4211_s1 + $0x350] ss:$8 sps:$4 sm:$0xff]   ;;  %v2989_v24 = vld [vmem:[%s4211_s1 + $0x64] ss:$8 sps:$4 sm:$0xff]   ;;  %v2993_v26 = vld [vmem:[%s4211_s1 + $0x60] ss:$8 sps:$4 sm:$0xff]  }
  0x13   : > { %v2991_v25 = vld [vmem:[%s4211_s1 + $0x364] ss:$8 sps:$4 sm:$0xff]   ;;  %v2994_v27 = vld [vmem:[%s4211_s1 + $0x360] ss:$8 sps:$4 sm:$0xff]   ;;  %v2995_v28 = vld [vmem:[%s4211_s1 + $0x74] ss:$8 sps:$4 sm:$0xff]  }
  0x14   : > { %1648 = vmatpush1.bf16.msra.mxu1 %v2969_v10  ;;  %s3531_s10 = smul.u32 12, %s3427_s15  ;;  %v2997_v29 = vld [vmem:[%s4211_s1 + $0x374] ss:$8 sps:$4 sm:$0xff]   ;;  %v2999_v30 = vld [vmem:[%s4211_s1 + $0x70] ss:$8 sps:$4 sm:$0xff]   ;;  %s175_s8 = sand.u32 1, %s3351_s12  }
  0x15   : > { %1927 = vmatpush1.bf16.msra.mxu0 %v2970_v11  ;;  %1649 = vmatprep.subr.bf16.mxu1 %v2971_v12  ;;  %v3000_v31 = vld [vmem:[%s4211_s1 + $0x370] ss:$8 sps:$4 sm:$0xff]   ;;  %v3001_v32 = vld [vmem:[%s4211_s1 + $0x84] ss:$8 sps:$4 sm:$0xff]   ;;  %v3005_v34 = vld [vmem:[%s4211_s1 + $0x80] ss:$8 sps:$4 sm:$0xff]  }
  0x16   : > { %1928 = vmatprep.subr.bf16.mxu0 %v2973_v13  ;;  %p184_p7 = scmp.lt.s32.totalorder %s3531_s10, 20  ;;  %v3003_v33 = vld [vmem:[%s4211_s1 + $0x384] ss:$8 sps:$4 sm:$0xff]   ;;  %v3006_v35 = vld [vmem:[%s4211_s1 + $0x380] ss:$8 sps:$4 sm:$0xff]   ;;  %s2257_s9 = ssub.s32 (%p3439_p4), 21, %s3531_s10 }
  0x17   : > { %v3007_v36 = vld [vmem:[%s4211_s1 + $0x94] ss:$8 sps:$4 sm:$0xff]   ;;  %v3011_v38 = vld [vmem:[%s4211_s1 + $0x90] ss:$8 sps:$4 sm:$0xff]   ;;  %v3013_v40 = vld [vmem:[%s4211_s1 + $0xa4] ss:$8 sps:$4 sm:$0xff]  }
  0x18   : > { %1650 = vmatpush1.bf16.msra.mxu1 %v2975_v14  ;;  %s185_s6 = scalar_select %p184_p7, %s3531_s10, 20  ;;  %v3009_v37 = vld [vmem:[%s4211_s1 + $0x394] ss:$8 sps:$4 sm:$0xff]   ;;  %v3012_v39 = vld [vmem:[%s4211_s1 + $0x390] ss:$8 sps:$4 sm:$0xff]  }
  0x19   : > { %1929 = vmatpush1.bf16.msra.mxu0 %v2976_v15  ;;  %1651 = vmatprep.subr.bf16.mxu1 %v2977_v16  ;;  %v3015_v41 = vld [vmem:[%s4211_s1 + $0x3a4] ss:$8 sps:$4 sm:$0xff]   ;;  %v3017_v42 = vld [vmem:[%s4211_s1 + $0xa0] ss:$8 sps:$4 sm:$0xff]   ;;  %v3019_v44 = vld [vmem:[%s4211_s1 + $0xb4] ss:$8 sps:$4 sm:$0xff]  }
  0x1a   : > { %1930 = vmatprep.subr.bf16.mxu0 %v2979_v17  ;;  %s2862_s22 = smul.u32 44, %s185_s6  ;;  %v3018_v43 = vld [vmem:[%s4211_s1 + $0x3a0] ss:$8 sps:$4 sm:$0xff]   ;;  %v3021_v45 = vld [vmem:[%s4211_s1 + $0x3b4] ss:$8 sps:$4 sm:$0xff]   ;;  %p2258_p8 = scmp.lt.s32.totalorder (%p3439_p4), %s2257_s9, 12 }
  0x1b   : > { %v3023_v46 = vld [vmem:[%s4211_s1 + $0xb0] ss:$8 sps:$4 sm:$0xff]   ;;  %v3025_v49 = vld [vmem:[%s4211_s1 + $0xc4] ss:$8 sps:$4 sm:$0xff]   ;;  %v3029_v52 = vld [vmem:[%s4211_s1 + $0xc0] ss:$8 sps:$4 sm:$0xff]  }
  0x1c   : > { %1652 = vmatpush1.bf16.msra.mxu1 %v2981_v18  ;;  %s3586_s6 = scalar_lea.vmem %s4210_s0, %s2862_s22  ;;  %v3024_v47 = vld [vmem:[%s4211_s1 + $0x3b0] ss:$8 sps:$4 sm:$0xff]   ;;  %v3027_v50 = vld [vmem:[%s4211_s1 + $0x3c4] ss:$8 sps:$4 sm:$0xff]   ;;  %v3030_v53 = vld [vmem:[%s4211_s1 + $0x3c0] ss:$8 sps:$4 sm:$0xff]  }
  0x1d   : > { %1931 = vmatpush1.bf16.msra.mxu0 %v2982_v19  ;;  %1653 = vmatprep.subr.bf16.mxu1 %v2983_v20  ;;  %v3051_v48 = vld [vmem:[%s3586_s6 + $0x4] ss:$44 sps:$4 sm:$0xff]   ;;  %v3057_v51 = vld [vmem:[%s3586_s6 + $0x1c] ss:$44 sps:$4 sm:$0xff]   ;;  %v3049_v4 = vld [vmem:[%s3586_s6] ss:$44 sps:$4 sm:$0xff]  }
  0x1e   : > { %1932 = vmatprep.subr.bf16.mxu0 %v2985_v21  ;;  %1675 = vmatprep.mubr.bf16.mxu1 %v3051_v48  ;;  %v3031_v54 = vld [vmem:[%s4211_s1 + $0xd4] ss:$8 sps:$4 sm:$0xff]   ;;  %v3035_v56 = vld [vmem:[%s4211_s1 + $0xd0] ss:$8 sps:$4 sm:$0xff]   ;;  %v3037_v58 = vld [vmem:[%s4211_s1 + $0xe4] ss:$8 sps:$4 sm:$0xff]  }
  0x1f   : > { %v3033_v55 = vld [vmem:[%s4211_s1 + $0x3d4] ss:$8 sps:$4 sm:$0xff]   ;;  %1954 = vmatprep.mubr.bf16.mxu0 %v3057_v51  ;;  %v3036_v57 = vld [vmem:[%s4211_s1 + $0x3d0] ss:$8 sps:$4 sm:$0xff]   ;;  %v3039_v59 = vld [vmem:[%s4211_s1 + $0x3e4] ss:$8 sps:$4 sm:$0xff]  }
  0x20   : > { %1654 = vmatpush1.bf16.msra.mxu1 %v2987_v22  ;;  %v3041_v60 = vld [vmem:[%s4211_s1 + $0xe0] ss:$8 sps:$4 sm:$0xff]   ;;  %v3043_v62 = vld [vmem:[%s4211_s1 + $0xf4] ss:$8 sps:$4 sm:$0xff]   ;;  %v3047_v0 = vld [vmem:[%s4211_s1 + $0xf0] ss:$8 sps:$4 sm:$0xff]  }
  0x21   : > { %1933 = vmatpush1.bf16.msra.mxu0 %v2988_v23  ;;  %1655 = vmatprep.subr.bf16.mxu1 %v2989_v24  ;;  %v3042_v61 = vld [vmem:[%s4211_s1 + $0x3e0] ss:$8 sps:$4 sm:$0xff]   ;;  %v3045_v63 = vld [vmem:[%s4211_s1 + $0x3f4] ss:$8 sps:$4 sm:$0xff]   ;;  %v3048_v1 = vld [vmem:[%s4211_s1 + $0x3f0] ss:$8 sps:$4 sm:$0xff]  }
  0x22   : > { %1934 = vmatprep.subr.bf16.mxu0 %v2991_v25  ;;  %v3054_v2 = vld [vmem:[%s4211_s1 + $0x104] ss:$8 sps:$4 sm:$0xff]   ;;  %v3052_v6 = vld [vmem:[%s4211_s1 + $0x100] ss:$8 sps:$4 sm:$0xff]   ;;  %v3063_v8 = vld [vmem:[%s4211_s1 + $0x114] ss:$8 sps:$4 sm:$0xff]  }
  0x23   : > { %v3060_v3 = vld [vmem:[%s4211_s1 + $0x404] ss:$8 sps:$4 sm:$0xff]   ;;  %v3058_v7 = vld [vmem:[%s4211_s1 + $0x400] ss:$8 sps:$4 sm:$0xff]   ;;  %v3066_v9 = vld [vmem:[%s4211_s1 + $0x414] ss:$8 sps:$4 sm:$0xff]  }
  0x24   : > { %1656 = vmatpush1.bf16.msra.mxu1 %v2993_v26  ;;  %v3055_v5 = vld [vmem:[%s3586_s6 + $0x18] ss:$44 sps:$4 sm:$0xff]   ;;  %v3091_v10 = vld [vmem:[%s3586_s6 + $0x74] ss:$44 sps:$4 sm:$0xff]   ;;  %v3093_v11 = vld [vmem:[%s3586_s6 + $0x5c] ss:$44 sps:$4 sm:$0xff]  }
  0x25   : > { %1935 = vmatpush1.bf16.msra.mxu0 %v2994_v27  ;;  %1657 = vmatprep.subr.bf16.mxu1 %v2995_v28  ;;  %v3061_v12 = vld [vmem:[%s4211_s1 + $0x110] ss:$8 sps:$4 sm:$0xff]   ;;  %v3069_v14 = vld [vmem:[%s4211_s1 + $0x124] ss:$8 sps:$4 sm:$0xff]   ;;  %v3067_v18 = vld [vmem:[%s4211_s1 + $0x120] ss:$8 sps:$4 sm:$0xff]  }
  0x26   : > { %1936 = vmatprep.subr.bf16.mxu0 %v2997_v29  ;;  %v3064_v13 = vld [vmem:[%s4211_s1 + $0x410] ss:$8 sps:$4 sm:$0xff]   ;;  %v3072_v15 = vld [vmem:[%s4211_s1 + $0x424] ss:$8 sps:$4 sm:$0xff]   ;;  %v3070_v19 = vld [vmem:[%s4211_s1 + $0x420] ss:$8 sps:$4 sm:$0xff]  }
  0x27   : > { %v3098_v16 = vld [vmem:[%s3586_s6 + $0x70] ss:$44 sps:$4 sm:$0xff]   ;;  %v3102_v17 = vld [vmem:[%s3586_s6 + $0x58] ss:$44 sps:$4 sm:$0xff]   ;;  %v3111_v23 = vld [vmem:[%s3586_s6 + $0xb4] ss:$44 sps:$4 sm:$0xff]  }
  0x28   : > { %1658 = vmatpush1.bf16.msra.mxu1 %v2999_v30  ;;  %v3075_v20 = vld [vmem:[%s4211_s1 + $0x134] ss:$8 sps:$4 sm:$0xff]   ;;  %v3109_v22 = vld [vmem:[%s3586_s6 + $0xcc] ss:$44 sps:$4 sm:$0xff]   ;;  %v3079_v30 = vld [vmem:[%s4211_s1 + $0x140] ss:$8 sps:$4 sm:$0xff]  }
  0x29   : > { %1937 = vmatpush1.bf16.msra.mxu0 %v3000_v31  ;;  %1659 = vmatprep.subr.bf16.mxu1 %v3001_v32  ;;  %v3078_v21 = vld [vmem:[%s4211_s1 + $0x434] ss:$8 sps:$4 sm:$0xff]   ;;  %v3073_v24 = vld [vmem:[%s4211_s1 + $0x130] ss:$8 sps:$4 sm:$0xff]   ;;  %v3081_v26 = vld [vmem:[%s4211_s1 + $0x144] ss:$8 sps:$4 sm:$0xff]  }
  0x2a   : > { %1938 = vmatprep.subr.bf16.mxu0 %v3003_v33  ;;  %v3076_v25 = vld [vmem:[%s4211_s1 + $0x430] ss:$8 sps:$4 sm:$0xff]   ;;  %v3084_v27 = vld [vmem:[%s4211_s1 + $0x444] ss:$8 sps:$4 sm:$0xff]   ;;  %v3116_v28 = vld [vmem:[%s3586_s6 + $0xc8] ss:$44 sps:$4 sm:$0xff]  }
  0x2b   : > { %v3120_v29 = vld [vmem:[%s3586_s6 + $0xb0] ss:$44 sps:$4 sm:$0xff]   ;;  %v3082_v31 = vld [vmem:[%s4211_s1 + $0x440] ss:$8 sps:$4 sm:$0xff]   ;;  %v3119_v51 = vld [vmem:[%s4211_s1 + $0x484] ss:$8 sps:$4 sm:$0xff]  }
  0x2c   : > { %1660 = vmatpush1.bf16.msra.mxu1 %v3005_v34  ;;  %v3087_v32 = vld [vmem:[%s4211_s1 + $0x154] ss:$8 sps:$4 sm:$0xff]   ;;  %v3127_v34 = vld [vmem:[%s3586_s6 + $0x124] ss:$44 sps:$4 sm:$0xff]   ;;  %s2716_s11 = smul.u32 (%p3439_p4), 192, %s3427_s15 }
  0x2d   : > { %1939 = vmatpush1.bf16.msra.mxu0 %v3006_v35  ;;  %1661 = vmatprep.subr.bf16.mxu1 %v3007_v36  ;;  %v3090_v33 = vld [vmem:[%s4211_s1 + $0x454] ss:$8 sps:$4 sm:$0xff]   ;;  %v3129_v35 = vld [vmem:[%s3586_s6 + $0x10c] ss:$44 sps:$4 sm:$0xff]  }
  0x2e   : > { %1940 = vmatprep.subr.bf16.mxu0 %v3009_v37  ;;  %v3085_v36 = vld [vmem:[%s4211_s1 + $0x150] ss:$8 sps:$4 sm:$0xff]   ;;  %s4094_s18 = scalar_lea.vmem (%p3439_p4), %s4213_s3, %s2716_s11  }
  0x2f   : > { %v3088_v37 = vld [vmem:[%s4211_s1 + $0x450] ss:$8 sps:$4 sm:$0xff]  }
  0x30   : > { %1662 = vmatpush1.bf16.msra.mxu1 %v3011_v38  ;;  %v3097_v38 = vld [vmem:[%s4211_s1 + $0x164] ss:$8 sps:$4 sm:$0xff]   ;;  %v3103_v48 = vld [vmem:[%s4211_s1 + $0x170] ss:$8 sps:$4 sm:$0xff]  }
  0x31   : > { %1941 = vmatpush1.bf16.msra.mxu0 %v3012_v39  ;;  %1663 = vmatprep.subr.bf16.mxu1 %v3013_v40  ;;  %v3101_v39 = vld [vmem:[%s4211_s1 + $0x464] ss:$8 sps:$4 sm:$0xff]  }
  0x32   : > { %1942 = vmatprep.subr.bf16.mxu0 %v3015_v41  ;;  %v3134_v40 = vld [vmem:[%s3586_s6 + $0x120] ss:$44 sps:$4 sm:$0xff]   ;;  %v3138_v41 = vld [vmem:[%s3586_s6 + $0x108] ss:$44 sps:$4 sm:$0xff]  }
  0x34   : > { %1664 = vmatpush1.bf16.msra.mxu1 %v3017_v42  ;;  %v3095_v42 = vld [vmem:[%s4211_s1 + $0x160] ss:$8 sps:$4 sm:$0xff]  }
  0x35   : > { %1943 = vmatpush1.bf16.msra.mxu0 %v3018_v43  ;;  %1665 = vmatprep.subr.bf16.mxu1 %v3019_v44  ;;  %v3099_v43 = vld [vmem:[%s4211_s1 + $0x460] ss:$8 sps:$4 sm:$0xff]   ;;  %v3105_v44 = vld [vmem:[%s4211_s1 + $0x174] ss:$8 sps:$4 sm:$0xff]  }
  0x36   : > { %1944 = vmatprep.subr.bf16.mxu0 %v3021_v45  ;;  %v3108_v45 = vld [vmem:[%s4211_s1 + $0x474] ss:$8 sps:$4 sm:$0xff]  }
  0x38   : > { %1666 = vmatpush1.bf16.msra.mxu1 %v3023_v46  ;;  %v3145_v46 = vld [vmem:[%s3586_s6 + $0x17c] ss:$44 sps:$4 sm:$0xff]  }
  0x39   : > { %1945 = vmatpush1.bf16.msra.mxu0 %v3024_v47  ;;  %1667 = vmatprep.subr.bf16.mxu1 %v3025_v49  ;;  %v3147_v47 = vld [vmem:[%s3586_s6 + $0x164] ss:$44 sps:$4 sm:$0xff]  }
  0x3a   : > { %1946 = vmatprep.subr.bf16.mxu0 %v3027_v50  ;;  %v3106_v49 = vld [vmem:[%s4211_s1 + $0x470] ss:$8 sps:$4 sm:$0xff]   ;;  %v3115_v50 = vld [vmem:[%s4211_s1 + $0x184] ss:$8 sps:$4 sm:$0xff]  }
  0x3c   : > { %1668 = vmatpush1.bf16.msra.mxu1 %v3029_v52  ;;  %v3152_v52 = vld [vmem:[%s3586_s6 + $0x178] ss:$44 sps:$4 sm:$0xff]  }
  0x3d   : > { %1947 = vmatpush1.bf16.msra.mxu0 %v3030_v53  ;;  %1669 = vmatprep.subr.bf16.mxu1 %v3031_v54  ;;  %v3156_v53 = vld [vmem:[%s3586_s6 + $0x160] ss:$44 sps:$4 sm:$0xff]  }
  0x3e   : > { %1948 = vmatprep.subr.bf16.mxu0 %v3033_v55  ;;  %v3113_v54 = vld [vmem:[%s4211_s1 + $0x180] ss:$8 sps:$4 sm:$0xff]  }
  0x3f   : > { %v3117_v55 = vld [vmem:[%s4211_s1 + $0x480] ss:$8 sps:$4 sm:$0xff]  }
  0x40   : > { %1670 = vmatpush1.bf16.msra.mxu1 %v3035_v56  ;;  %v3123_v56 = vld [vmem:[%s4211_s1 + $0x194] ss:$8 sps:$4 sm:$0xff]  }
  0x41   : > { %1949 = vmatpush1.bf16.msra.mxu0 %v3036_v57  ;;  %1671 = vmatprep.subr.bf16.mxu1 %v3037_v58  ;;  %v3126_v57 = vld [vmem:[%s4211_s1 + $0x494] ss:$8 sps:$4 sm:$0xff]  }
  0x42   : > { %1950 = vmatprep.subr.bf16.mxu0 %v3039_v59  ;;  %v3163_v58 = vld [vmem:[%s3586_s6 + $0x1d4] ss:$44 sps:$4 sm:$0xff]   ;;  %v3165_v59 = vld [vmem:[%s3586_s6 + $0x1bc] ss:$44 sps:$4 sm:$0xff]  }
  0x44   : > { %1672 = vmatpush1.bf16.msra.mxu1 %v3041_v60  ;;  %v3121_v60 = vld [vmem:[%s4211_s1 + $0x190] ss:$8 sps:$4 sm:$0xff]  }
  0x45   : > { %1951 = vmatpush1.bf16.msra.mxu0 %v3042_v61  ;;  %1673 = vmatprep.subr.bf16.mxu1 %v3043_v62  ;;  %v3124_v61 = vld [vmem:[%s4211_s1 + $0x490] ss:$8 sps:$4 sm:$0xff]   ;;  %v3133_v62 = vld [vmem:[%s4211_s1 + $0x1a4] ss:$8 sps:$4 sm:$0xff]  }
  0x46   : > { %1952 = vmatprep.subr.bf16.mxu0 %v3045_v63  ;;  %v3137_v63 = vld [vmem:[%s4211_s1 + $0x4a4] ss:$8 sps:$4 sm:$0xff]  }
  0x48   : > { %1674 = vmatpush1.bf16.msra.mxu1 %v3047_v0  ;;  %v3131_v0 = vld [vmem:[%s4211_s1 + $0x1a0] ss:$8 sps:$4 sm:$0xff]  }
  0x49   : > { %1953 = vmatpush1.bf16.msra.mxu0 %v3048_v1  ;;  %1736 = vmatprep.subr.bf16.mxu1 %v3054_v2  ;;  %v3135_v1 = vld [vmem:[%s4211_s1 + $0x4a0] ss:$8 sps:$4 sm:$0xff]   ;;  %v3170_v2 = vld [vmem:[%s3586_s6 + $0x1d0] ss:$44 sps:$4 sm:$0xff]  }
  0x4a   : > { %2015 = vmatprep.subr.bf16.mxu0 %v3060_v3  ;;  %v3174_v3 = vld [vmem:[%s3586_s6 + $0x1b8] ss:$44 sps:$4 sm:$0xff]  }
  0x4b   : > { %1676 = vmatmul.mubr.bf16.vlgmr.msra.gmra.mrb[0].mxu1 %v3049_v4  ;;  %v3141_v4 = vld [vmem:[%s4211_s1 + $0x1b4] ss:$8 sps:$4 sm:$0xff]  }
  0x4c   : > { %1955 = vmatmul.mubr.bf16.vlgmr.msra.gmra.mrb[0].mxu0 %v3055_v5  ;;  %1737 = vmatpush1.bf16.msra.mxu1 %v3052_v6  ;;  %v3144_v5 = vld [vmem:[%s4211_s1 + $0x4b4] ss:$8 sps:$4 sm:$0xff]   ;;  %v3183_v6 = vld [vmem:[%s3586_s6 + $0x24] ss:$44 sps:$4 sm:$0xff]  }
  0x4d   : > { %2016 = vmatpush1.bf16.msra.mxu0 %v3058_v7  ;;  %1738 = vmatprep.subr.bf16.mxu1 %v3063_v8  ;;  %v3186_v7 = vld [vmem:[%s3586_s6 + $0xc] ss:$44 sps:$4 sm:$0xff]  }
  0x4e   : > { %2017 = vmatprep.subr.bf16.mxu0 %v3066_v9  ;;  %1964 = vmatprep.mubr.bf16.mxu0 %v3091_v10  ;;  %v3139_v8 = vld [vmem:[%s4211_s1 + $0x1b0] ss:$8 sps:$4 sm:$0xff]   ;;  %v3151_v10 = vld [vmem:[%s4211_s1 + $0x1c4] ss:$8 sps:$4 sm:$0xff]  }
  0x4f   : > { %1685 = vmatprep.mubr.bf16.mxu1 %v3093_v11  ;;  %v3142_v9 = vld [vmem:[%s4211_s1 + $0x4b0] ss:$8 sps:$4 sm:$0xff]   ;;  %v3155_v11 = vld [vmem:[%s4211_s1 + $0x4c4] ss:$8 sps:$4 sm:$0xff]  }
  0x50   : > { %1739 = vmatpush1.bf16.msra.mxu1 %v3061_v12  ;;  %v3149_v12 = vld [vmem:[%s4211_s1 + $0x1c0] ss:$8 sps:$4 sm:$0xff]  }
  0x51   : > { %2018 = vmatpush1.bf16.msra.mxu0 %v3064_v13  ;;  %1740 = vmatprep.subr.bf16.mxu1 %v3069_v14  ;;  %v3153_v13 = vld [vmem:[%s4211_s1 + $0x4c0] ss:$8 sps:$4 sm:$0xff]   ;;  %v3159_v14 = vld [vmem:[%s4211_s1 + $0x1d4] ss:$8 sps:$4 sm:$0xff]  }
  0x52   : > { %2019 = vmatprep.subr.bf16.mxu0 %v3072_v15  ;;  %v3162_v15 = vld [vmem:[%s4211_s1 + $0x4d4] ss:$8 sps:$4 sm:$0xff]  }
  0x53   : > { %1686 = vmatmul.mubr.bf16.gmra.mrb[4].mxu1 %v3102_v17  ;;  %v3160_v17 = vld [vmem:[%s4211_s1 + $0x4d0] ss:$8 sps:$4 sm:$0xff]  }
  0x54   : > { %1965 = vmatmul.mubr.bf16.gmra.mrb[4].mxu0 %v3098_v16  ;;  %1741 = vmatpush1.bf16.msra.mxu1 %v3067_v18  ;;  %v3157_v16 = vld [vmem:[%s4211_s1 + $0x1d0] ss:$8 sps:$4 sm:$0xff]   ;;  %v3169_v18 = vld [vmem:[%s4211_s1 + $0x1e4] ss:$8 sps:$4 sm:$0xff]  }
  0x55   : > { %2020 = vmatpush1.bf16.msra.mxu0 %v3070_v19  ;;  %1742 = vmatprep.subr.bf16.mxu1 %v3075_v20  ;;  %v3173_v19 = vld [vmem:[%s4211_s1 + $0x4e4] ss:$8 sps:$4 sm:$0xff]   ;;  %v3167_v20 = vld [vmem:[%s4211_s1 + $0x1e0] ss:$8 sps:$4 sm:$0xff]  }
  0x56   : > { %2021 = vmatprep.subr.bf16.mxu0 %v3078_v21  ;;  %1974 = vmatprep.mubr.bf16.mxu0 %v3109_v22  ;;  %v3171_v21 = vld [vmem:[%s4211_s1 + $0x4e0] ss:$8 sps:$4 sm:$0xff]   ;;  %v3177_v22 = vld [vmem:[%s4211_s1 + $0x1f4] ss:$8 sps:$4 sm:$0xff]  }
  0x57   : > { %1695 = vmatprep.mubr.bf16.mxu1 %v3111_v23  ;;  %v3180_v23 = vld [vmem:[%s4211_s1 + $0x4f4] ss:$8 sps:$4 sm:$0xff]  }
  0x58   : > { %1743 = vmatpush1.bf16.msra.mxu1 %v3073_v24  ;;  %v3175_v24 = vld [vmem:[%s4211_s1 + $0x1f0] ss:$8 sps:$4 sm:$0xff]  }
  0x59   : > { %2022 = vmatpush1.bf16.msra.mxu0 %v3076_v25  ;;  %1744 = vmatprep.subr.bf16.mxu1 %v3081_v26  ;;  %v3178_v25 = vld [vmem:[%s4211_s1 + $0x4f0] ss:$8 sps:$4 sm:$0xff]   ;;  %v3189_v26 = vld [vmem:[%s4211_s1 + $0x204] ss:$8 sps:$4 sm:$0xff]  }
  0x5a   : > { %2023 = vmatprep.subr.bf16.mxu0 %v3084_v27  ;;  %v3181_v27 = vld [vmem:[%s3586_s6 + $0x20] ss:$44 sps:$4 sm:$0xff]  }
  0x5b   : > { %1696 = vmatmul.mubr.bf16.gmra.mrb[8].mxu1 %v3120_v29  ;;  %v3184_v29 = vld [vmem:[%s3586_s6 + $0x8] ss:$44 sps:$4 sm:$0xff]  }
  0x5c   : > { %1975 = vmatmul.mubr.bf16.gmra.mrb[8].mxu0 %v3116_v28  ;;  %1745 = vmatpush1.bf16.msra.mxu1 %v3079_v30  ;;  %v3210_v28 = vld [vmem:[%s4211_s1 + $0x504] ss:$8 sps:$4 sm:$0xff]   ;;  %v3187_v30 = vld [vmem:[%s4211_s1 + $0x200] ss:$8 sps:$4 sm:$0xff]  }
  0x5d   : > { %2024 = vmatpush1.bf16.msra.mxu0 %v3082_v31  ;;  %1746 = vmatprep.subr.bf16.mxu1 %v3087_v32  ;;  %v3192_v31 = vld [vmem:[%s4211_s1 + $0x214] ss:$8 sps:$4 sm:$0xff]  }
  0x5e   : > { %2025 = vmatprep.subr.bf16.mxu0 %v3090_v33  ;;  %1984 = vmatprep.mubr.bf16.mxu0 %v3127_v34  ;;  %v3193_v32 = vld [vmem:[%s3586_s6 + $0x7c] ss:$44 sps:$4 sm:$0xff]   ;;  %v3214_v34 = vld [vmem:[%s3586_s6 + $0x64] ss:$44 sps:$4 sm:$0xff]  }
  0x5f   : > { %1705 = vmatprep.mubr.bf16.mxu1 %v3129_v35  ;;  %v3208_v33 = vld [vmem:[%s4211_s1 + $0x500] ss:$8 sps:$4 sm:$0xff]   ;;  %v3228_v35 = vld [vmem:[%s4211_s1 + $0x514] ss:$8 sps:$4 sm:$0xff]  }
  0x60   : > { %1747 = vmatpush1.bf16.msra.mxu1 %v3085_v36  ;;  %v3190_v36 = vld [vmem:[%s4211_s1 + $0x210] ss:$8 sps:$4 sm:$0xff]  }
  0x61   : > { %2026 = vmatpush1.bf16.msra.mxu0 %v3088_v37  ;;  %1748 = vmatprep.subr.bf16.mxu1 %v3097_v38  ;;  %v3197_v37 = vld [vmem:[%s4211_s1 + $0x224] ss:$8 sps:$4 sm:$0xff]   ;;  %v3226_v38 = vld [vmem:[%s4211_s1 + $0x510] ss:$8 sps:$4 sm:$0xff]  }
  0x62   : > { %2027 = vmatprep.subr.bf16.mxu0 %v3101_v39  ;;  %v3195_v39 = vld [vmem:[%s4211_s1 + $0x220] ss:$8 sps:$4 sm:$0xff]  }
  0x63   : > { %1706 = vmatmul.mubr.bf16.gmra.mrb[12].mxu1 %v3138_v41  ;;  %v3252_v41 = vld [vmem:[%s4211_s1 + $0x524] ss:$8 sps:$4 sm:$0xff]  }
  0x64   : > { %1985 = vmatmul.mubr.bf16.gmra.mrb[12].mxu0 %v3134_v40  ;;  %1749 = vmatpush1.bf16.msra.mxu1 %v3095_v42  ;;  %v3198_v40 = vld [vmem:[%s3586_s6 + $0x78] ss:$44 sps:$4 sm:$0xff]   ;;  %v3201_v42 = vld [vmem:[%s4211_s1 + $0x234] ss:$8 sps:$4 sm:$0xff]  }
  0x65   : > { %2028 = vmatpush1.bf16.msra.mxu0 %v3099_v43  ;;  %1750 = vmatprep.subr.bf16.mxu1 %v3105_v44  ;;  %v3218_v43 = vld [vmem:[%s3586_s6 + $0x60] ss:$44 sps:$4 sm:$0xff]  }
  0x66   : > { %2029 = vmatprep.subr.bf16.mxu0 %v3108_v45  ;;  %1994 = vmatprep.mubr.bf16.mxu0 %v3145_v46  ;;  %v3202_v44 = vld [vmem:[%s3586_s6 + $0xd4] ss:$44 sps:$4 sm:$0xff]   ;;  %v3229_v45 = vld [vmem:[%s3586_s6 + $0xbc] ss:$44 sps:$4 sm:$0xff]  }
  0x67   : > { %1715 = vmatprep.mubr.bf16.mxu1 %v3147_v47  ;;  %v3250_v46 = vld [vmem:[%s4211_s1 + $0x520] ss:$8 sps:$4 sm:$0xff]   ;;  %v3258_v47 = vld [vmem:[%s4211_s1 + $0x534] ss:$8 sps:$4 sm:$0xff]  }
  0x68   : > { %1751 = vmatpush1.bf16.msra.mxu1 %v3103_v48  ;;  %v3199_v48 = vld [vmem:[%s4211_s1 + $0x230] ss:$8 sps:$4 sm:$0xff]  }
  0x69   : > { %2030 = vmatpush1.bf16.msra.mxu0 %v3106_v49  ;;  %1752 = vmatprep.subr.bf16.mxu1 %v3115_v50  ;;  %v3206_v49 = vld [vmem:[%s4211_s1 + $0x244] ss:$8 sps:$4 sm:$0xff]   ;;  %v3204_v50 = vld [vmem:[%s4211_s1 + $0x240] ss:$8 sps:$4 sm:$0xff]  }
  0x6a   : > { %2031 = vmatprep.subr.bf16.mxu0 %v3119_v51  ;;  %v3256_v51 = vld [vmem:[%s4211_s1 + $0x530] ss:$8 sps:$4 sm:$0xff]  }
  0x6b   : > { %1716 = vmatmul.mubr.bf16.gmra.mrb[16].mxu1 %v3156_v53  ;;  %v3233_v53 = vld [vmem:[%s3586_s6 + $0xb8] ss:$44 sps:$4 sm:$0xff]  }
  0x6c   : > { %1995 = vmatmul.mubr.bf16.gmra.mrb[16].mxu0 %v3152_v52  ;;  %1753 = vmatpush1.bf16.msra.mxu1 %v3113_v54  ;;  %v3207_v52 = vld [vmem:[%s3586_s6 + $0xd0] ss:$44 sps:$4 sm:$0xff]   ;;  %v3216_v54 = vld [vmem:[%s3586_s6 + $0x12c] ss:$44 sps:$4 sm:$0xff]  }
  0x6d   : > { %2032 = vmatpush1.bf16.msra.mxu0 %v3117_v55  ;;  %1754 = vmatprep.subr.bf16.mxu1 %v3123_v56  ;;  %v3213_v55 = vld [vmem:[%s4211_s1 + $0x254] ss:$8 sps:$4 sm:$0xff]  }
  0x6e   : > { %2033 = vmatprep.subr.bf16.mxu0 %v3126_v57  ;;  %2004 = vmatprep.mubr.bf16.mxu0 %v3163_v58  ;;  %v3241_v56 = vld [vmem:[%s3586_s6 + $0x114] ss:$44 sps:$4 sm:$0xff]   ;;  %v3211_v57 = vld [vmem:[%s4211_s1 + $0x250] ss:$8 sps:$4 sm:$0xff]   ;;  %v3221_v58 = vld [vmem:[%s4211_s1 + $0x264] ss:$8 sps:$4 sm:$0xff]  }
  0x6f   : > { %1725 = vmatprep.mubr.bf16.mxu1 %v3165_v59  ;;  %v3219_v59 = vld [vmem:[%s4211_s1 + $0x260] ss:$8 sps:$4 sm:$0xff]  }
  0x70   : > { %1755 = vmatpush1.bf16.msra.mxu1 %v3121_v60  ;;  %v3222_v60 = vld [vmem:[%s3586_s6 + $0x128] ss:$44 sps:$4 sm:$0xff]  }
  0x71   : > { %2034 = vmatpush1.bf16.msra.mxu0 %v3124_v61  ;;  %1756 = vmatprep.subr.bf16.mxu1 %v3133_v62  ;;  %v3225_v61 = vld [vmem:[%s4211_s1 + $0x274] ss:$8 sps:$4 sm:$0xff]  }
  0x72   : > { %2035 = vmatprep.subr.bf16.mxu0 %v3137_v63  ;;  %v3245_v62 = vld [vmem:[%s3586_s6 + $0x110] ss:$44 sps:$4 sm:$0xff]  }
  0x73   : > { %1726 = vmatmul.mubr.bf16.gmra.mrb[20].mxu1 %v3174_v3  ;;  %v3231_v63 = vld [vmem:[%s3586_s6 + $0x184] ss:$44 sps:$4 sm:$0xff]   ;;  %v3237_v3 = vld [vmem:[%s3586_s6 + $0x180] ss:$44 sps:$4 sm:$0xff]  }
  0x74   : > { %2005 = vmatmul.mubr.bf16.gmra.mrb[20].mxu0 %v3170_v2  ;;  %1757 = vmatpush1.bf16.msra.mxu1 %v3131_v0  ;;  %v3259_v0 = vld [vmem:[%s3586_s6 + $0x16c] ss:$44 sps:$4 sm:$0xff]  }
  0x75   : > { %2036 = vmatpush1.bf16.msra.mxu0 %v3135_v1  ;;  %1758 = vmatprep.subr.bf16.mxu1 %v3141_v4  ;;  %v3223_v1 = vld [vmem:[%s4211_s1 + $0x270] ss:$8 sps:$4 sm:$0xff]   ;;  %v3236_v2 = vld [vmem:[%s4211_s1 + $0x284] ss:$8 sps:$4 sm:$0xff]   ;;  %v3261_v4 = vld [vmem:[%s3586_s6 + $0x168] ss:$44 sps:$4 sm:$0xff]  }
  0x76   : > { %2037 = vmatprep.subr.bf16.mxu0 %v3144_v5  ;;  %2047 = vmatprep.mubr.bf16.mxu0 %v3183_v6  ;;  %v3234_v5 = vld [vmem:[%s4211_s1 + $0x280] ss:$8 sps:$4 sm:$0xff]  }
  0x77   : > { %1768 = vmatprep.mubr.bf16.mxu1 %v3186_v7  ;;  %v3243_v6 = vld [vmem:[%s3586_s6 + $0x1dc] ss:$44 sps:$4 sm:$0xff]  }
  0x78   : > { %1759 = vmatpush1.bf16.msra.mxu1 %v3139_v8  ;;  %v3240_v7 = vld [vmem:[%s4211_s1 + $0x294] ss:$8 sps:$4 sm:$0xff]   ;;  %v3269_v8 = vld [vmem:[%s3586_s6 + $0x1c4] ss:$44 sps:$4 sm:$0xff]  }
  0x79   : > { %2038 = vmatpush1.bf16.msra.mxu0 %v3142_v9  ;;  %1760 = vmatprep.subr.bf16.mxu1 %v3151_v10  ;;  %v3238_v9 = vld [vmem:[%s4211_s1 + $0x290] ss:$8 sps:$4 sm:$0xff]   ;;  %v3248_v10 = vld [vmem:[%s4211_s1 + $0x2a4] ss:$8 sps:$4 sm:$0xff]  }
  0x7a   : > { %2039 = vmatprep.subr.bf16.mxu0 %v3155_v11  ;;  %v3249_v11 = vld [vmem:[%s3586_s6 + $0x1d8] ss:$44 sps:$4 sm:$0xff]  }
  0x7c   : > { %1761 = vmatpush1.bf16.msra.mxu1 %v3149_v12  ;;  %v3271_v12 = vld [vmem:[%s3586_s6 + $0x1c0] ss:$44 sps:$4 sm:$0xff]  }
  0x7d   : > { %2040 = vmatpush1.bf16.msra.mxu0 %v3153_v13  ;;  %1762 = vmatprep.subr.bf16.mxu1 %v3159_v14  ;;  %v3246_v13 = vld [vmem:[%s4211_s1 + $0x2a0] ss:$8 sps:$4 sm:$0xff]   ;;  %v3255_v14 = vld [vmem:[%s4211_s1 + $0x2b4] ss:$8 sps:$4 sm:$0xff]  }
  0x7e   : > { %2041 = vmatprep.subr.bf16.mxu0 %v3162_v15  ;;  %v3281_v15 = vld [vmem:[%s3586_s6 + $0x14] ss:$44 sps:$4 sm:$0xff]  }
  0x80   : > { %1763 = vmatpush1.bf16.msra.mxu1 %v3157_v16  ;;  %v3253_v16 = vld [vmem:[%s4211_s1 + $0x2b0] ss:$8 sps:$4 sm:$0xff]  }
  0x81   : > { %2042 = vmatpush1.bf16.msra.mxu0 %v3160_v17  ;;  %1764 = vmatprep.subr.bf16.mxu1 %v3169_v18  ;;  %v3393_v17 = vmov 0   ;;  %v3264_v18 = vld [vmem:[%s4211_s1 + $0x2c4] ss:$8 sps:$4 sm:$0xff]  }
  0x82   : > { %2043 = vmatprep.subr.bf16.mxu0 %v3173_v19  ;;  %v3265_v19 = vld [vmem:[%s3586_s6 + $0x28] ss:$44 sps:$4 sm:$0xff]  }
  0x84   : > { %1765 = vmatpush1.bf16.msra.mxu1 %v3167_v20  ;;  %v3262_v20 = vld [vmem:[%s4211_s1 + $0x2c0] ss:$8 sps:$4 sm:$0xff]  }
  0x85   : > { %2044 = vmatpush1.bf16.msra.mxu0 %v3171_v21  ;;  %1766 = vmatprep.subr.bf16.mxu1 %v3177_v22  ;;  %v3268_v21 = vld [vmem:[%s4211_s1 + $0x2d4] ss:$8 sps:$4 sm:$0xff]   ;;  %v3266_v22 = vld [vmem:[%s4211_s1 + $0x2d0] ss:$8 sps:$4 sm:$0xff]  }
  0x86   : > { %2045 = vmatprep.subr.bf16.mxu0 %v3180_v23  ;;  %v3274_v23 = vld [vmem:[%s4211_s1 + $0x2e4] ss:$8 sps:$4 sm:$0xff]  }
  0x88   : > { %1767 = vmatpush1.bf16.msra.mxu1 %v3175_v24  ;;  %v3275_v24 = vld [vmem:[%s3586_s6 + $0x80] ss:$44 sps:$4 sm:$0xff]  }
  0x89   : > { %2046 = vmatpush1.bf16.msra.mxu0 %v3178_v25  ;;  %1829 = vmatprep.subr.bf16.mxu1 %v3189_v26  ;;  %v3272_v25 = vld [vmem:[%s4211_s1 + $0x2e0] ss:$8 sps:$4 sm:$0xff]   ;;  %v3278_v26 = vld [vmem:[%s4211_s1 + $0x2f4] ss:$8 sps:$4 sm:$0xff]  }
  0x8a   : > { %2108 = vmatprep.subr.bf16.mxu0 %v3210_v28  ;;  %v3279_v28 = vld [vmem:[%s3586_s6 + $0x10] ss:$44 sps:$4 sm:$0xff]  }
  0x8b   : > { %1769 = vmatmul.mubr.bf16.vlgmr.msra.gmra.mrb[0].mxu1 %v3184_v29  ;;  %v3282_v29 = vld [vmem:[%s3586_s6 + $0xd8] ss:$44 sps:$4 sm:$0xff]  }
  0x8c   : > { %2048 = vmatmul.mubr.bf16.vlgmr.msra.gmra.mrb[0].mxu0 %v3181_v27  ;;  %1830 = vmatpush1.bf16.msra.mxu1 %v3187_v30  ;;  %v3276_v27 = vld [vmem:[%s4211_s1 + $0x2f0] ss:$8 sps:$4 sm:$0xff]  }
  0x8d   : > { %2057 = vmatprep.mubr.bf16.mxu0 %v3193_v32  ;;  %1831 = vmatprep.subr.bf16.mxu1 %v3192_v31  ;;  %v3283_v30 = vld [vmem:[%s3586_s6 + $0x6c] ss:$44 sps:$4 sm:$0xff]   ;;  %v3285_v31 = vld [vmem:[%s3586_s6 + $0x68] ss:$44 sps:$4 sm:$0xff]   ;;  %v3286_v32 = vld [vmem:[%s3586_s6 + $0x130] ss:$44 sps:$4 sm:$0xff]  }
  0x8e   : > { %2109 = vmatpush1.bf16.msra.mxu0 %v3208_v33  ;;  %1778 = vmatprep.mubr.bf16.mxu1 %v3214_v34  ;;  %v3287_v33 = vld [vmem:[%s3586_s6 + $0xc4] ss:$44 sps:$4 sm:$0xff]   ;;  %v3289_v34 = vld [vmem:[%s3586_s6 + $0xc0] ss:$44 sps:$4 sm:$0xff]  }
  0x8f   : > { %2110 = vmatprep.subr.bf16.mxu0 %v3228_v35  ;;  %v3290_v35 = vld [vmem:[%s3586_s6 + $0x188] ss:$44 sps:$4 sm:$0xff]  }
  0x90   : > { %1832 = vmatpush1.bf16.msra.mxu1 %v3190_v36  ;;  %v3291_v36 = vld [vmem:[%s3586_s6 + $0x11c] ss:$44 sps:$4 sm:$0xff]  }
  0x91   : > { %1833 = vmatprep.subr.bf16.mxu1 %v3197_v37  ;;  %v3293_v37 = vld [vmem:[%s3586_s6 + $0x118] ss:$44 sps:$4 sm:$0xff]  }
  0x92   : > { %2111 = vmatpush1.bf16.msra.mxu0 %v3226_v38  ;;  %v3294_v38 = vld [vmem:[%s3586_s6 + $0x1e0] ss:$44 sps:$4 sm:$0xff]  }
  0x93   : > { %2112 = vmatprep.subr.bf16.mxu0 %v3252_v41  ;;  %1779 = vmatmul.mubr.bf16.gmra.mrb[4].mxu1 %v3218_v43  ;;  %v3298_v41 = vld [vmem:[%s3586_s6 + $0x1cc] ss:$44 sps:$4 sm:$0xff]  }
  0x94   : > { %2058 = vmatmul.mubr.bf16.gmra.mrb[4].mxu0 %v3198_v40  ;;  %1834 = vmatpush1.bf16.msra.mxu1 %v3195_v39  ;;  %v3295_v39 = vld [vmem:[%s3586_s6 + $0x174] ss:$44 sps:$4 sm:$0xff]   ;;  %v3297_v40 = vld [vmem:[%s3586_s6 + $0x170] ss:$44 sps:$4 sm:$0xff]  }
  0x95   : > { %2067 = vmatprep.mubr.bf16.mxu0 %v3202_v44  ;;  %1835 = vmatprep.subr.bf16.mxu1 %v3201_v42  ;;  %v3300_v42 = vld [vmem:[%s3586_s6 + $0x1c8] ss:$44 sps:$4 sm:$0xff]   ;;  %s2861_s6 = smul.u32 192, %s175_s8 }
  0x96   : > { %1788 = vmatprep.mubr.bf16.mxu1 %v3229_v45  ;;  %2113 = vmatpush1.bf16.msra.mxu0 %v3250_v46  ;;  %v444_v45 = vlaneseq }
  0x97   : > { %2114 = vmatprep.subr.bf16.mxu0 %v3258_v47  ;;  %s4041_s12 = scalar_lea.vmem [#allocation2], %s2861_s6  }
  0x98   : > { %1836 = vmatpush1.bf16.msra.mxu1 %v3199_v48  ;;  %v445_v48 = vshrl.u32 %v444_v45, 7 }
  0x99   : > { %1837 = vmatprep.subr.bf16.mxu1 %v3206_v49 }
  0x9a   : > { %2115 = vmatpush1.bf16.msra.mxu0 %v3256_v51  ;;  %v446_v51 = vsub.s32 0, %v445_v48 }
  0x9b   : > { %1789 = vmatmul.mubr.bf16.gmra.mrb[8].mxu1 %v3233_v53  ;;  %v442_v53 = vld [vmem:[%s4212_s2] sm:$0x3] }
  0x9c   : > { %2068 = vmatmul.mubr.bf16.gmra.mrb[8].mxu0 %v3207_v52  ;;  %1838 = vmatpush1.bf16.msra.mxu1 %v3204_v50 }
  0x9d   : > { %2077 = vmatprep.mubr.bf16.mxu0 %v3216_v54  ;;  %1839 = vmatprep.subr.bf16.mxu1 %v3213_v55  ;;  %v450_v54 = vsub.s32 1, %v445_v48 }
  0x9e   : > { %1798 = vmatprep.mubr.bf16.mxu1 %v3241_v56  ;;  %v4033_v56 = vrot.slane %v442_v53, %v446_v51 }
  0xa0   : > { %1840 = vmatpush1.bf16.msra.mxu1 %v3211_v57  ;;  %v4035_v57 = vrot.slane %v442_v53, %v450_v54 }
  0xa1   : > { %1841 = vmatprep.subr.bf16.mxu1 %v3221_v58 }
  0xa3   : > { %1799 = vmatmul.mubr.bf16.gmra.mrb[12].mxu1 %v3245_v62 }
  0xa4   : > { %2078 = vmatmul.mubr.bf16.gmra.mrb[12].mxu0 %v3222_v60  ;;  %1842 = vmatpush1.bf16.msra.mxu1 %v3219_v59 }
  0xa5   : > { %2087 = vmatprep.mubr.bf16.mxu0 %v3231_v63  ;;  %1843 = vmatprep.subr.bf16.mxu1 %v3225_v61 }
  0xa6   : > { %1808 = vmatprep.mubr.bf16.mxu1 %v3259_v0 }
  0xa8   : > { %1844 = vmatpush1.bf16.msra.mxu1 %v3223_v1 }
  0xa9   : > { %1845 = vmatprep.subr.bf16.mxu1 %v3236_v2 }
  0xab   : > { %1809 = vmatmul.mubr.bf16.gmra.mrb[16].mxu1 %v3261_v4 }
  0xac   : > { %2088 = vmatmul.mubr.bf16.gmra.mrb[16].mxu0 %v3237_v3  ;;  %1846 = vmatpush1.bf16.msra.mxu1 %v3234_v5 }
  0xad   : > { %2097 = vmatprep.mubr.bf16.mxu0 %v3243_v6  ;;  %1847 = vmatprep.subr.bf16.mxu1 %v3240_v7 }
  0xae   : > { %1818 = vmatprep.mubr.bf16.mxu1 %v3269_v8 }
  0xb0   : > { %1848 = vmatpush1.bf16.msra.mxu1 %v3238_v9 }
  0xb1   : > { %1849 = vmatprep.subr.bf16.mxu1 %v3248_v10 }
  0xb3   : > { %1819 = vmatmul.mubr.bf16.gmra.mrb[20].mxu1 %v3271_v12 }
  0xb4   : > { %2098 = vmatmul.mubr.bf16.gmra.mrb[20].mxu0 %v3249_v11  ;;  %1850 = vmatpush1.bf16.msra.mxu1 %v3246_v13 }
  0xb5   : > { %2140 = vmatprep.mubr.bf16.mxu0 %v3393_v17  ;;  %1851 = vmatprep.subr.bf16.mxu1 %v3255_v14 }
  0xb6   : > { %1861 = vmatprep.mubr.bf16.mxu1 %v3281_v15 }
  0xb8   : > { %1852 = vmatpush1.bf16.msra.mxu1 %v3253_v16 }
  0xb9   : > { %1853 = vmatprep.subr.bf16.mxu1 %v3264_v18 }
  0xbc   : > { %2693 = vmatmul.mubr.msk.bf16.vlgmr.msra.gmra.mrb[0].mxu0 %vm1624_vm0, %v3265_v19  ;;  %1854 = vmatpush1.bf16.msra.mxu1 %v3262_v20 }
  0xbd   : > { %2150 = vmatprep.mubr.bf16.mxu0 %v3393_v17  ;;  %1855 = vmatprep.subr.bf16.mxu1 %v3268_v21 }
  0xc0   : > { %1856 = vmatpush1.bf16.msra.mxu1 %v3266_v22 }
  0xc1   : > { %1857 = vmatprep.subr.bf16.mxu1 %v3274_v23 }
  0xc4   : > { %2694 = vmatmul.mubr.msk.bf16.gmra.mrb[4].mxu0 %vm1624_vm0, %v3275_v24  ;;  %1858 = vmatpush1.bf16.msra.mxu1 %v3272_v25 }
  0xc5   : > { %2160 = vmatprep.mubr.bf16.mxu0 %v3393_v17  ;;  %1859 = vmatprep.subr.bf16.mxu1 %v3278_v26 }
  0xc8   : > { %1860 = vmatpush1.bf16.msra.mxu1 %v3276_v27 }
  0xcb   : > { %1862 = vmatmul.mubr.bf16.vlgmr.msra.gmra.mrb[0].mxu1 %v3279_v28 }
  0xcc   : > { %2695 = vmatmul.mubr.msk.bf16.gmra.mrb[8].mxu0 %vm1624_vm0, %v3282_v29  ;;  %1871 = vmatprep.mubr.bf16.mxu1 %v3283_v30 }
  0xcd   : > { %2170 = vmatprep.mubr.bf16.mxu0 %v3393_v17 }
  0xd3   : > { %1872 = vmatmul.mubr.bf16.gmra.mrb[4].mxu1 %v3285_v31 }
  0xd4   : > { %2696 = vmatmul.mubr.msk.bf16.gmra.mrb[12].mxu0 %vm1624_vm0, %v3286_v32  ;;  %1881 = vmatprep.mubr.bf16.mxu1 %v3287_v33 }
  0xd5   : > { %2180 = vmatprep.mubr.bf16.mxu0 %v3393_v17 }
  0xdb   : > { %1882 = vmatmul.mubr.bf16.gmra.mrb[8].mxu1 %v3289_v34 }
  0xdc   : > { %2697 = vmatmul.mubr.msk.bf16.gmra.mrb[16].mxu0 %vm1624_vm0, %v3290_v35  ;;  %1891 = vmatprep.mubr.bf16.mxu1 %v3291_v36 }
  0xdd   : > { %2190 = vmatprep.mubr.bf16.mxu0 %v3393_v17 }
  0xe3   : > { %1892 = vmatmul.mubr.bf16.gmra.mrb[12].mxu1 %v3293_v37 }
  0xe4   : > { %2698 = vmatmul.mubr.msk.bf16.gmra.mrb[20].mxu0 %vm1624_vm0, %v3294_v38  ;;  %1901 = vmatprep.mubr.bf16.mxu1 %v3295_v39 }
  0xeb   : > { %1902 = vmatmul.mubr.bf16.gmra.mrb[16].mxu1 %v3297_v40 }
  0xec   : > { %1911 = vmatprep.mubr.bf16.mxu1 %v3298_v41 }
  0xf3   : > { %1912 = vmatmul.mubr.bf16.gmra.mrb[20].mxu1 %v3300_v42 }
 0x18f   : > { %v2142_v43 = vpop.f32.mrb[0].mxu0 }
 0x190   : > { %v2144_v44 = vpop.f32.mrb[1].mxu0 }
 0x191   : > { %v2146_v46 = vpop.f32.mrb[2].mxu0 }
 0x192   : > { %v2148_v47 = vpop.f32.mrb[3].mxu0 }
 0x197   : > { %v2152_v49 = vpop.f32.mrb[4].mxu0 }
 0x198   : > { %v2154_v50 = vpop.f32.mrb[5].mxu0 }
 0x199   : > { %v2156_v52 = vpop.f32.mrb[6].mxu0 }
 0x19a   : > { %v2158_v55 = vpop.f32.mrb[7].mxu0 }
 0x19e   : > { %v1863_v58 = vpop.f32.mrb[0].mxu1 }
 0x19f   : > { %v2162_v59 = vpop.f32.mrb[8].mxu0  ;;  %v2717_v60 = vadd.f32 %v1863_v58, %v4033_v56  ;;  %v1865_v61 = vpop.f32.mrb[1].mxu1 }
 0x1a0   : > { %v2164_v62 = vpop.f32.mrb[9].mxu0  ;;  %v2719_v63 = vadd.f32 %v1865_v61, %v4035_v57  ;;  %v1867_v0 = vpop.f32.mrb[2].mxu1 }
 0x1a1   : > { %v2166_v1 = vpop.f32.mrb[10].mxu0  ;;  %v2718_v2 = vadd.f32 %v2717_v60, %v2142_v43  ;;  %v2721_v3 = vadd.f32 %v1867_v0, %v4033_v56  ;;  %v1869_v4 = vpop.f32.mrb[3].mxu1 }
 0x1a2   : > { %v2168_v5 = vpop.f32.mrb[11].mxu0  ;;  %v2720_v6 = vadd.f32 %v2719_v63, %v2144_v44  ;;  %v2723_v7 = vadd.f32 %v1869_v4, %v4035_v57 }
 0x1a3   : > { %v2201_v8 = vmax.f32 %v2718_v2, 0.0  ;;  %v2722_v9 = vadd.f32 %v2721_v3, %v2146_v46 }
 0x1a4   : > { %v2202_v10 = vmax.f32 %v2720_v6, 0.0  ;;  %v2724_v11 = vadd.f32 %v2723_v7, %v2148_v47 }
 0x1a5   : > { %2225 = vst [vmem:[%s4041_s12] sm:$0xff] %v2201_v8  ;;  %v2203_v12 = vmax.f32 %v2722_v9, 0.0 }
 0x1a6   : > { %2226 = vst [vmem:[%s4041_s12 + $0x8] sm:$0xff] %v2202_v10  ;;  %v2204_v13 = vmax.f32 %v2724_v11, 0.0  ;;  %v1873_v14 = vpop.f32.mrb[4].mxu1 }
 0x1a7   : > { %v2172_v15 = vpop.f32.mrb[12].mxu0  ;;  %2227 = vst [vmem:[%s4041_s12 + $0x10] sm:$0xff] %v2203_v12  ;;  %v2725_v16 = vadd.f32 %v1873_v14, %v4033_v56  ;;  %v1875_v17 = vpop.f32.mrb[5].mxu1 }
 0x1a8   : > { %v2174_v18 = vpop.f32.mrb[13].mxu0  ;;  %2228 = vst [vmem:[%s4041_s12 + $0x18] sm:$0xff] %v2204_v13  ;;  %v2727_v19 = vadd.f32 %v1875_v17, %v4035_v57  ;;  %v1877_v20 = vpop.f32.mrb[6].mxu1 }
 0x1a9   : > { %v2176_v21 = vpop.f32.mrb[14].mxu0  ;;  %v2726_v22 = vadd.f32 %v2725_v16, %v2152_v49  ;;  %v2729_v23 = vadd.f32 %v1877_v20, %v4033_v56  ;;  %v1879_v24 = vpop.f32.mrb[7].mxu1 }
 0x1aa   : > { %v2178_v25 = vpop.f32.mrb[15].mxu0  ;;  %v2728_v26 = vadd.f32 %v2727_v19, %v2154_v50  ;;  %v2731_v27 = vadd.f32 %v1879_v24, %v4035_v57 }
 0x1ab   : > { %v2205_v28 = vmax.f32 %v2726_v22, 0.0  ;;  %v2730_v29 = vadd.f32 %v2729_v23, %v2156_v52 }
 0x1ac   : > { %v2206_v30 = vmax.f32 %v2728_v26, 0.0  ;;  %v2732_v31 = vadd.f32 %v2731_v27, %v2158_v55 }
 0x1ad   : > { %2229 = vst [vmem:[%s4041_s12 + $0x20] sm:$0xff] %v2205_v28  ;;  %v2207_v32 = vmax.f32 %v2730_v29, 0.0 }
 0x1ae   : > { %2230 = vst [vmem:[%s4041_s12 + $0x28] sm:$0xff] %v2206_v30  ;;  %v2208_v33 = vmax.f32 %v2732_v31, 0.0  ;;  %v1883_v34 = vpop.f32.mrb[8].mxu1 }
 0x1af   : > { %v2182_v35 = vpop.f32.mrb[16].mxu0  ;;  %2231 = vst [vmem:[%s4041_s12 + $0x30] sm:$0xff] %v2207_v32  ;;  %v2733_v36 = vadd.f32 %v1883_v34, %v4033_v56  ;;  %v1885_v37 = vpop.f32.mrb[9].mxu1 }
 0x1b0   : > { %v2184_v38 = vpop.f32.mrb[17].mxu0  ;;  %2232 = vst [vmem:[%s4041_s12 + $0x38] sm:$0xff] %v2208_v33  ;;  %v2735_v39 = vadd.f32 %v1885_v37, %v4035_v57  ;;  %v1887_v40 = vpop.f32.mrb[10].mxu1 }
 0x1b1   : > { %v2186_v41 = vpop.f32.mrb[18].mxu0  ;;  %v2734_v42 = vadd.f32 %v2733_v36, %v2162_v59  ;;  %v2737_v43 = vadd.f32 %v1887_v40, %v4033_v56  ;;  %v1889_v44 = vpop.f32.mrb[11].mxu1 }
 0x1b2   : > { %v2188_v45 = vpop.f32.mrb[19].mxu0  ;;  %v2736_v46 = vadd.f32 %v2735_v39, %v2164_v62  ;;  %v2739_v47 = vadd.f32 %v1889_v44, %v4035_v57 }
 0x1b3   : > { %v2209_v48 = vmax.f32 %v2734_v42, 0.0  ;;  %v2738_v49 = vadd.f32 %v2737_v43, %v2166_v1 }
 0x1b4   : > { %v2210_v50 = vmax.f32 %v2736_v46, 0.0  ;;  %v2740_v51 = vadd.f32 %v2739_v47, %v2168_v5 }
 0x1b5   : > { %2233 = vst [vmem:[%s4041_s12 + $0x40] sm:$0xff] %v2209_v48  ;;  %v2211_v52 = vmax.f32 %v2738_v49, 0.0 }
 0x1b6   : > { %2234 = vst [vmem:[%s4041_s12 + $0x48] sm:$0xff] %v2210_v50  ;;  %v2212_v53 = vmax.f32 %v2740_v51, 0.0  ;;  %v1893_v54 = vpop.f32.mrb[12].mxu1 }
 0x1b7   : > { %v2192_v55 = vpop.f32.mrb[20].mxu0  ;;  %2235 = vst [vmem:[%s4041_s12 + $0x50] sm:$0xff] %v2211_v52  ;;  %v2741_v58 = vadd.f32 %v1893_v54, %v4033_v56  ;;  %v1895_v59 = vpop.f32.mrb[13].mxu1 }
 0x1b8   : > { %v2194_v60 = vpop.f32.mrb[21].mxu0  ;;  %2236 = vst [vmem:[%s4041_s12 + $0x58] sm:$0xff] %v2212_v53  ;;  %v2743_v61 = vadd.f32 %v1895_v59, %v4035_v57  ;;  %v1897_v62 = vpop.f32.mrb[14].mxu1 }
 0x1b9   : > { %v2196_v63 = vpop.f32.mrb[22].mxu0  ;;  %v2742_v0 = vadd.f32 %v2741_v58, %v2172_v15  ;;  %v2745_v1 = vadd.f32 %v1897_v62, %v4033_v56  ;;  %v1899_v2 = vpop.f32.mrb[15].mxu1 }
 0x1ba   : > { %v2198_v3 = vpop.f32.mrb[23].mxu0  ;;  %v2744_v4 = vadd.f32 %v2743_v61, %v2174_v18  ;;  %v2747_v5 = vadd.f32 %v1899_v2, %v4035_v57 }
 0x1bb   : > { %v2213_v6 = vmax.f32 %v2742_v0, 0.0  ;;  %v2746_v7 = vadd.f32 %v2745_v1, %v2176_v21 }
 0x1bc   : > { %v2214_v8 = vmax.f32 %v2744_v4, 0.0  ;;  %v2748_v9 = vadd.f32 %v2747_v5, %v2178_v25 }
 0x1bd   : > { %2237 = vst [vmem:[%s4041_s12 + $0x60] sm:$0xff] %v2213_v6  ;;  %v2215_v10 = vmax.f32 %v2746_v7, 0.0 }
 0x1be   : > { %2238 = vst [vmem:[%s4041_s12 + $0x68] sm:$0xff] %v2214_v8  ;;  %v2216_v11 = vmax.f32 %v2748_v9, 0.0  ;;  %v1903_v12 = vpop.f32.mrb[16].mxu1 }
 0x1bf   : > { %2239 = vst [vmem:[%s4041_s12 + $0x70] sm:$0xff] %v2215_v10  ;;  %v2749_v13 = vadd.f32 %v1903_v12, %v4033_v56  ;;  %v1905_v14 = vpop.f32.mrb[17].mxu1 }
 0x1c0   : > { %2240 = vst [vmem:[%s4041_s12 + $0x78] sm:$0xff] %v2216_v11  ;;  %v2751_v15 = vadd.f32 %v1905_v14, %v4035_v57  ;;  %v1907_v16 = vpop.f32.mrb[18].mxu1 }
 0x1c1   : > { %v2750_v17 = vadd.f32 %v2749_v13, %v2182_v35  ;;  %v2753_v18 = vadd.f32 %v1907_v16, %v4033_v56  ;;  %v1909_v19 = vpop.f32.mrb[19].mxu1 }
 0x1c2   : > { %v2752_v20 = vadd.f32 %v2751_v15, %v2184_v38  ;;  %v2755_v21 = vadd.f32 %v1909_v19, %v4035_v57 }
 0x1c3   : > { %v2217_v22 = vmax.f32 %v2750_v17, 0.0  ;;  %v2754_v23 = vadd.f32 %v2753_v18, %v2186_v41 }
 0x1c4   : > { %v2218_v24 = vmax.f32 %v2752_v20, 0.0  ;;  %v2756_v25 = vadd.f32 %v2755_v21, %v2188_v45 }
 0x1c5   : > { %2241 = vst [vmem:[%s4041_s12 + $0x80] sm:$0xff] %v2217_v22  ;;  %v2219_v26 = vmax.f32 %v2754_v23, 0.0 }
 0x1c6   : > { %2242 = vst [vmem:[%s4041_s12 + $0x88] sm:$0xff] %v2218_v24  ;;  %v2220_v27 = vmax.f32 %v2756_v25, 0.0  ;;  %v1913_v28 = vpop.f32.mrb[20].mxu1 }
 0x1c7   : > { %2243 = vst [vmem:[%s4041_s12 + $0x90] sm:$0xff] %v2219_v26  ;;  %v2757_v29 = vadd.f32 %v1913_v28, %v4033_v56  ;;  %v1915_v30 = vpop.f32.mrb[21].mxu1 }
 0x1c8   : > { %2244 = vst [vmem:[%s4041_s12 + $0x98] sm:$0xff] %v2220_v27  ;;  %v2759_v31 = vadd.f32 %v1915_v30, %v4035_v57  ;;  %v1917_v32 = vpop.f32.mrb[22].mxu1 }
 0x1c9   : > { %v2758_v33 = vadd.f32 %v2757_v29, %v2192_v55  ;;  %v2761_v34 = vadd.f32 %v1917_v32, %v4033_v56  ;;  %v1919_v35 = vpop.f32.mrb[23].mxu1 }
 0x1ca   : > { %v2760_v36 = vadd.f32 %v2759_v31, %v2194_v60  ;;  %v2763_v37 = vadd.f32 %v1919_v35, %v4035_v57  ;;  %2255 = sbr.rel (!%p3439_p4) target bundleno = 529 (0x211), region = 36 }
 0x1cb   : > { %v2221_v38 = vmax.f32 %v2758_v33, 0.0  ;;  %v2762_v39 = vadd.f32 %v2761_v34, %v2196_v63 }
 0x1cc   : > { %v2222_v40 = vmax.f32 %v2760_v36, 0.0  ;;  %v2764_v41 = vadd.f32 %v2763_v37, %v2198_v3 }
 0x1cd   : > { %2245 = vst [vmem:[%s4041_s12 + $0xa0] sm:$0xff] %v2221_v38  ;;  %v2223_v42 = vmax.f32 %v2762_v39, 0.0 }
 0x1ce   : > { %2246 = vst [vmem:[%s4041_s12 + $0xa8] sm:$0xff] %v2222_v40  ;;  %v2224_v43 = vmax.f32 %v2764_v41, 0.0 }
 0x1cf   : > { %2247 = vst [vmem:[%s4041_s12 + $0xb0] sm:$0xff] %v2223_v42 }
 0x1d0   : > { %2248 = vst [vmem:[%s4041_s12 + $0xb8] sm:$0xff] %v2224_v43 }
 0x1d1   : > { %s4223_s9 = smov (!%p2258_p8, %s2257_s9), 12 }
 0x1d2   : > { %s2713_s21 = sshll.u32 %s4223_s9, 8 }
 0x1d3   : > { %p2704_p9 = scmp.eq.s32.totalorder %s2713_s21, 0 }
 0x1d4   : > { %3301 = sdivrem.u32 (!%p2704_p9), %s4223_s9, 12 }
 0x1d5   : > { %2268 = sbr.rel (%p2704_p9) target bundleno = 529 (0x211), region = 40 }
 0x1dd   : > { %s4100_s20 = spop.drf %3301 }
 0x1de   : > { %p2705_p10 = scmp.le.s32.totalorder %s4100_s20, 0 }
 0x1df   : > { %s4215_s15 = smov (!%p2705_p10), %s4094_s18  ;;  %s4216_s10 = smov (!%p2705_p10), %s4041_s12 }
 0x1e0   : > { %2410 = sbr.rel (%p2705_p10) target bundleno = 500 (0x1f4), region = 88  ;;  %s4109_s22 = smov (!%p2705_p10), 0  }
 0x1e1   : > { %s4111_s23 = smov (!%p2705_p10), 0  }
 0x1e7 LB: >> { %v2282_v56 = vld [vmem:[%s3367_s10] sm:$0xff]  ;;  %v2284_v57 = vld [vmem:[%s3367_s10 + $0x10] sm:$0xff]  ;;  %s2330_s24 = sadd.s32 1, %s3371_s22  ;;  %v2306_v54 = vld [vmem:[%s3367_s10 + $0x8] sm:$0xff]  ;;  %s2276_s23 = sadd.s32 1, %s3375_s23   ;;  %s3375_s23 = sphi %s4111_s23, %s2276_s23   ;;  %s3371_s22 = sphi %s4109_s22, %s4218_s22   ;;  %s3367_s10 = sphi %s4216_s10, %s2335_s10   ;;  %s3363_s15 = sphi %s4215_s15, %s4217_s15  }
 0x1e8   : >> { %v2286_v44 = vld [vmem:[%s3367_s10 + $0x20] sm:$0xff]  ;;  %2283 = vst [vmem:[%s3363_s15] sm:$0xff] %v2282_v56  ;;  %2285 = vst [vmem:[%s3363_s15 + $0x10] sm:$0xff] %v2284_v57  ;;  %v2288_v45 = vld [vmem:[%s3367_s10 + $0x30] sm:$0xff]  ;;  %p2331_p11 = scmp.ge.s32.totalorder %s2330_s24, %s4100_s20  ;;  %p2275_p12 = scmp.ge.s32.totalorder %s2276_s23, %s4100_s20 }
 0x1e9   : >> { %2287 = vst [vmem:[%s3363_s15 + $0x20] sm:$0xff] %v2286_v44  ;;  %v2290_v46 = vld [vmem:[%s3367_s10 + $0x40] sm:$0xff]  ;;  %v2292_v47 = vld [vmem:[%s3367_s10 + $0x50] sm:$0xff]  ;;  %2289 = vst [vmem:[%s3363_s15 + $0x30] sm:$0xff] %v2288_v45 }
 0x1ea   : >> { %2291 = vst [vmem:[%s3363_s15 + $0x40] sm:$0xff] %v2290_v46  ;;  %2293 = vst [vmem:[%s3363_s15 + $0x50] sm:$0xff] %v2292_v47  ;;  %v2294_v48 = vld [vmem:[%s3367_s10 + $0x60] sm:$0xff]  ;;  %v2296_v49 = vld [vmem:[%s3367_s10 + $0x70] sm:$0xff]  ;;  %s4225_s24 = smov (%p2331_p11, %s2330_s24), 0 }
 0x1eb   : >> { %v2298_v50 = vld [vmem:[%s3367_s10 + $0x80] sm:$0xff]  ;;  %2295 = vst [vmem:[%s3363_s15 + $0x60] sm:$0xff] %v2294_v48  ;;  %2297 = vst [vmem:[%s3363_s15 + $0x70] sm:$0xff] %v2296_v49  ;;  %v2300_v51 = vld [vmem:[%s3367_s10 + $0x90] sm:$0xff]  ;;  %s2333_s25 = smul.u32 192, %s4225_s24  ;;  %s4218_s22 = smov %s4225_s24 }
 0x1ec   : >> { %2299 = vst [vmem:[%s3363_s15 + $0x80] sm:$0xff] %v2298_v50  ;;  %v2302_v52 = vld [vmem:[%s3367_s10 + $0xa0] sm:$0xff]  ;;  %v2304_v53 = vld [vmem:[%s3367_s10 + $0xb0] sm:$0xff]  ;;  %2301 = vst [vmem:[%s3363_s15 + $0x90] sm:$0xff] %v2300_v51 }
 0x1ed   : >> { %2303 = vst [vmem:[%s3363_s15 + $0xa0] sm:$0xff] %v2302_v52  ;;  %2305 = vst [vmem:[%s3363_s15 + $0xb0] sm:$0xff] %v2304_v53  ;;  %v2308_v55 = vld [vmem:[%s3367_s10 + $0x18] sm:$0xff]  ;;  %v2310_v58 = vld [vmem:[%s3367_s10 + $0x28] sm:$0xff]  ;;  %s2336_s26 = scalar_lea.vmem %s4094_s18, %s2333_s25   ;;  %2278 = sbr.rel (!%p2275_p12) target bundleno = 487 (0x1e7), region = 94 }
 0x1ee   : >> { %2307 = vst [vmem:[%s3363_s15 + $0x8] sm:$0xff] %v2306_v54  ;;  %2309 = vst [vmem:[%s3363_s15 + $0x18] sm:$0xff] %v2308_v55  ;;  %v2312_v59 = vld [vmem:[%s3367_s10 + $0x38] sm:$0xff]  ;;  %v2314_v60 = vld [vmem:[%s3367_s10 + $0x48] sm:$0xff] }
 0x1ef   : >> { %2311 = vst [vmem:[%s3363_s15 + $0x28] sm:$0xff] %v2310_v58  ;;  %v2316_v61 = vld [vmem:[%s3367_s10 + $0x58] sm:$0xff]  ;;  %2313 = vst [vmem:[%s3363_s15 + $0x38] sm:$0xff] %v2312_v59  ;;  %v2318_v62 = vld [vmem:[%s3367_s10 + $0x68] sm:$0xff] }
 0x1f0   : >> { %2315 = vst [vmem:[%s3363_s15 + $0x48] sm:$0xff] %v2314_v60  ;;  %2317 = vst [vmem:[%s3363_s15 + $0x58] sm:$0xff] %v2316_v61  ;;  %v2320_v63 = vld [vmem:[%s3367_s10 + $0x78] sm:$0xff]  ;;  %v2322_v0 = vld [vmem:[%s3367_s10 + $0x88] sm:$0xff] }
 0x1f1   : >> { %2319 = vst [vmem:[%s3363_s15 + $0x68] sm:$0xff] %v2318_v62  ;;  %2321 = vst [vmem:[%s3363_s15 + $0x78] sm:$0xff] %v2320_v63  ;;  %v2324_v1 = vld [vmem:[%s3367_s10 + $0x98] sm:$0xff]  ;;  %v2326_v2 = vld [vmem:[%s3367_s10 + $0xa8] sm:$0xff] }
 0x1f2   : >> { %2323 = vst [vmem:[%s3363_s15 + $0x88] sm:$0xff] %v2322_v0  ;;  %v2328_v3 = vld [vmem:[%s3367_s10 + $0xb8] sm:$0xff]  ;;  %s2335_s10 = scalar_lea.vmem %s4041_s12, %s2333_s25 [#allocation2]   ;;  %2325 = vst [vmem:[%s3363_s15 + $0x98] sm:$0xff] %v2324_v1 }
 0x1f3   : >> { %2327 = vst [vmem:[%s3363_s15 + $0xa8] sm:$0xff] %v2326_v2  ;;  %2329 = vst [vmem:[%s3363_s15 + $0xb8] sm:$0xff] %v2328_v3  ;;  %s4217_s15 = smov %s2336_s26 }
 0x1f4 PF: > { %3303 = sdivrem.u32 %s4223_s9, 12 }
 0x1f5   : > { %s2706_s27 = smul.u32 192, %s4100_s20 }
 0x1f7   : > { %s4191_s28 = scalar_lea.vmem %s4041_s12, %s2706_s27 [#allocation2]   ;;  %s4194_s29 = scalar_lea.vmem %s4094_s18, %s2706_s27  }
 0x1fd   : > { %s3304_s30 = spop.drf %3303 }
 0x1fe   : > { %p2708_p13 = scmp.le.s32.totalorder %s3304_s30, 0 }
 0x1ff   : > { %s3377_s4 = smov (!%p2708_p13), %s4194_s29   ;;  %s3381_s5 = smov (!%p2708_p13), %s4191_s28  }
 0x200   : > { %2424 = sbr.rel (%p2708_p13) target bundleno = 529 (0x211), region = 99  ;;  %s3385_s7 = smov (!%p2708_p13), 0  }
 0x201   : > { %s3389_s8 = smov (!%p2708_p13), 0  }
 0x207 LB: >> { %v2353_v4 = vld [vmem:[%s3383_s5] sm:$0xff]  ;;  %v2355_v5 = vld [vmem:[%s3383_s5 + $0x8] sm:$0xff]  ;;  %s2357_s6 = sadd.s32 1, %s3387_s7  ;;  %s2347_s8 = sadd.s32 1, %s3391_s8   ;;  %s3391_s8 = sphi %s3389_s8, %s2347_s8   ;;  %s3387_s7 = sphi %s3385_s7, %s3386_s7   ;;  %s3383_s5 = sphi %s3381_s5, %s2362_s5   ;;  %s3379_s4 = sphi %s3377_s4, %s2363_s4  }
 0x208   : >> { %2354 = vst [vmem:[%s3379_s4] sm:$0xff] %v2353_v4  ;;  %2356 = vst [vmem:[%s3379_s4 + $0x8] sm:$0xff] %v2355_v5  ;;  %p2358_p0 = scmp.ge.s32.totalorder %s2357_s6, %s3304_s30  ;;  %p2346_p1 = scmp.ge.s32.totalorder %s2347_s8, %s3304_s30 }
 0x20a   : >> { %s4227_s6 = smov (%p2358_p0, %s2357_s6), 0  ;;  %2349 = sbr.rel (!%p2346_p1) target bundleno = 519 (0x207), region = 105 }
 0x20b   : >> { %s2709_s12 = sshll.u32 %s4227_s6, 4  ;;  %s3386_s7 = smov %s4227_s6  }
 0x20c   : >> { %s2362_s5 = scalar_lea.vmem %s4191_s28, %s2709_s12 [#allocation2]   ;;  %s2363_s4 = scalar_lea.vmem %s4194_s29, %s2709_s12  }
 0x211 PF: > { %p10_p2 = scmp.ge.s32.totalorder %s3429_s16, 4   ;;  %s4219_s12 = smov %s3355_s13 }
 0x212   : > { %s4220_s13 = smov %s3437_s19  ;;  %s4221_s14 = smov %s3429_s16 }
 0x213   :  { %12 = sbr.rel (!%p10_p2) target bundleno = 2 (0x2), region = 116 }

// kernel: inception_d_forward.11
= control target key start
LH: loop header
LB: loop body
LE: loop exit
PB: predicated region body
PF: predicated region fallthrough
CT: control target
= control target key end

     0   :  { %s2596_s12 = smov 0   ;;  %s3286_s0 = inlined_call_operand.vmem [shape: bf16[32,1728], index: 0, kind: input, shape index: {}]   ;;  %s3287_s1 = inlined_call_operand.vmem [shape: bf16[1728,256], index: 1, kind: input, shape index: {}]   ;;  %s3288_s2 = inlined_call_operand.vmem [shape: f32[1,256], index: 2, kind: input, shape index: {}]   ;;  %s3289_s3 = inlined_call_operand.vmem [shape: f32[32,256], index: 3, kind: output, shape index: {}]  }
   0x1 LB: > { %s1942_s13 = sadd.s32 4294967295, %s2574_s12   ;;  %p1946_p0 = scmp.ge.s32.totalorder %s2574_s12, 1  ;;  %s2574_s12 = sphi %s2596_s12, %s13_s12  }
   0x2   : > { %p139_p1 = scmp.lt.s32.totalorder %s2574_s12, 3 }
   0x4   : > { %p140_p2 = pnand %p1946_p0, %p139_p1 }
   0x5   : > { %v2223_v0 = vld [vmem:[%s3287_s1 + $0x4] ss:$8 sps:$4 sm:$0xff] (!%p140_p2)   ;;  %v2227_v2 = vld [vmem:[%s3287_s1] ss:$8 sps:$4 sm:$0xff] (!%p140_p2)   ;;  %v2229_v4 = vld [vmem:[%s3287_s1 + $0x14] ss:$8 sps:$4 sm:$0xff] (!%p140_p2)  }
   0x6   : > { %143 = sbr.rel (%p140_p2) target bundleno = 467 (0x1d3), region = 32  ;;  %v2225_v1 = vld [vmem:[%s3287_s1 + $0x304] ss:$8 sps:$4 sm:$0xff] (!%p140_p2)   ;;  %1575 = vmatprep.subr.bf16.mxu1 (!%p140_p2), %v2223_v0  ;;  %v2228_v3 = vld [vmem:[%s3287_s1 + $0x300] ss:$8 sps:$4 sm:$0xff] (!%p140_p2)   ;;  %s1947_s24 = sshll.u32 (!%p140_p2), %s1942_s13, 1 }
   0x7   : > { %1704 = vmatprep.subr.bf16.mxu0 (!%p140_p2), %v2225_v1  ;;  %1576 = vmatpush1.bf16.msra.mxu1 (!%p140_p2), %v2227_v2  ;;  %v2231_v5 = vld [vmem:[%s3287_s1 + $0x314] ss:$8 sps:$4 sm:$0xff] (!%p140_p2)   ;;  %v2233_v6 = vld [vmem:[%s3287_s1 + $0x10] ss:$8 sps:$4 sm:$0xff] (!%p140_p2)   ;;  %v2235_v8 = vld [vmem:[%s3287_s1 + $0x24] ss:$8 sps:$4 sm:$0xff] (!%p140_p2)  }
   0x8   : > { %1705 = vmatpush1.bf16.msra.mxu0 (!%p140_p2), %v2228_v3  ;;  %1577 = vmatprep.subr.bf16.mxu1 (!%p140_p2), %v2229_v4  ;;  %v2234_v7 = vld [vmem:[%s3287_s1 + $0x310] ss:$8 sps:$4 sm:$0xff] (!%p140_p2)   ;;  %v2237_v9 = vld [vmem:[%s3287_s1 + $0x324] ss:$8 sps:$4 sm:$0xff] (!%p140_p2)   ;;  %v2239_v10 = vld [vmem:[%s3287_s1 + $0x20] ss:$8 sps:$4 sm:$0xff] (!%p140_p2)  }
   0x9   : > { %1706 = vmatprep.subr.bf16.mxu0 (!%p140_p2), %v2231_v5  ;;  %v2240_v11 = vld [vmem:[%s3287_s1 + $0x320] ss:$8 sps:$4 sm:$0xff] (!%p140_p2)   ;;  %v2241_v12 = vld [vmem:[%s3287_s1 + $0x34] ss:$8 sps:$4 sm:$0xff] (!%p140_p2)   ;;  %v2245_v14 = vld [vmem:[%s3287_s1 + $0x30] ss:$8 sps:$4 sm:$0xff] (!%p140_p2)  }
   0xa   : > { %v2243_v13 = vld [vmem:[%s3287_s1 + $0x334] ss:$8 sps:$4 sm:$0xff] (!%p140_p2)   ;;  %v2246_v15 = vld [vmem:[%s3287_s1 + $0x330] ss:$8 sps:$4 sm:$0xff] (!%p140_p2)   ;;  %v2247_v16 = vld [vmem:[%s3287_s1 + $0x44] ss:$8 sps:$4 sm:$0xff] (!%p140_p2)  }
   0xb   : > { %1578 = vmatpush1.bf16.msra.mxu1 (!%p140_p2), %v2233_v6  ;;  %v2249_v17 = vld [vmem:[%s3287_s1 + $0x344] ss:$8 sps:$4 sm:$0xff] (!%p140_p2)   ;;  %v2251_v18 = vld [vmem:[%s3287_s1 + $0x40] ss:$8 sps:$4 sm:$0xff] (!%p140_p2)   ;;  %v2253_v20 = vld [vmem:[%s3287_s1 + $0x54] ss:$8 sps:$4 sm:$0xff] (!%p140_p2)  }
   0xc   : > { %1707 = vmatpush1.bf16.msra.mxu0 (!%p140_p2), %v2234_v7  ;;  %1579 = vmatprep.subr.bf16.mxu1 (!%p140_p2), %v2235_v8  ;;  %v2252_v19 = vld [vmem:[%s3287_s1 + $0x340] ss:$8 sps:$4 sm:$0xff] (!%p140_p2)   ;;  %v2255_v21 = vld [vmem:[%s3287_s1 + $0x354] ss:$8 sps:$4 sm:$0xff] (!%p140_p2)   ;;  %v2257_v22 = vld [vmem:[%s3287_s1 + $0x50] ss:$8 sps:$4 sm:$0xff] (!%p140_p2)  }
   0xd   : > { %1708 = vmatprep.subr.bf16.mxu0 %v2237_v9  ;;  %v2258_v23 = vld [vmem:[%s3287_s1 + $0x350] ss:$8 sps:$4 sm:$0xff]   ;;  %v2259_v24 = vld [vmem:[%s3287_s1 + $0x64] ss:$8 sps:$4 sm:$0xff]   ;;  %v2263_v26 = vld [vmem:[%s3287_s1 + $0x60] ss:$8 sps:$4 sm:$0xff]  }
   0xe   : > { %v2261_v25 = vld [vmem:[%s3287_s1 + $0x364] ss:$8 sps:$4 sm:$0xff]   ;;  %v2264_v27 = vld [vmem:[%s3287_s1 + $0x360] ss:$8 sps:$4 sm:$0xff]   ;;  %v2265_v28 = vld [vmem:[%s3287_s1 + $0x74] ss:$8 sps:$4 sm:$0xff]  }
   0xf   : > { %1580 = vmatpush1.bf16.msra.mxu1 %v2239_v10  ;;  %v2267_v29 = vld [vmem:[%s3287_s1 + $0x374] ss:$8 sps:$4 sm:$0xff]   ;;  %v2269_v30 = vld [vmem:[%s3287_s1 + $0x70] ss:$8 sps:$4 sm:$0xff]   ;;  %v2271_v32 = vld [vmem:[%s3287_s1 + $0x84] ss:$8 sps:$4 sm:$0xff]  }
  0x10   : > { %1709 = vmatpush1.bf16.msra.mxu0 %v2240_v11  ;;  %1581 = vmatprep.subr.bf16.mxu1 %v2241_v12  ;;  %v2270_v31 = vld [vmem:[%s3287_s1 + $0x370] ss:$8 sps:$4 sm:$0xff]   ;;  %p166_p3 = scmp.lt.s32.totalorder %s1947_s24, 3  ;;  %v2273_v33 = vld [vmem:[%s3287_s1 + $0x384] ss:$8 sps:$4 sm:$0xff]   ;;  %vm1571_vm0 = vcmask 523264  }
  0x11   : > { %1710 = vmatprep.subr.bf16.mxu0 %v2243_v13  ;;  %v2275_v34 = vld [vmem:[%s3287_s1 + $0x80] ss:$8 sps:$4 sm:$0xff]   ;;  %v2277_v36 = vld [vmem:[%s3287_s1 + $0x94] ss:$8 sps:$4 sm:$0xff]   ;;  %v2281_v38 = vld [vmem:[%s3287_s1 + $0x90] ss:$8 sps:$4 sm:$0xff]  }
  0x12   : > { %v2276_v35 = vld [vmem:[%s3287_s1 + $0x380] ss:$8 sps:$4 sm:$0xff]   ;;  %s3291_s24 = smov (!%p166_p3, %s1947_s24), 3  ;;  %v2279_v37 = vld [vmem:[%s3287_s1 + $0x394] ss:$8 sps:$4 sm:$0xff]  }
  0x13   : > { %1582 = vmatpush1.bf16.msra.mxu1 %v2245_v14  ;;  %v2282_v39 = vld [vmem:[%s3287_s1 + $0x390] ss:$8 sps:$4 sm:$0xff]   ;;  %v2283_v40 = vld [vmem:[%s3287_s1 + $0xa4] ss:$8 sps:$4 sm:$0xff]   ;;  %s2214_s21 = smul.u32 56, %s3291_s24  ;;  %s2185_s16 = sshll.u32 %s3291_s24, 4 }
  0x14   : > { %1711 = vmatpush1.bf16.msra.mxu0 %v2246_v15  ;;  %1583 = vmatprep.subr.bf16.mxu1 %v2247_v16  ;;  %v2285_v41 = vld [vmem:[%s3287_s1 + $0x3a4] ss:$8 sps:$4 sm:$0xff]   ;;  %v2287_v42 = vld [vmem:[%s3287_s1 + $0xa0] ss:$8 sps:$4 sm:$0xff]   ;;  %v2289_v44 = vld [vmem:[%s3287_s1 + $0xb4] ss:$8 sps:$4 sm:$0xff]   ;;  %s177_s18 = scalar_lea.vmem %s3289_s3, %s2185_s16 }
  0x15   : > { %1712 = vmatprep.subr.bf16.mxu0 %v2249_v17  ;;  %v2288_v43 = vld [vmem:[%s3287_s1 + $0x3a0] ss:$8 sps:$4 sm:$0xff]   ;;  %s2747_s13 = scalar_lea.vmem %s3286_s0, %s2214_s21  ;;  %v2291_v45 = vld [vmem:[%s3287_s1 + $0x3b4] ss:$8 sps:$4 sm:$0xff]   ;;  %v2293_v46 = vld [vmem:[%s3287_s1 + $0xb0] ss:$8 sps:$4 sm:$0xff]  }
  0x16   : > { %v2294_v47 = vld [vmem:[%s3287_s1 + $0x3b0] ss:$8 sps:$4 sm:$0xff]   ;;  %v2321_v48 = vld [vmem:[%s2747_s13 + $0x4] ss:$56 sps:$4 sm:$0xff]   ;;  %v2299_v52 = vld [vmem:[%s3287_s1 + $0xc0] ss:$8 sps:$4 sm:$0xff]  }
  0x17   : > { %1584 = vmatpush1.bf16.msra.mxu1 %v2251_v18  ;;  %v2295_v49 = vld [vmem:[%s3287_s1 + $0xc4] ss:$8 sps:$4 sm:$0xff]   ;;  %1607 = vmatprep.mubr.bf16.mxu1 %v2321_v48  ;;  %v2327_v51 = vld [vmem:[%s2747_s13 + $0x1c] ss:$56 sps:$4 sm:$0xff]   ;;  %v2300_v53 = vld [vmem:[%s3287_s1 + $0x3c0] ss:$8 sps:$4 sm:$0xff]  }
  0x18   : > { %1713 = vmatpush1.bf16.msra.mxu0 %v2252_v19  ;;  %1585 = vmatprep.subr.bf16.mxu1 %v2253_v20  ;;  %v2297_v50 = vld [vmem:[%s3287_s1 + $0x3c4] ss:$8 sps:$4 sm:$0xff]   ;;  %v2301_v54 = vld [vmem:[%s3287_s1 + $0xd4] ss:$8 sps:$4 sm:$0xff]   ;;  %v2305_v56 = vld [vmem:[%s3287_s1 + $0xd0] ss:$8 sps:$4 sm:$0xff]  }
  0x19   : > { %1714 = vmatprep.subr.bf16.mxu0 %v2255_v21  ;;  %v2303_v55 = vld [vmem:[%s3287_s1 + $0x3d4] ss:$8 sps:$4 sm:$0xff]   ;;  %1736 = vmatprep.mubr.bf16.mxu0 %v2327_v51  ;;  %v2306_v57 = vld [vmem:[%s3287_s1 + $0x3d0] ss:$8 sps:$4 sm:$0xff]   ;;  %v2307_v58 = vld [vmem:[%s3287_s1 + $0xe4] ss:$8 sps:$4 sm:$0xff]  }
  0x1a   : > { %v2309_v59 = vld [vmem:[%s3287_s1 + $0x3e4] ss:$8 sps:$4 sm:$0xff]   ;;  %v2311_v60 = vld [vmem:[%s3287_s1 + $0xe0] ss:$8 sps:$4 sm:$0xff]   ;;  %v2313_v62 = vld [vmem:[%s3287_s1 + $0xf4] ss:$8 sps:$4 sm:$0xff]  }
  0x1b   : > { %1586 = vmatpush1.bf16.msra.mxu1 %v2257_v22  ;;  %v2312_v61 = vld [vmem:[%s3287_s1 + $0x3e0] ss:$8 sps:$4 sm:$0xff]   ;;  %v2315_v63 = vld [vmem:[%s3287_s1 + $0x3f4] ss:$8 sps:$4 sm:$0xff]   ;;  %v2317_v0 = vld [vmem:[%s3287_s1 + $0xf0] ss:$8 sps:$4 sm:$0xff]  }
  0x1c   : > { %1715 = vmatpush1.bf16.msra.mxu0 %v2258_v23  ;;  %1587 = vmatprep.subr.bf16.mxu1 %v2259_v24  ;;  %v2318_v1 = vld [vmem:[%s3287_s1 + $0x3f0] ss:$8 sps:$4 sm:$0xff]   ;;  %v2324_v2 = vld [vmem:[%s3287_s1 + $0x104] ss:$8 sps:$4 sm:$0xff]   ;;  %v2322_v5 = vld [vmem:[%s3287_s1 + $0x100] ss:$8 sps:$4 sm:$0xff]  }
  0x1d   : > { %1716 = vmatprep.subr.bf16.mxu0 %v2261_v25  ;;  %v2330_v3 = vld [vmem:[%s3287_s1 + $0x404] ss:$8 sps:$4 sm:$0xff]   ;;  %v2319_v4 = vld [vmem:[%s2747_s13] ss:$56 sps:$4 sm:$0xff]   ;;  %v2333_v8 = vld [vmem:[%s3287_s1 + $0x114] ss:$8 sps:$4 sm:$0xff]  }
  0x1e   : > { %v2325_v6 = vld [vmem:[%s2747_s13 + $0x18] ss:$56 sps:$4 sm:$0xff]   ;;  %v2328_v7 = vld [vmem:[%s3287_s1 + $0x400] ss:$8 sps:$4 sm:$0xff]   ;;  %v2336_v9 = vld [vmem:[%s3287_s1 + $0x414] ss:$8 sps:$4 sm:$0xff]  }
  0x1f   : > { %1588 = vmatpush1.bf16.msra.mxu1 %v2263_v26  ;;  %v2331_v10 = vld [vmem:[%s3287_s1 + $0x110] ss:$8 sps:$4 sm:$0xff]   ;;  %v2339_v12 = vld [vmem:[%s3287_s1 + $0x124] ss:$8 sps:$4 sm:$0xff]   ;;  %v2337_v14 = vld [vmem:[%s3287_s1 + $0x120] ss:$8 sps:$4 sm:$0xff]  }
  0x20   : > { %1717 = vmatpush1.bf16.msra.mxu0 %v2264_v27  ;;  %1589 = vmatprep.subr.bf16.mxu1 %v2265_v28  ;;  %v2334_v11 = vld [vmem:[%s3287_s1 + $0x410] ss:$8 sps:$4 sm:$0xff]   ;;  %v2342_v13 = vld [vmem:[%s3287_s1 + $0x424] ss:$8 sps:$4 sm:$0xff]   ;;  %v2340_v15 = vld [vmem:[%s3287_s1 + $0x420] ss:$8 sps:$4 sm:$0xff]  }
  0x21   : > { %1718 = vmatprep.subr.bf16.mxu0 %v2267_v29  ;;  %v2345_v16 = vld [vmem:[%s3287_s1 + $0x134] ss:$8 sps:$4 sm:$0xff]   ;;  %v2343_v18 = vld [vmem:[%s3287_s1 + $0x130] ss:$8 sps:$4 sm:$0xff]   ;;  %v2351_v20 = vld [vmem:[%s3287_s1 + $0x144] ss:$8 sps:$4 sm:$0xff]  }
  0x22   : > { %v2348_v17 = vld [vmem:[%s3287_s1 + $0x434] ss:$8 sps:$4 sm:$0xff]   ;;  %v2346_v19 = vld [vmem:[%s3287_s1 + $0x430] ss:$8 sps:$4 sm:$0xff]   ;;  %v2354_v21 = vld [vmem:[%s3287_s1 + $0x444] ss:$8 sps:$4 sm:$0xff]  }
  0x23   : > { %1590 = vmatpush1.bf16.msra.mxu1 %v2269_v30  ;;  %v2349_v22 = vld [vmem:[%s3287_s1 + $0x140] ss:$8 sps:$4 sm:$0xff]   ;;  %v2357_v24 = vld [vmem:[%s3287_s1 + $0x154] ss:$8 sps:$4 sm:$0xff]   ;;  %v2355_v26 = vld [vmem:[%s3287_s1 + $0x150] ss:$8 sps:$4 sm:$0xff]  }
  0x24   : > { %1719 = vmatpush1.bf16.msra.mxu0 %v2270_v31  ;;  %1591 = vmatprep.subr.bf16.mxu1 %v2271_v32  ;;  %v2352_v23 = vld [vmem:[%s3287_s1 + $0x440] ss:$8 sps:$4 sm:$0xff]   ;;  %v2360_v25 = vld [vmem:[%s3287_s1 + $0x454] ss:$8 sps:$4 sm:$0xff]   ;;  %v2358_v27 = vld [vmem:[%s3287_s1 + $0x450] ss:$8 sps:$4 sm:$0xff]  }
  0x25   : > { %1720 = vmatprep.subr.bf16.mxu0 %v2273_v33  ;;  %v2363_v28 = vld [vmem:[%s3287_s1 + $0x164] ss:$8 sps:$4 sm:$0xff]   ;;  %v2361_v30 = vld [vmem:[%s3287_s1 + $0x160] ss:$8 sps:$4 sm:$0xff]   ;;  %v2369_v32 = vld [vmem:[%s3287_s1 + $0x174] ss:$8 sps:$4 sm:$0xff]  }
  0x26   : > { %v2366_v29 = vld [vmem:[%s3287_s1 + $0x464] ss:$8 sps:$4 sm:$0xff]   ;;  %v2364_v31 = vld [vmem:[%s3287_s1 + $0x460] ss:$8 sps:$4 sm:$0xff]   ;;  %v2372_v33 = vld [vmem:[%s3287_s1 + $0x474] ss:$8 sps:$4 sm:$0xff]  }
  0x27   : > { %1592 = vmatpush1.bf16.msra.mxu1 %v2275_v34  ;;  %v2423_v34 = vld [vmem:[%s2747_s13 + $0xc] ss:$56 sps:$4 sm:$0xff]   ;;  %v2385_v48 = vld [vmem:[%s3287_s1 + $0x1a0] ss:$8 sps:$4 sm:$0xff]   ;;  %v2396_v51 = vld [vmem:[%s3287_s1 + $0x4b4] ss:$8 sps:$4 sm:$0xff]  }
  0x28   : > { %1721 = vmatpush1.bf16.msra.mxu0 %v2276_v35  ;;  %1593 = vmatprep.subr.bf16.mxu1 %v2277_v36  ;;  %v2367_v35 = vld [vmem:[%s3287_s1 + $0x170] ss:$8 sps:$4 sm:$0xff]  }
  0x29   : > { %1722 = vmatprep.subr.bf16.mxu0 %v2279_v37  ;;  %v2370_v36 = vld [vmem:[%s3287_s1 + $0x470] ss:$8 sps:$4 sm:$0xff]   ;;  %v2429_v37 = vld [vmem:[%s2747_s13 + $0x24] ss:$56 sps:$4 sm:$0xff]  }
  0x2b   : > { %1594 = vmatpush1.bf16.msra.mxu1 %v2281_v38  ;;  %v2375_v38 = vld [vmem:[%s3287_s1 + $0x184] ss:$8 sps:$4 sm:$0xff]  }
  0x2c   : > { %1723 = vmatpush1.bf16.msra.mxu0 %v2282_v39  ;;  %1595 = vmatprep.subr.bf16.mxu1 %v2283_v40  ;;  %v2378_v39 = vld [vmem:[%s3287_s1 + $0x484] ss:$8 sps:$4 sm:$0xff]   ;;  %v2373_v40 = vld [vmem:[%s3287_s1 + $0x180] ss:$8 sps:$4 sm:$0xff]  }
  0x2d   : > { %1724 = vmatprep.subr.bf16.mxu0 %v2285_v41  ;;  %v2376_v41 = vld [vmem:[%s3287_s1 + $0x480] ss:$8 sps:$4 sm:$0xff]  }
  0x2f   : > { %1596 = vmatpush1.bf16.msra.mxu1 %v2287_v42  ;;  %v2381_v42 = vld [vmem:[%s3287_s1 + $0x194] ss:$8 sps:$4 sm:$0xff]  }
  0x30   : > { %1725 = vmatpush1.bf16.msra.mxu0 %v2288_v43  ;;  %1597 = vmatprep.subr.bf16.mxu1 %v2289_v44  ;;  %v2384_v43 = vld [vmem:[%s3287_s1 + $0x494] ss:$8 sps:$4 sm:$0xff]   ;;  %v2379_v44 = vld [vmem:[%s3287_s1 + $0x190] ss:$8 sps:$4 sm:$0xff]  }
  0x31   : > { %1726 = vmatprep.subr.bf16.mxu0 %v2291_v45  ;;  %v2382_v45 = vld [vmem:[%s3287_s1 + $0x490] ss:$8 sps:$4 sm:$0xff]  }
  0x33   : > { %1598 = vmatpush1.bf16.msra.mxu1 %v2293_v46  ;;  %v2387_v46 = vld [vmem:[%s3287_s1 + $0x1a4] ss:$8 sps:$4 sm:$0xff]  }
  0x34   : > { %1727 = vmatpush1.bf16.msra.mxu0 %v2294_v47  ;;  %1599 = vmatprep.subr.bf16.mxu1 %v2295_v49  ;;  %v2390_v47 = vld [vmem:[%s3287_s1 + $0x4a4] ss:$8 sps:$4 sm:$0xff]   ;;  %v2388_v49 = vld [vmem:[%s3287_s1 + $0x4a0] ss:$8 sps:$4 sm:$0xff]  }
  0x35   : > { %1728 = vmatprep.subr.bf16.mxu0 %v2297_v50  ;;  %v2393_v50 = vld [vmem:[%s3287_s1 + $0x1b4] ss:$8 sps:$4 sm:$0xff]  }
  0x37   : > { %1600 = vmatpush1.bf16.msra.mxu1 %v2299_v52  ;;  %v2391_v52 = vld [vmem:[%s3287_s1 + $0x1b0] ss:$8 sps:$4 sm:$0xff]  }
  0x38   : > { %1729 = vmatpush1.bf16.msra.mxu0 %v2300_v53  ;;  %1601 = vmatprep.subr.bf16.mxu1 %v2301_v54  ;;  %v2394_v53 = vld [vmem:[%s3287_s1 + $0x4b0] ss:$8 sps:$4 sm:$0xff]   ;;  %v2399_v54 = vld [vmem:[%s3287_s1 + $0x1c4] ss:$8 sps:$4 sm:$0xff]  }
  0x39   : > { %1730 = vmatprep.subr.bf16.mxu0 %v2303_v55  ;;  %v2402_v55 = vld [vmem:[%s3287_s1 + $0x4c4] ss:$8 sps:$4 sm:$0xff]  }
  0x3b   : > { %1602 = vmatpush1.bf16.msra.mxu1 %v2305_v56  ;;  %v2397_v56 = vld [vmem:[%s3287_s1 + $0x1c0] ss:$8 sps:$4 sm:$0xff]  }
  0x3c   : > { %1731 = vmatpush1.bf16.msra.mxu0 %v2306_v57  ;;  %1603 = vmatprep.subr.bf16.mxu1 %v2307_v58  ;;  %v2400_v57 = vld [vmem:[%s3287_s1 + $0x4c0] ss:$8 sps:$4 sm:$0xff]   ;;  %v2405_v58 = vld [vmem:[%s3287_s1 + $0x1d4] ss:$8 sps:$4 sm:$0xff]  }
  0x3d   : > { %1732 = vmatprep.subr.bf16.mxu0 %v2309_v59  ;;  %v2408_v59 = vld [vmem:[%s3287_s1 + $0x4d4] ss:$8 sps:$4 sm:$0xff]  }
  0x3f   : > { %1604 = vmatpush1.bf16.msra.mxu1 %v2311_v60  ;;  %v2403_v60 = vld [vmem:[%s3287_s1 + $0x1d0] ss:$8 sps:$4 sm:$0xff]  }
  0x40   : > { %1733 = vmatpush1.bf16.msra.mxu0 %v2312_v61  ;;  %1605 = vmatprep.subr.bf16.mxu1 %v2313_v62  ;;  %v2406_v61 = vld [vmem:[%s3287_s1 + $0x4d0] ss:$8 sps:$4 sm:$0xff]   ;;  %v2411_v62 = vld [vmem:[%s3287_s1 + $0x1e4] ss:$8 sps:$4 sm:$0xff]  }
  0x41   : > { %1734 = vmatprep.subr.bf16.mxu0 %v2315_v63  ;;  %v2414_v63 = vld [vmem:[%s3287_s1 + $0x4e4] ss:$8 sps:$4 sm:$0xff]  }
  0x43   : > { %1606 = vmatpush1.bf16.msra.mxu1 %v2317_v0  ;;  %v2409_v0 = vld [vmem:[%s3287_s1 + $0x1e0] ss:$8 sps:$4 sm:$0xff]  }
  0x44   : > { %1735 = vmatpush1.bf16.msra.mxu0 %v2318_v1  ;;  %1618 = vmatprep.subr.bf16.mxu1 %v2324_v2  ;;  %v2412_v1 = vld [vmem:[%s3287_s1 + $0x4e0] ss:$8 sps:$4 sm:$0xff]   ;;  %v2417_v2 = vld [vmem:[%s3287_s1 + $0x1f4] ss:$8 sps:$4 sm:$0xff]  }
  0x45   : > { %1747 = vmatprep.subr.bf16.mxu0 %v2330_v3  ;;  %v2420_v3 = vld [vmem:[%s3287_s1 + $0x4f4] ss:$8 sps:$4 sm:$0xff]  }
  0x46   : > { %1608 = vmatmul.mubr.bf16.vlgmr.msra.gmra.mrb[0].mxu1 %v2319_v4  ;;  %v2415_v4 = vld [vmem:[%s3287_s1 + $0x1f0] ss:$8 sps:$4 sm:$0xff]  }
  0x47   : > { %1737 = vmatmul.mubr.bf16.vlgmr.msra.gmra.mrb[0].mxu0 %v2325_v6  ;;  %1619 = vmatpush1.bf16.msra.mxu1 %v2322_v5  ;;  %v2418_v5 = vld [vmem:[%s3287_s1 + $0x4f0] ss:$8 sps:$4 sm:$0xff]   ;;  %v2426_v6 = vld [vmem:[%s3287_s1 + $0x204] ss:$8 sps:$4 sm:$0xff]  }
  0x48   : > { %1748 = vmatpush1.bf16.msra.mxu0 %v2328_v7  ;;  %1620 = vmatprep.subr.bf16.mxu1 %v2333_v8  ;;  %v2432_v7 = vld [vmem:[%s3287_s1 + $0x504] ss:$8 sps:$4 sm:$0xff]   ;;  %v2421_v8 = vld [vmem:[%s2747_s13 + $0x8] ss:$56 sps:$4 sm:$0xff]  }
  0x49   : > { %1749 = vmatprep.subr.bf16.mxu0 %v2336_v9  ;;  %1650 = vmatprep.mubr.bf16.mxu1 %v2423_v34  ;;  %v2424_v9 = vld [vmem:[%s3287_s1 + $0x200] ss:$8 sps:$4 sm:$0xff]   ;;  %v2465_v34 = vld [vmem:[%s3287_s1 + $0x264] ss:$8 sps:$4 sm:$0xff]  }
  0x4a   : > { %1779 = vmatprep.mubr.bf16.mxu0 %v2429_v37  ;;  %v2466_v37 = vld [vmem:[%s3287_s1 + $0x560] ss:$8 sps:$4 sm:$0xff]  }
  0x4b   : > { %1621 = vmatpush1.bf16.msra.mxu1 %v2331_v10  ;;  %v2427_v10 = vld [vmem:[%s2747_s13 + $0x20] ss:$56 sps:$4 sm:$0xff]  }
  0x4c   : > { %1750 = vmatpush1.bf16.msra.mxu0 %v2334_v11  ;;  %1622 = vmatprep.subr.bf16.mxu1 %v2339_v12  ;;  %v2430_v11 = vld [vmem:[%s3287_s1 + $0x500] ss:$8 sps:$4 sm:$0xff]   ;;  %v2435_v12 = vld [vmem:[%s3287_s1 + $0x214] ss:$8 sps:$4 sm:$0xff]  }
  0x4d   : > { %1751 = vmatprep.subr.bf16.mxu0 %v2342_v13  ;;  %v2438_v13 = vld [vmem:[%s3287_s1 + $0x514] ss:$8 sps:$4 sm:$0xff]  }
  0x4f   : > { %1623 = vmatpush1.bf16.msra.mxu1 %v2337_v14  ;;  %v2433_v14 = vld [vmem:[%s3287_s1 + $0x210] ss:$8 sps:$4 sm:$0xff]  }
  0x50   : > { %1752 = vmatpush1.bf16.msra.mxu0 %v2340_v15  ;;  %1624 = vmatprep.subr.bf16.mxu1 %v2345_v16  ;;  %v2436_v15 = vld [vmem:[%s3287_s1 + $0x510] ss:$8 sps:$4 sm:$0xff]   ;;  %v2441_v16 = vld [vmem:[%s3287_s1 + $0x224] ss:$8 sps:$4 sm:$0xff]  }
  0x51   : > { %1753 = vmatprep.subr.bf16.mxu0 %v2348_v17  ;;  %v2444_v17 = vld [vmem:[%s3287_s1 + $0x524] ss:$8 sps:$4 sm:$0xff]  }
  0x53   : > { %1625 = vmatpush1.bf16.msra.mxu1 %v2343_v18  ;;  %v2439_v18 = vld [vmem:[%s3287_s1 + $0x220] ss:$8 sps:$4 sm:$0xff]  }
  0x54   : > { %1754 = vmatpush1.bf16.msra.mxu0 %v2346_v19  ;;  %1626 = vmatprep.subr.bf16.mxu1 %v2351_v20  ;;  %v2525_v19 = vld [vmem:[%s2747_s13 + $0x14] ss:$56 sps:$4 sm:$0xff]   ;;  %v2442_v20 = vld [vmem:[%s3287_s1 + $0x520] ss:$8 sps:$4 sm:$0xff]  }
  0x55   : > { %1755 = vmatprep.subr.bf16.mxu0 %v2354_v21  ;;  %v2528_v21 = vld [vmem:[%s2747_s13 + $0x2c] ss:$56 sps:$4 sm:$0xff]  }
  0x57   : > { %1627 = vmatpush1.bf16.msra.mxu1 %v2349_v22  ;;  %v2447_v22 = vld [vmem:[%s3287_s1 + $0x234] ss:$8 sps:$4 sm:$0xff]  }
  0x58   : > { %1756 = vmatpush1.bf16.msra.mxu0 %v2352_v23  ;;  %1628 = vmatprep.subr.bf16.mxu1 %v2357_v24  ;;  %v2450_v23 = vld [vmem:[%s3287_s1 + $0x534] ss:$8 sps:$4 sm:$0xff]   ;;  %v2445_v24 = vld [vmem:[%s3287_s1 + $0x230] ss:$8 sps:$4 sm:$0xff]  }
  0x59   : > { %1757 = vmatprep.subr.bf16.mxu0 %v2360_v25  ;;  %v2448_v25 = vld [vmem:[%s3287_s1 + $0x530] ss:$8 sps:$4 sm:$0xff]  }
  0x5b   : > { %1629 = vmatpush1.bf16.msra.mxu1 %v2355_v26  ;;  %v2453_v26 = vld [vmem:[%s3287_s1 + $0x244] ss:$8 sps:$4 sm:$0xff]  }
  0x5c   : > { %1758 = vmatpush1.bf16.msra.mxu0 %v2358_v27  ;;  %1630 = vmatprep.subr.bf16.mxu1 %v2363_v28  ;;  %v2456_v27 = vld [vmem:[%s3287_s1 + $0x544] ss:$8 sps:$4 sm:$0xff]   ;;  %v2451_v28 = vld [vmem:[%s3287_s1 + $0x240] ss:$8 sps:$4 sm:$0xff]  }
  0x5d   : > { %1759 = vmatprep.subr.bf16.mxu0 %v2366_v29  ;;  %v2454_v29 = vld [vmem:[%s3287_s1 + $0x540] ss:$8 sps:$4 sm:$0xff]  }
  0x5f   : > { %1631 = vmatpush1.bf16.msra.mxu1 %v2361_v30  ;;  %v2459_v30 = vld [vmem:[%s3287_s1 + $0x254] ss:$8 sps:$4 sm:$0xff]  }
  0x60   : > { %1760 = vmatpush1.bf16.msra.mxu0 %v2364_v31  ;;  %1632 = vmatprep.subr.bf16.mxu1 %v2369_v32  ;;  %v2462_v31 = vld [vmem:[%s3287_s1 + $0x554] ss:$8 sps:$4 sm:$0xff]   ;;  %v2457_v32 = vld [vmem:[%s3287_s1 + $0x250] ss:$8 sps:$4 sm:$0xff]  }
  0x61   : > { %1761 = vmatprep.subr.bf16.mxu0 %v2372_v33  ;;  %v2460_v33 = vld [vmem:[%s3287_s1 + $0x550] ss:$8 sps:$4 sm:$0xff]  }
  0x63   : > { %1633 = vmatpush1.bf16.msra.mxu1 %v2367_v35  ;;  %v2468_v35 = vld [vmem:[%s3287_s1 + $0x564] ss:$8 sps:$4 sm:$0xff]  }
  0x64   : > { %1762 = vmatpush1.bf16.msra.mxu0 %v2370_v36  ;;  %1634 = vmatprep.subr.bf16.mxu1 %v2375_v38  ;;  %v2463_v36 = vld [vmem:[%s3287_s1 + $0x260] ss:$8 sps:$4 sm:$0xff]   ;;  %v2471_v38 = vld [vmem:[%s3287_s1 + $0x274] ss:$8 sps:$4 sm:$0xff]  }
  0x65   : > { %1763 = vmatprep.subr.bf16.mxu0 %v2378_v39  ;;  %v2474_v39 = vld [vmem:[%s3287_s1 + $0x574] ss:$8 sps:$4 sm:$0xff]  }
  0x67   : > { %1635 = vmatpush1.bf16.msra.mxu1 %v2373_v40  ;;  %v2469_v40 = vld [vmem:[%s3287_s1 + $0x270] ss:$8 sps:$4 sm:$0xff]  }
  0x68   : > { %1764 = vmatpush1.bf16.msra.mxu0 %v2376_v41  ;;  %1636 = vmatprep.subr.bf16.mxu1 %v2381_v42  ;;  %v2472_v41 = vld [vmem:[%s3287_s1 + $0x570] ss:$8 sps:$4 sm:$0xff]   ;;  %v2477_v42 = vld [vmem:[%s3287_s1 + $0x284] ss:$8 sps:$4 sm:$0xff]  }
  0x69   : > { %1765 = vmatprep.subr.bf16.mxu0 %v2384_v43  ;;  %v2480_v43 = vld [vmem:[%s3287_s1 + $0x584] ss:$8 sps:$4 sm:$0xff]  }
  0x6b   : > { %1637 = vmatpush1.bf16.msra.mxu1 %v2379_v44  ;;  %v2475_v44 = vld [vmem:[%s3287_s1 + $0x280] ss:$8 sps:$4 sm:$0xff]  }
  0x6c   : > { %1766 = vmatpush1.bf16.msra.mxu0 %v2382_v45  ;;  %1638 = vmatprep.subr.bf16.mxu1 %v2387_v46  ;;  %v2478_v45 = vld [vmem:[%s3287_s1 + $0x580] ss:$8 sps:$4 sm:$0xff]   ;;  %v2483_v46 = vld [vmem:[%s3287_s1 + $0x294] ss:$8 sps:$4 sm:$0xff]  }
  0x6d   : > { %1767 = vmatprep.subr.bf16.mxu0 %v2390_v47  ;;  %v2486_v47 = vld [vmem:[%s3287_s1 + $0x594] ss:$8 sps:$4 sm:$0xff]  }
  0x6f   : > { %1639 = vmatpush1.bf16.msra.mxu1 %v2385_v48  ;;  %v2481_v48 = vld [vmem:[%s3287_s1 + $0x290] ss:$8 sps:$4 sm:$0xff]  }
  0x70   : > { %1768 = vmatpush1.bf16.msra.mxu0 %v2388_v49  ;;  %1640 = vmatprep.subr.bf16.mxu1 %v2393_v50  ;;  %v2484_v49 = vld [vmem:[%s3287_s1 + $0x590] ss:$8 sps:$4 sm:$0xff]   ;;  %v2489_v50 = vld [vmem:[%s3287_s1 + $0x2a4] ss:$8 sps:$4 sm:$0xff]  }
  0x71   : > { %1769 = vmatprep.subr.bf16.mxu0 %v2396_v51  ;;  %v2492_v51 = vld [vmem:[%s3287_s1 + $0x5a4] ss:$8 sps:$4 sm:$0xff]  }
  0x73   : > { %1641 = vmatpush1.bf16.msra.mxu1 %v2391_v52  ;;  %v2487_v52 = vld [vmem:[%s3287_s1 + $0x2a0] ss:$8 sps:$4 sm:$0xff]  }
  0x74   : > { %1770 = vmatpush1.bf16.msra.mxu0 %v2394_v53  ;;  %1642 = vmatprep.subr.bf16.mxu1 %v2399_v54  ;;  %v2490_v53 = vld [vmem:[%s3287_s1 + $0x5a0] ss:$8 sps:$4 sm:$0xff]   ;;  %v2495_v54 = vld [vmem:[%s3287_s1 + $0x2b4] ss:$8 sps:$4 sm:$0xff]  }
  0x75   : > { %1771 = vmatprep.subr.bf16.mxu0 %v2402_v55  ;;  %v2498_v55 = vld [vmem:[%s3287_s1 + $0x5b4] ss:$8 sps:$4 sm:$0xff]  }
  0x77   : > { %1643 = vmatpush1.bf16.msra.mxu1 %v2397_v56  ;;  %v2493_v56 = vld [vmem:[%s3287_s1 + $0x2b0] ss:$8 sps:$4 sm:$0xff]  }
  0x78   : > { %1772 = vmatpush1.bf16.msra.mxu0 %v2400_v57  ;;  %1644 = vmatprep.subr.bf16.mxu1 %v2405_v58  ;;  %v2496_v57 = vld [vmem:[%s3287_s1 + $0x5b0] ss:$8 sps:$4 sm:$0xff]   ;;  %v2501_v58 = vld [vmem:[%s3287_s1 + $0x2c4] ss:$8 sps:$4 sm:$0xff]  }
  0x79   : > { %1773 = vmatprep.subr.bf16.mxu0 %v2408_v59  ;;  %v2504_v59 = vld [vmem:[%s3287_s1 + $0x5c4] ss:$8 sps:$4 sm:$0xff]  }
  0x7b   : > { %1645 = vmatpush1.bf16.msra.mxu1 %v2403_v60  ;;  %v2499_v60 = vld [vmem:[%s3287_s1 + $0x2c0] ss:$8 sps:$4 sm:$0xff]  }
  0x7c   : > { %1774 = vmatpush1.bf16.msra.mxu0 %v2406_v61  ;;  %1646 = vmatprep.subr.bf16.mxu1 %v2411_v62  ;;  %v2502_v61 = vld [vmem:[%s3287_s1 + $0x5c0] ss:$8 sps:$4 sm:$0xff]   ;;  %v2507_v62 = vld [vmem:[%s3287_s1 + $0x2d4] ss:$8 sps:$4 sm:$0xff]  }
  0x7d   : > { %1775 = vmatprep.subr.bf16.mxu0 %v2414_v63  ;;  %v2510_v63 = vld [vmem:[%s3287_s1 + $0x5d4] ss:$8 sps:$4 sm:$0xff]  }
  0x7f   : > { %1647 = vmatpush1.bf16.msra.mxu1 %v2409_v0  ;;  %v2505_v0 = vld [vmem:[%s3287_s1 + $0x2d0] ss:$8 sps:$4 sm:$0xff]  }
  0x80   : > { %1776 = vmatpush1.bf16.msra.mxu0 %v2412_v1  ;;  %1648 = vmatprep.subr.bf16.mxu1 %v2417_v2  ;;  %v2508_v1 = vld [vmem:[%s3287_s1 + $0x5d0] ss:$8 sps:$4 sm:$0xff]   ;;  %v2513_v2 = vld [vmem:[%s3287_s1 + $0x2e4] ss:$8 sps:$4 sm:$0xff]  }
  0x81   : > { %1777 = vmatprep.subr.bf16.mxu0 %v2420_v3  ;;  %v2516_v3 = vld [vmem:[%s3287_s1 + $0x5e4] ss:$8 sps:$4 sm:$0xff]  }
  0x83   : > { %1649 = vmatpush1.bf16.msra.mxu1 %v2415_v4  ;;  %v2511_v4 = vld [vmem:[%s3287_s1 + $0x2e0] ss:$8 sps:$4 sm:$0xff]  }
  0x84   : > { %1778 = vmatpush1.bf16.msra.mxu0 %v2418_v5  ;;  %1661 = vmatprep.subr.bf16.mxu1 %v2426_v6  ;;  %v2514_v5 = vld [vmem:[%s3287_s1 + $0x5e0] ss:$8 sps:$4 sm:$0xff]   ;;  %v2519_v6 = vld [vmem:[%s3287_s1 + $0x2f4] ss:$8 sps:$4 sm:$0xff]  }
  0x85   : > { %1790 = vmatprep.subr.bf16.mxu0 %v2432_v7  ;;  %v2522_v7 = vld [vmem:[%s3287_s1 + $0x5f4] ss:$8 sps:$4 sm:$0xff]  }
  0x86   : > { %1651 = vmatmul.mubr.bf16.vlgmr.msra.gmra.mrb[0].mxu1 %v2421_v8  ;;  %v2517_v8 = vld [vmem:[%s3287_s1 + $0x2f0] ss:$8 sps:$4 sm:$0xff]  }
  0x87   : > { %1780 = vmatmul.mubr.bf16.vlgmr.msra.gmra.mrb[0].mxu0 %v2427_v10  ;;  %1662 = vmatpush1.bf16.msra.mxu1 %v2424_v9  ;;  %v2520_v9 = vld [vmem:[%s3287_s1 + $0x5f0] ss:$8 sps:$4 sm:$0xff]   ;;  %v2531_v10 = vld [vmem:[%s3287_s1 + $0x604] ss:$8 sps:$4 sm:$0xff]  }
  0x88   : > { %1791 = vmatpush1.bf16.msra.mxu0 %v2430_v11  ;;  %1663 = vmatprep.subr.bf16.mxu1 %v2435_v12  ;;  %v2523_v11 = vld [vmem:[%s2747_s13 + $0x10] ss:$56 sps:$4 sm:$0xff]  }
  0x89   : > { %1792 = vmatprep.subr.bf16.mxu0 %v2438_v13  ;;  %1693 = vmatprep.mubr.bf16.mxu1 %v2525_v19  ;;  %v2526_v12 = vld [vmem:[%s2747_s13 + $0x28] ss:$56 sps:$4 sm:$0xff]   ;;  %v2540_v19 = vld [vmem:[%s3287_s1 + $0x634] ss:$8 sps:$4 sm:$0xff]  }
  0x8a   : > { %1822 = vmatprep.mubr.bf16.mxu0 %v2528_v21  ;;  %v2529_v13 = vld [vmem:[%s3287_s1 + $0x600] ss:$8 sps:$4 sm:$0xff]   ;;  %v2543_v21 = vld [vmem:[%s3287_s1 + $0x644] ss:$8 sps:$4 sm:$0xff]  }
  0x8b   : > { %1664 = vmatpush1.bf16.msra.mxu1 %v2433_v14  ;;  %v2565_v14 = vld [vmem:[%s2747_s13 + $0x34] ss:$56 sps:$4 sm:$0xff]  }
  0x8c   : > { %1793 = vmatpush1.bf16.msra.mxu0 %v2436_v15  ;;  %1665 = vmatprep.subr.bf16.mxu1 %v2441_v16  ;;  %v2534_v15 = vld [vmem:[%s3287_s1 + $0x614] ss:$8 sps:$4 sm:$0xff]   ;;  %v2532_v16 = vld [vmem:[%s3287_s1 + $0x610] ss:$8 sps:$4 sm:$0xff]  }
  0x8d   : > { %1794 = vmatprep.subr.bf16.mxu0 %v2444_v17  ;;  %v2537_v17 = vld [vmem:[%s3287_s1 + $0x624] ss:$8 sps:$4 sm:$0xff]  }
  0x8f   : > { %1666 = vmatpush1.bf16.msra.mxu1 %v2439_v18  ;;  %v2535_v18 = vld [vmem:[%s3287_s1 + $0x620] ss:$8 sps:$4 sm:$0xff]  }
  0x90   : > { %1795 = vmatpush1.bf16.msra.mxu0 %v2442_v20  ;;  %1667 = vmatprep.subr.bf16.mxu1 %v2447_v22  ;;  %v2538_v20 = vld [vmem:[%s3287_s1 + $0x630] ss:$8 sps:$4 sm:$0xff]   ;;  %v2541_v22 = vld [vmem:[%s3287_s1 + $0x640] ss:$8 sps:$4 sm:$0xff]  }
  0x91   : > { %1796 = vmatprep.subr.bf16.mxu0 %v2450_v23  ;;  %v2546_v23 = vld [vmem:[%s3287_s1 + $0x654] ss:$8 sps:$4 sm:$0xff]  }
  0x93   : > { %1668 = vmatpush1.bf16.msra.mxu1 %v2445_v24  ;;  %v2544_v24 = vld [vmem:[%s3287_s1 + $0x650] ss:$8 sps:$4 sm:$0xff]  }
  0x94   : > { %1797 = vmatpush1.bf16.msra.mxu0 %v2448_v25  ;;  %1669 = vmatprep.subr.bf16.mxu1 %v2453_v26  ;;  %v2549_v25 = vld [vmem:[%s3287_s1 + $0x664] ss:$8 sps:$4 sm:$0xff]   ;;  %v2547_v26 = vld [vmem:[%s3287_s1 + $0x660] ss:$8 sps:$4 sm:$0xff]  }
  0x95   : > { %1798 = vmatprep.subr.bf16.mxu0 %v2456_v27  ;;  %v2552_v27 = vld [vmem:[%s3287_s1 + $0x674] ss:$8 sps:$4 sm:$0xff]  }
  0x97   : > { %1670 = vmatpush1.bf16.msra.mxu1 %v2451_v28  ;;  %v2550_v28 = vld [vmem:[%s3287_s1 + $0x670] ss:$8 sps:$4 sm:$0xff]  }
  0x98   : > { %1799 = vmatpush1.bf16.msra.mxu0 %v2454_v29  ;;  %1671 = vmatprep.subr.bf16.mxu1 %v2459_v30  ;;  %v2555_v29 = vld [vmem:[%s3287_s1 + $0x684] ss:$8 sps:$4 sm:$0xff]   ;;  %v2553_v30 = vld [vmem:[%s3287_s1 + $0x680] ss:$8 sps:$4 sm:$0xff]  }
  0x99   : > { %1800 = vmatprep.subr.bf16.mxu0 %v2462_v31  ;;  %v2558_v31 = vld [vmem:[%s3287_s1 + $0x694] ss:$8 sps:$4 sm:$0xff]  }
  0x9b   : > { %1672 = vmatpush1.bf16.msra.mxu1 %v2457_v32  ;;  %v2556_v32 = vld [vmem:[%s3287_s1 + $0x690] ss:$8 sps:$4 sm:$0xff]  }
  0x9c   : > { %1801 = vmatpush1.bf16.msra.mxu0 %v2460_v33  ;;  %1673 = vmatprep.subr.bf16.mxu1 %v2465_v34  ;;  %v2561_v33 = vld [vmem:[%s3287_s1 + $0x6a4] ss:$8 sps:$4 sm:$0xff]   ;;  %v2559_v34 = vld [vmem:[%s3287_s1 + $0x6a0] ss:$8 sps:$4 sm:$0xff]  }
  0x9d   : > { %1802 = vmatprep.subr.bf16.mxu0 %v2468_v35  ;;  %v2564_v35 = vld [vmem:[%s3287_s1 + $0x6b4] ss:$8 sps:$4 sm:$0xff]  }
  0x9f   : > { %1674 = vmatpush1.bf16.msra.mxu1 %v2463_v36  ;;  %v2562_v36 = vld [vmem:[%s3287_s1 + $0x6b0] ss:$8 sps:$4 sm:$0xff]  }
  0xa0   : > { %1803 = vmatpush1.bf16.msra.mxu0 %v2466_v37  ;;  %1675 = vmatprep.subr.bf16.mxu1 %v2471_v38  ;;  %v2567_v37 = vld [vmem:[%s2747_s13 + $0x30] ss:$56 sps:$4 sm:$0xff]  }
  0xa1   : > { %1804 = vmatprep.subr.bf16.mxu0 %v2474_v39 }
  0xa3   : > { %1676 = vmatpush1.bf16.msra.mxu1 %v2469_v40 }
  0xa4   : > { %1805 = vmatpush1.bf16.msra.mxu0 %v2472_v41  ;;  %1677 = vmatprep.subr.bf16.mxu1 %v2477_v42  ;;  %v412_v42 = vlaneseq }
  0xa5   : > { %1806 = vmatprep.subr.bf16.mxu0 %v2480_v43 }
  0xa6   : > { %v413_v43 = vshrl.u32 %v412_v42, 7 }
  0xa7   : > { %1678 = vmatpush1.bf16.msra.mxu1 %v2475_v44 }
  0xa8   : > { %1807 = vmatpush1.bf16.msra.mxu0 %v2478_v45  ;;  %1679 = vmatprep.subr.bf16.mxu1 %v2483_v46  ;;  %v414_v44 = vsub.s32 0, %v413_v43  ;;  %v410_v45 = vld [vmem:[%s3288_s2] sm:$0x3]  ;;  %v418_v46 = vsub.s32 1, %v413_v43 }
  0xa9   : > { %1808 = vmatprep.subr.bf16.mxu0 %v2486_v47 }
  0xaa   : > { %v415_v47 = vrot.slane %v410_v45, %v414_v44 }
  0xab   : > { %1680 = vmatpush1.bf16.msra.mxu1 %v2481_v48  ;;  %v419_v48 = vrot.slane %v410_v45, %v418_v46 }
  0xac   : > { %1809 = vmatpush1.bf16.msra.mxu0 %v2484_v49  ;;  %1681 = vmatprep.subr.bf16.mxu1 %v2489_v50 }
  0xad   : > { %1810 = vmatprep.subr.bf16.mxu0 %v2492_v51 }
  0xaf   : > { %1682 = vmatpush1.bf16.msra.mxu1 %v2487_v52 }
  0xb0   : > { %1811 = vmatpush1.bf16.msra.mxu0 %v2490_v53  ;;  %1683 = vmatprep.subr.bf16.mxu1 %v2495_v54 }
  0xb1   : > { %1812 = vmatprep.subr.bf16.mxu0 %v2498_v55 }
  0xb3   : > { %1684 = vmatpush1.bf16.msra.mxu1 %v2493_v56 }
  0xb4   : > { %1813 = vmatpush1.bf16.msra.mxu0 %v2496_v57  ;;  %1685 = vmatprep.subr.bf16.mxu1 %v2501_v58 }
  0xb5   : > { %1814 = vmatprep.subr.bf16.mxu0 %v2504_v59 }
  0xb7   : > { %1686 = vmatpush1.bf16.msra.mxu1 %v2499_v60 }
  0xb8   : > { %1815 = vmatpush1.bf16.msra.mxu0 %v2502_v61  ;;  %1687 = vmatprep.subr.bf16.mxu1 %v2507_v62 }
  0xb9   : > { %1816 = vmatprep.subr.bf16.mxu0 %v2510_v63 }
  0xbb   : > { %1688 = vmatpush1.bf16.msra.mxu1 %v2505_v0 }
  0xbc   : > { %1817 = vmatpush1.bf16.msra.mxu0 %v2508_v1  ;;  %1689 = vmatprep.subr.bf16.mxu1 %v2513_v2 }
  0xbd   : > { %1818 = vmatprep.subr.bf16.mxu0 %v2516_v3 }
  0xbf   : > { %1690 = vmatpush1.bf16.msra.mxu1 %v2511_v4 }
  0xc0   : > { %1819 = vmatpush1.bf16.msra.mxu0 %v2514_v5  ;;  %1691 = vmatprep.subr.bf16.mxu1 %v2519_v6 }
  0xc1   : > { %1820 = vmatprep.subr.bf16.mxu0 %v2522_v7 }
  0xc3   : > { %1692 = vmatpush1.bf16.msra.mxu1 %v2517_v8 }
  0xc4   : > { %1821 = vmatpush1.bf16.msra.mxu0 %v2520_v9 }
  0xc5   : > { %1833 = vmatprep.subr.bf16.mxu0 %v2531_v10 }
  0xc6   : > { %1694 = vmatmul.mubr.bf16.vlgmr.msra.gmra.mrb[0].mxu1 %v2523_v11 }
  0xc7   : > { %1823 = vmatmul.mubr.bf16.vlgmr.msra.gmra.mrb[0].mxu0 %v2526_v12 }
  0xc8   : > { %1834 = vmatpush1.bf16.msra.mxu0 %v2529_v13  ;;  %2182 = vmatprep.mubr.msk.bf16.mxu0 %vm1571_vm0, %v2565_v14 }
  0xc9   : > { %1835 = vmatprep.subr.bf16.mxu0 %v2534_v15 }
  0xcc   : > { %1836 = vmatpush1.bf16.msra.mxu0 %v2532_v16 }
  0xcd   : > { %1837 = vmatprep.subr.bf16.mxu0 %v2537_v17 }
  0xd0   : > { %1838 = vmatpush1.bf16.msra.mxu0 %v2535_v18 }
  0xd1   : > { %1839 = vmatprep.subr.bf16.mxu0 %v2540_v19 }
  0xd4   : > { %1840 = vmatpush1.bf16.msra.mxu0 %v2538_v20 }
  0xd5   : > { %1841 = vmatprep.subr.bf16.mxu0 %v2543_v21 }
  0xd8   : > { %1842 = vmatpush1.bf16.msra.mxu0 %v2541_v22 }
  0xd9   : > { %1843 = vmatprep.subr.bf16.mxu0 %v2546_v23 }
  0xdc   : > { %1844 = vmatpush1.bf16.msra.mxu0 %v2544_v24 }
  0xdd   : > { %1845 = vmatprep.subr.bf16.mxu0 %v2549_v25 }
  0xe0   : > { %1846 = vmatpush1.bf16.msra.mxu0 %v2547_v26 }
  0xe1   : > { %1847 = vmatprep.subr.bf16.mxu0 %v2552_v27 }
  0xe4   : > { %1848 = vmatpush1.bf16.msra.mxu0 %v2550_v28 }
  0xe5   : > { %1849 = vmatprep.subr.bf16.mxu0 %v2555_v29 }
  0xe8   : > { %1850 = vmatpush1.bf16.msra.mxu0 %v2553_v30 }
  0xe9   : > { %1851 = vmatprep.subr.bf16.mxu0 %v2558_v31 }
  0xec   : > { %1852 = vmatpush1.bf16.msra.mxu0 %v2556_v32 }
  0xed   : > { %1853 = vmatprep.subr.bf16.mxu0 %v2561_v33 }
  0xf0   : > { %1854 = vmatpush1.bf16.msra.mxu0 %v2559_v34 }
  0xf1   : > { %1855 = vmatprep.subr.bf16.mxu0 %v2564_v35 }
  0xf4   : > { %1856 = vmatpush1.bf16.msra.mxu0 %v2562_v36 }
  0xf7   : > { %1866 = vmatmul.mubr.bf16.vlgmr.msra.gmra.mrb[0].mxu0 %v2567_v37 }
 0x199   : > { %v1695_v38 = vpop.f32.mrb[0].mxu1 }
 0x19a   : > { %v1697_v39 = vpop.f32.mrb[1].mxu1  ;;  %v2186_v49 = vadd.f32 %v1695_v38, %v415_v47 }
 0x19b   : > { %v1699_v40 = vpop.f32.mrb[2].mxu1  ;;  %v2188_v50 = vadd.f32 %v1697_v39, %v419_v48 }
 0x19c   : > { %v1701_v41 = vpop.f32.mrb[3].mxu1  ;;  %v2190_v52 = vadd.f32 %v1699_v40, %v415_v47 }
 0x19d   : > { %v2192_v55 = vadd.f32 %v1701_v41, %v419_v48 }
 0x1ca   : > { %v1867_v51 = vpop.f32.mrb[0].mxu0 }
 0x1cb   : > { %v2187_v53 = vadd.f32 %v2186_v49, %v1867_v51  ;;  %v1869_v54 = vpop.f32.mrb[1].mxu0 }
 0x1cc   : > { %v2189_v56 = vadd.f32 %v2188_v50, %v1869_v54  ;;  %v1871_v57 = vpop.f32.mrb[2].mxu0 }
 0x1cd   : > { %v1876_v58 = vmax.f32 %v2187_v53, 0.0  ;;  %v2191_v59 = vadd.f32 %v2190_v52, %v1871_v57  ;;  %v1873_v60 = vpop.f32.mrb[3].mxu0 }
 0x1ce   : > { %v1877_v61 = vmax.f32 %v2189_v56, 0.0  ;;  %v2193_v62 = vadd.f32 %v2192_v55, %v1873_v60 }
 0x1cf   : > { %1880 = vst [vmem:[%s177_s18] sm:$0xff] %v1876_v58  ;;  %v1878_v63 = vmax.f32 %v2191_v59, 0.0 }
 0x1d0   : > { %1881 = vst [vmem:[%s177_s18 + $0x8] sm:$0xff] %v1877_v61  ;;  %v1879_v0 = vmax.f32 %v2193_v62, 0.0 }
 0x1d1   : > { %1882 = vst [vmem:[%s177_s18 + $0x10] sm:$0xff] %v1878_v63 }
 0x1d2   : > { %1883 = vst [vmem:[%s177_s18 + $0x18] sm:$0xff] %v1879_v0 }
 0x1d3 PF: > { %s13_s12 = sadd.s32 1, %s2574_s12  }
 0x1d4   : > { %p10_p4 = scmp.ge.s32.totalorder %s13_s12, 4  }
 0x1d6   :  { %12 = sbr.rel (!%p10_p4) target bundleno = 1 (0x1), region = 62 }

// kernel: inception_d_forward.12
= control target key start
LH: loop header
LB: loop body
LE: loop exit
PB: predicated region body
PF: predicated region fallthrough
CT: control target
= control target key end

     0   :  { %s1008_s6 = smov 0   ;;  %s1010_s7 = smov 0   ;;  %s1266_s0 = inlined_call_operand.vmem [shape: f32[3,72,8], index: 0, kind: input, shape index: {}]   ;;  %s1267_s1 = inlined_call_operand.vmem [shape: f32[72,8], index: 1, kind: output, shape index: {}]  }
   0x1   :  { %s1012_s8 = smov 0  }
   0x2 LB: > { %s1024_s9 = sadd.s32 4294967295, %s932_s8   ;;  %s1027_s10 = sadd.s32 1, %s932_s8   ;;  %s932_s8 = sphi %s1012_s8, %s1278_s8   ;;  %s928_s7 = sphi %s1010_s7, %s1277_s7   ;;  %s924_s6 = sphi %s1008_s6, %s1276_s6  }
   0x3   : > { %s15_s11 = ssub.s32 %s932_s8, %s1027_s10  ;;  %s18_s12 = sadd.s32 1, %s928_s7 }
   0x4   : > { %p16_p0 = scmp.eq.s32.totalorder %s15_s11, 0  ;;  %p25_p1 = scmp.ne.s32.totalorder %s928_s7, %s924_s6 }
   0x5   : > { %p26_p2 = scmp.eq.s32.totalorder %s932_s8, 0  ;;  %p55_p3 = scmp.eq.s32.totalorder %s1024_s9, 1 }
   0x6   : > { %s1037_s13 = scalar_select %p16_p0, %s928_s7, %s18_s12  }
   0x7   : > { %p27_p4 = por %p26_p2, %p25_p1  ;;  %p1039_p5 = por %p55_p3, %p25_p1 }
   0x8   : > { %p656_p6 = scmp.ge.s32.totalorder %s932_s8, 2 }
   0xa   : > { %77 = sbr.rel (%p656_p6) target bundleno = 86 (0x56), region = 16 }
  0x11   : > { %80 = sbr.rel (!%p27_p4) target bundleno = 86 (0x56), region = 20  ;;  %s82_s15 = sand.u32 (%p27_p4), 1, %s928_s7  }
  0x12   : > { %s85_s16 = smul.u32 (%p27_p4), 6, %s932_s8 }
  0x13   : > { %s681_s17 = smul.u32 (%p27_p4), 144, %s82_s15 }
  0x14   : > { %s86_s18 = ssub.s32 (%p27_p4), 9, %s85_s16  ;;  %s679_s19 = smul.u32 (%p27_p4), 48, %s932_s8 }
  0x15   : > { %p87_p7 = scmp.lt.s32.totalorder (%p27_p4), %s86_s18, 6  ;;  %s1055_s24 = scalar_lea.vmem (%p27_p4), [#allocation2], %s681_s17  }
  0x16   : > { %s1050_s22 = scalar_lea.vmem (%p27_p4), %s1266_s0, %s679_s19  }
  0x18   : > { %s1280_s18 = smov (!%p87_p7, %s86_s18), 6 }
  0x19   : > { %s89_s23 = smul.u32 384, %s1280_s18 }
  0x1b   : > { %p659_p8 = scmp.eq.s32.totalorder %s89_s23, 0 }
  0x1c   : > { %838 = sdivrem.u32 (!%p659_p8), %s1280_s18, 6 }
  0x1d   : > { %95 = sbr.rel (%p659_p8) target bundleno = 86 (0x56), region = 24 }
  0x25   : > { %s1058_s25 = spop.drf %838 }
  0x26   : > { %p660_p9 = scmp.le.s32.totalorder %s1058_s25, 0 }
  0x27   : > { %s1269_s26 = smov (!%p660_p9), %s1055_s24  ;;  %s1270_s27 = smov (!%p660_p9), %s1050_s22 }
  0x28   : > { %582 = sbr.rel (%p660_p9) target bundleno = 57 (0x39), region = 173  ;;  %s1067_s28 = smov (!%p660_p9), 0  }
  0x29   : > { %s1069_s29 = smov (!%p660_p9), 0  }
  0x2f LB: >> { %v197_v0 = vld [vmem:[%s940_s27] sm:$0xff]  ;;  %v199_v1 = vld [vmem:[%s940_s27 + $0x8] sm:$0xff]  ;;  %v201_v2 = vld [vmem:[%s940_s27 + $0x10] sm:$0xff]  ;;  %s233_s30 = sadd.s32 1, %s944_s28  ;;  %s191_s29 = sadd.s32 1, %s948_s29   ;;  %s948_s29 = sphi %s1069_s29, %s191_s29   ;;  %s944_s28 = sphi %s1067_s28, %s1271_s28   ;;  %s940_s27 = sphi %s1270_s27, %s238_s27   ;;  %s936_s26 = sphi %s1269_s26, %s239_s26  }
  0x30   : >> { %198 = vst [vmem:[%s936_s26] sm:$0xff] %v197_v0  ;;  %200 = vst [vmem:[%s936_s26 + $0x8] sm:$0xff] %v199_v1  ;;  %v203_v3 = vld [vmem:[%s940_s27 + $0x18] sm:$0xff]  ;;  %v205_v4 = vld [vmem:[%s940_s27 + $0x20] sm:$0xff]  ;;  %p234_p10 = scmp.ge.s32.totalorder %s233_s30, %s1058_s25  ;;  %p190_p11 = scmp.ge.s32.totalorder %s191_s29, %s1058_s25 }
  0x31   : >> { %202 = vst [vmem:[%s936_s26 + $0x10] sm:$0xff] %v201_v2  ;;  %v207_v5 = vld [vmem:[%s940_s27 + $0x28] sm:$0xff]  ;;  %204 = vst [vmem:[%s936_s26 + $0x18] sm:$0xff] %v203_v3  ;;  %v211_v7 = vld [vmem:[%s940_s27 + $0x50] sm:$0xff] }
  0x32   : >> { %206 = vst [vmem:[%s936_s26 + $0x20] sm:$0xff] %v205_v4  ;;  %208 = vst [vmem:[%s936_s26 + $0x28] sm:$0xff] %v207_v5  ;;  %v209_v6 = vld [vmem:[%s940_s27 + $0x48] sm:$0xff]  ;;  %v213_v8 = vld [vmem:[%s940_s27 + $0x58] sm:$0xff]  ;;  %s1282_s30 = smov (%p234_p10, %s233_s30), 0  ;;  %193 = sbr.rel (!%p190_p11) target bundleno = 47 (0x2f), region = 179 }
  0x33   : >> { %210 = vst [vmem:[%s936_s26 + $0x30] sm:$0xff] %v209_v6  ;;  %212 = vst [vmem:[%s936_s26 + $0x38] sm:$0xff] %v211_v7  ;;  %v215_v9 = vld [vmem:[%s940_s27 + $0x60] sm:$0xff]  ;;  %v217_v10 = vld [vmem:[%s940_s27 + $0x68] sm:$0xff]  ;;  %s236_s2 = smul.u32 48, %s1282_s30  ;;  %s1271_s28 = smov %s1282_s30 }
  0x34   : >> { %214 = vst [vmem:[%s936_s26 + $0x40] sm:$0xff] %v213_v8  ;;  %v219_v11 = vld [vmem:[%s940_s27 + $0x70] sm:$0xff]  ;;  %216 = vst [vmem:[%s936_s26 + $0x48] sm:$0xff] %v215_v9  ;;  %v223_v13 = vld [vmem:[%s940_s27 + $0x98] sm:$0xff] }
  0x35   : >> { %218 = vst [vmem:[%s936_s26 + $0x50] sm:$0xff] %v217_v10  ;;  %220 = vst [vmem:[%s936_s26 + $0x58] sm:$0xff] %v219_v11  ;;  %v221_v12 = vld [vmem:[%s940_s27 + $0x90] sm:$0xff]  ;;  %v225_v14 = vld [vmem:[%s940_s27 + $0xa0] sm:$0xff] }
  0x36   : >> { %222 = vst [vmem:[%s936_s26 + $0x60] sm:$0xff] %v221_v12  ;;  %224 = vst [vmem:[%s936_s26 + $0x68] sm:$0xff] %v223_v13  ;;  %v227_v15 = vld [vmem:[%s940_s27 + $0xa8] sm:$0xff]  ;;  %v229_v16 = vld [vmem:[%s940_s27 + $0xb0] sm:$0xff] }
  0x37   : >> { %226 = vst [vmem:[%s936_s26 + $0x70] sm:$0xff] %v225_v14  ;;  %v231_v17 = vld [vmem:[%s940_s27 + $0xb8] sm:$0xff]  ;;  %228 = vst [vmem:[%s936_s26 + $0x78] sm:$0xff] %v227_v15  ;;  %s238_s27 = scalar_lea.vmem %s1050_s22, %s236_s2  }
  0x38   : >> { %230 = vst [vmem:[%s936_s26 + $0x80] sm:$0xff] %v229_v16  ;;  %232 = vst [vmem:[%s936_s26 + $0x88] sm:$0xff] %v231_v17  ;;  %s239_s26 = scalar_lea.vmem %s1055_s24, %s236_s2 [#allocation2]  }
  0x39 PF: > { %840 = sdivrem.u32 %s1280_s18, 6 }
  0x3a   : > { %s661_s3 = smul.u32 48, %s1058_s25 }
  0x3c   : > { %s1133_s4 = scalar_lea.vmem %s1050_s22, %s661_s3   ;;  %s1136_s5 = scalar_lea.vmem %s1055_s24, %s661_s3 [#allocation2]  }
  0x42   : > { %s1138_s11 = spop.drf %840 }
  0x43   : > { %p663_p12 = scmp.le.s32.totalorder %s1138_s11, 0 }
  0x44   : > { %s1272_s12 = smov (!%p663_p12), %s1136_s5  ;;  %s954_s15 = smov (!%p663_p12), %s1133_s4  }
  0x45   : > { %596 = sbr.rel (%p663_p12) target bundleno = 86 (0x56), region = 184  ;;  %s958_s16 = smov (!%p663_p12), 0  }
  0x46   : > { %s962_s17 = smov (!%p663_p12), 0  }
  0x4c LB: >> { %v256_v18 = vld [vmem:[%s956_s15] sm:$0xff]  ;;  %v258_v19 = vld [vmem:[%s956_s15 + $0x48] sm:$0xff]  ;;  %v260_v20 = vld [vmem:[%s956_s15 + $0x90] sm:$0xff]  ;;  %s262_s18 = sadd.s32 1, %s960_s16  ;;  %s250_s17 = sadd.s32 1, %s964_s17   ;;  %s964_s17 = sphi %s962_s17, %s250_s17   ;;  %s960_s16 = sphi %s958_s16, %s959_s16   ;;  %s956_s15 = sphi %s954_s15, %s267_s15   ;;  %s952_s12 = sphi %s1272_s12, %s268_s12  }
  0x4d   : >> { %257 = vst [vmem:[%s952_s12] sm:$0xff] %v256_v18  ;;  %259 = vst [vmem:[%s952_s12 + $0x30] sm:$0xff] %v258_v19  ;;  %p263_p13 = scmp.ge.s32.totalorder %s262_s18, %s1138_s11  ;;  %p249_p0 = scmp.ge.s32.totalorder %s250_s17, %s1138_s11 }
  0x4e   : >> { %261 = vst [vmem:[%s952_s12 + $0x60] sm:$0xff] %v260_v20 }
  0x4f   : >> { %s1284_s18 = smov (%p263_p13, %s262_s18), 0  ;;  %252 = sbr.rel (!%p249_p0) target bundleno = 76 (0x4c), region = 190 }
  0x50   : >> { %s664_s19 = sshll.u32 %s1284_s18, 3  ;;  %s959_s16 = smov %s1284_s18  }
  0x51   : >> { %s267_s15 = scalar_lea.vmem %s1133_s4, %s664_s19   ;;  %s268_s12 = scalar_lea.vmem %s1136_s5, %s664_s19 [#allocation2]  }
  0x56 PF: > { %p666_p1 = scmp.ge.s32.totalorder %s932_s8, 1  ;;  %p273_p2 = scmp.lt.s32.totalorder %s932_s8, 3 }
  0x58   : > { %p274_p3 = pnand %p666_p1, %p273_p2 }
  0x59   : > { %s280_s20 = sand.u32 (!%p274_p3), 1, %s924_s6   ;;  %vm326_vm0 = vcmask (!%p274_p3), 64512  }
  0x5a   : > { %277 = sbr.rel (%p274_p3) target bundleno = 168 (0xa8), region = 72 }
  0x5b   : > { %s682_s21 = smul.u32 (!%p274_p3), 144, %s280_s20 }
  0x5c   : > { %s1155_s22 = smul.u32 (!%p274_p3), 48, %s280_s20 }
  0x5d   : > { %s1157_s23 = scalar_lea.vmem (!%p274_p3), [#allocation2], %s682_s21 }
  0x5e   : > { %v308_v21 = vld [vmem:[%s1157_s23] sm:$0xff] (!%p274_p3)  ;;  %v314_v22 = vld [vmem:[%s1157_s23 + $0x30] sm:$0xff] (!%p274_p3)  ;;  %v309_v27 = vld [vmem:[%s1157_s23 + $0x8] sm:$0xff] (!%p274_p3)  ;;  %s1191_s6 = scalar_lea.vmem (!%p274_p3), [#allocation3], %s1155_s22  }
  0x5f   : > { %v320_v23 = vld [vmem:[%s1157_s23 + $0x60] sm:$0xff] (!%p274_p3)  ;;  %v327_v24 = vsel (!%p274_p3), %vm326_vm0, %v308_v21, -inf  ;;  %v328_v25 = vsel (!%p274_p3), %vm326_vm0, %v314_v22, -inf  ;;  %v315_v28 = vld [vmem:[%s1157_s23 + $0x38] sm:$0xff] (!%p274_p3)  ;;  %v321_v29 = vld [vmem:[%s1157_s23 + $0x68] sm:$0xff] (!%p274_p3)  ;;  %v332_v31 = vsel (!%p274_p3), %vm326_vm0, %v309_v27, -inf }
  0x60   : > { %v330_v26 = vsel (!%p274_p3), %vm326_vm0, %v320_v23, -inf  ;;  %v329_v30 = vmax.f32 (!%p274_p3), %v327_v24, %v328_v25  ;;  %v333_v32 = vsel (!%p274_p3), %vm326_vm0, %v315_v28, -inf  ;;  %v335_v33 = vsel (!%p274_p3), %vm326_vm0, %v321_v29, -inf  ;;  %v310_v34 = vld [vmem:[%s1157_s23 + $0x10] sm:$0xff] (!%p274_p3)  ;;  %v316_v35 = vld [vmem:[%s1157_s23 + $0x40] sm:$0xff] (!%p274_p3)  ;;  %v311_v41 = vld [vmem:[%s1157_s23 + $0x18] sm:$0xff] (!%p274_p3) }
  0x61   : > { %v322_v36 = vld [vmem:[%s1157_s23 + $0x70] sm:$0xff]  ;;  %v334_v37 = vmax.f32 %v332_v31, %v333_v32  ;;  %v337_v38 = vsel %vm326_vm0, %v310_v34, -inf  ;;  %v338_v39 = vsel %vm326_vm0, %v316_v35, -inf  ;;  %v317_v42 = vld [vmem:[%s1157_s23 + $0x48] sm:$0xff]  ;;  %v323_v43 = vld [vmem:[%s1157_s23 + $0x78] sm:$0xff]  ;;  %v342_v46 = vsel %vm326_vm0, %v311_v41, -inf }
  0x62   : > { %v340_v40 = vsel %vm326_vm0, %v322_v36, -inf  ;;  %v331_v44 = vmax.f32 %v329_v30, %v330_v26  ;;  %v339_v45 = vmax.f32 %v337_v38, %v338_v39  ;;  %v343_v47 = vsel %vm326_vm0, %v317_v42, -inf  ;;  %v312_v48 = vld [vmem:[%s1157_s23 + $0x20] sm:$0xff]  ;;  %v318_v49 = vld [vmem:[%s1157_s23 + $0x50] sm:$0xff]  ;;  %v313_v55 = vld [vmem:[%s1157_s23 + $0x28] sm:$0xff]  ;;  %s370_s8 = smul.u32 (%p1039_p5), 6, %s1024_s9 }
  0x63   : > { %v324_v50 = vld [vmem:[%s1157_s23 + $0x80] sm:$0xff]  ;;  %v336_v51 = vmax.f32 %v334_v37, %v335_v33  ;;  %v344_v52 = vmax.f32 %v342_v46, %v343_v47  ;;  %v345_v53 = vsel %vm326_vm0, %v323_v43, -inf  ;;  %v347_v54 = vsel %vm326_vm0, %v312_v48, -inf  ;;  %v319_v56 = vld [vmem:[%s1157_s23 + $0x58] sm:$0xff]  ;;  %v325_v57 = vld [vmem:[%s1157_s23 + $0x88] sm:$0xff]  ;;  %s680_s24 = smul.u32 (%p1039_p5), 48, %s1024_s9 }
  0x64   : > { %357 = vst.msk [vmem:[%s1191_s6] sm:$0xff] %vm326_vm0, %v331_v44  ;;  %v341_v58 = vmax.f32 %v339_v45, %v340_v40  ;;  %v348_v59 = vsel %vm326_vm0, %v318_v49, -inf  ;;  %v350_v60 = vsel %vm326_vm0, %v324_v50, -inf  ;;  %v352_v61 = vsel %vm326_vm0, %v313_v55, -inf  ;;  %369 = sbr.rel (!%p1039_p5) target bundleno = 168 (0xa8), region = 80  ;;  %s371_s25 = ssub.s32 (%p1039_p5), 9, %s370_s8 }
  0x65   : > { %358 = vst.msk [vmem:[%s1191_s6 + $0x8] sm:$0xff] %vm326_vm0, %v336_v51  ;;  %v346_v62 = vmax.f32 %v344_v52, %v345_v53  ;;  %v349_v63 = vmax.f32 %v347_v54, %v348_v59  ;;  %v353_v0 = vsel %vm326_vm0, %v319_v56, -inf  ;;  %v355_v1 = vsel %vm326_vm0, %v325_v57, -inf  ;;  %p372_p4 = scmp.lt.s32.totalorder (%p1039_p5), %s371_s25, 6  ;;  %s1217_s28 = scalar_lea.vmem (%p1039_p5), %s1267_s1, %s680_s24  }
  0x66   : > { %359 = vst.msk [vmem:[%s1191_s6 + $0x10] sm:$0xff] %vm326_vm0, %v341_v58  ;;  %v354_v2 = vmax.f32 %v352_v61, %v353_v0 }
  0x67   : > { %360 = vst.msk [vmem:[%s1191_s6 + $0x18] sm:$0xff] %vm326_vm0, %v346_v62  ;;  %v351_v3 = vmax.f32 %v349_v63, %v350_v60 }
  0x68   : > { %v356_v4 = vmax.f32 %v354_v2, %v355_v1 }
  0x69   : > { %361 = vst.msk [vmem:[%s1191_s6 + $0x20] sm:$0xff] %vm326_vm0, %v351_v3 }
  0x6a   : > { %362 = vst.msk [vmem:[%s1191_s6 + $0x28] sm:$0xff] %vm326_vm0, %v356_v4 }
  0x6b   : > { %s1286_s25 = smov (!%p372_p4, %s371_s25), 6 }
  0x6c   : > { %s667_s29 = sshll.u32 %s1286_s25, 7 }
  0x6d   : > { %p670_p6 = scmp.eq.s32.totalorder %s667_s29, 0 }
  0x6e   : > { %842 = sdivrem.u32 (!%p670_p6), %s1286_s25, 6 }
  0x6f   : > { %380 = sbr.rel (%p670_p6) target bundleno = 168 (0xa8), region = 84 }
  0x77   : > { %s1223_s14 = spop.drf %842 }
  0x78   : > { %p671_p5 = scmp.le.s32.totalorder %s1223_s14, 0 }
  0x79   : > { %s1273_s9 = smov (!%p671_p5), %s1217_s28  ;;  %s1274_s30 = smov (!%p671_p5), %s1191_s6 }
  0x7a   : > { %610 = sbr.rel (%p671_p5) target bundleno = 139 (0x8b), region = 195  ;;  %s1232_s2 = smov (!%p671_p5), 0  }
  0x7b   : > { %s1234_s3 = smov (!%p671_p5), 0  }
  0x81 LB: >> { %v454_v5 = vld [vmem:[%s972_s30] sm:$0xff]  ;;  %v456_v6 = vld [vmem:[%s972_s30 + $0x8] sm:$0xff]  ;;  %v458_v7 = vld [vmem:[%s972_s30 + $0x10] sm:$0xff]  ;;  %s466_s4 = sadd.s32 1, %s976_s2  ;;  %s448_s3 = sadd.s32 1, %s980_s3   ;;  %s980_s3 = sphi %s1234_s3, %s448_s3   ;;  %s976_s2 = sphi %s1232_s2, %s1275_s2   ;;  %s972_s30 = sphi %s1274_s30, %s471_s30   ;;  %s968_s9 = sphi %s1273_s9, %s472_s9  }
  0x82   : >> { %455 = vst [vmem:[%s968_s9] sm:$0xff] %v454_v5  ;;  %457 = vst [vmem:[%s968_s9 + $0x8] sm:$0xff] %v456_v6  ;;  %v460_v8 = vld [vmem:[%s972_s30 + $0x18] sm:$0xff]  ;;  %v462_v9 = vld [vmem:[%s972_s30 + $0x20] sm:$0xff]  ;;  %p467_p7 = scmp.ge.s32.totalorder %s466_s4, %s1223_s14  ;;  %p447_p8 = scmp.ge.s32.totalorder %s448_s3, %s1223_s14 }
  0x83   : >> { %459 = vst [vmem:[%s968_s9 + $0x10] sm:$0xff] %v458_v7  ;;  %v464_v10 = vld [vmem:[%s972_s30 + $0x28] sm:$0xff]  ;;  %461 = vst [vmem:[%s968_s9 + $0x18] sm:$0xff] %v460_v8 }
  0x84   : >> { %463 = vst [vmem:[%s968_s9 + $0x20] sm:$0xff] %v462_v9  ;;  %465 = vst [vmem:[%s968_s9 + $0x28] sm:$0xff] %v464_v10  ;;  %s1288_s4 = smov (%p467_p7, %s466_s4), 0  ;;  %450 = sbr.rel (!%p447_p8) target bundleno = 129 (0x81), region = 201 }
  0x85   : >> { %s469_s5 = smul.u32 48, %s1288_s4  ;;  %s1275_s2 = smov %s1288_s4 }
  0x87   : >> { %s471_s30 = scalar_lea.vmem %s1191_s6, %s469_s5 [#allocation3]   ;;  %s472_s9 = scalar_lea.vmem %s1217_s28, %s469_s5  }
  0x8b PF: > { %844 = sdivrem.u32 %s1286_s25, 6 }
  0x8c   : > { %s672_s11 = smul.u32 48, %s1223_s14 }
  0x8e   : > { %s477_s12 = scalar_lea.vmem %s1191_s6, %s672_s11 [#allocation3]   ;;  %s479_s15 = scalar_lea.vmem %s1217_s28, %s672_s11  }
  0x94   : > { %s845_s16 = spop.drf %844 }
  0x95   : > { %p674_p9 = scmp.le.s32.totalorder %s845_s16, 0 }
  0x96   : > { %s982_s17 = smov (!%p674_p9), %s479_s15   ;;  %s986_s18 = smov (!%p674_p9), %s477_s12  }
  0x97   : > { %624 = sbr.rel (%p674_p9) target bundleno = 168 (0xa8), region = 206  ;;  %s990_s19 = smov (!%p674_p9), 0  }
  0x98   : > { %s994_s20 = smov (!%p674_p9), 0  }
  0x9e LB: >> { %v489_v11 = vld [vmem:[%s988_s18] sm:$0xff]  ;;  %s491_s21 = sadd.s32 1, %s992_s19  ;;  %s483_s20 = sadd.s32 1, %s996_s20   ;;  %s996_s20 = sphi %s994_s20, %s483_s20   ;;  %s992_s19 = sphi %s990_s19, %s991_s19   ;;  %s988_s18 = sphi %s986_s18, %s496_s18   ;;  %s984_s17 = sphi %s982_s17, %s497_s17  }
  0x9f   : >> { %490 = vst [vmem:[%s984_s17] sm:$0xff] %v489_v11  ;;  %p492_p10 = scmp.ge.s32.totalorder %s491_s21, %s845_s16  ;;  %p482_p11 = scmp.ge.s32.totalorder %s483_s20, %s845_s16 }
  0xa1   : >> { %s1290_s21 = smov (%p492_p10, %s491_s21), 0  ;;  %485 = sbr.rel (!%p482_p11) target bundleno = 158 (0x9e), region = 212 }
  0xa2   : >> { %s675_s22 = sshll.u32 %s1290_s21, 3  ;;  %s991_s19 = smov %s1290_s21  }
  0xa3   : >> { %s496_s18 = scalar_lea.vmem %s477_s12, %s675_s22 [#allocation3]   ;;  %s497_s17 = scalar_lea.vmem %s479_s15, %s675_s22  }
  0xa8 PF: > { %p8_p12 = scmp.ge.s32.totalorder %s1027_s10, 4   ;;  %s1276_s6 = smov %s928_s7 }
  0xa9   : > { %s1277_s7 = smov %s1037_s13  ;;  %s1278_s8 = smov %s1027_s10 }
  0xaa   :  { %10 = sbr.rel (!%p8_p12) target bundleno = 2 (0x2), region = 223 }

// kernel: inception_d_forward.8
= control target key start
LH: loop header
LB: loop body
LE: loop exit
PB: predicated region body
PF: predicated region fallthrough
CT: control target
= control target key end

     0   :  { %s4108_s12 = smov 0   ;;  %s5186_s0 = inlined_call_operand.vmem [shape: bf16[32,1728], index: 0, kind: input, shape index: {}]   ;;  %s5187_s1 = inlined_call_operand.vmem [shape: bf16[1728,384], index: 1, kind: input, shape index: {}]   ;;  %s5188_s2 = inlined_call_operand.vmem [shape: f32[1,384], index: 2, kind: input, shape index: {}]   ;;  %s5189_s3 = inlined_call_operand.vmem [shape: f32[32,384], index: 3, kind: output, shape index: {}]  }
   0x1 LB: > { %s3102_s13 = sadd.s32 4294967295, %s4085_s12   ;;  %p3106_p0 = scmp.ge.s32.totalorder %s4085_s12, 1  ;;  %s4085_s12 = sphi %s4108_s12, %s13_s12  }
   0x2   : > { %p139_p1 = scmp.lt.s32.totalorder %s4085_s12, 3 }
   0x4   : > { %p140_p2 = pnand %p3106_p0, %p139_p1 }
   0x5   : > { %v3624_v0 = vld [vmem:[%s5187_s1 + $0x4] ss:$12 sps:$4 sm:$0xff] (!%p140_p2)   ;;  %v3628_v2 = vld [vmem:[%s5187_s1] ss:$12 sps:$4 sm:$0xff] (!%p140_p2)   ;;  %v3630_v4 = vld [vmem:[%s5187_s1 + $0x1c] ss:$12 sps:$4 sm:$0xff] (!%p140_p2)  }
   0x6   : > { %143 = sbr.rel (%p140_p2) target bundleno = 577 (0x241), region = 32  ;;  %v3626_v1 = vld [vmem:[%s5187_s1 + $0x184] ss:$12 sps:$4 sm:$0xff] (!%p140_p2)   ;;  %2444 = vmatprep.subr.bf16.mxu1 (!%p140_p2), %v3624_v0  ;;  %v3629_v3 = vld [vmem:[%s5187_s1 + $0x180] ss:$12 sps:$4 sm:$0xff] (!%p140_p2)   ;;  %s3107_s24 = sshll.u32 (!%p140_p2), %s3102_s13, 1 }
   0x7   : > { %2487 = vmatprep.subr.bf16.mxu0 (!%p140_p2), %v3626_v1  ;;  %2445 = vmatpush1.bf16.msra.mxu1 (!%p140_p2), %v3628_v2  ;;  %v3632_v5 = vld [vmem:[%s5187_s1 + $0x19c] ss:$12 sps:$4 sm:$0xff] (!%p140_p2)   ;;  %v3634_v6 = vld [vmem:[%s5187_s1 + $0x18] ss:$12 sps:$4 sm:$0xff] (!%p140_p2)   ;;  %v3636_v8 = vld [vmem:[%s5187_s1 + $0x34] ss:$12 sps:$4 sm:$0xff] (!%p140_p2)  }
   0x8   : > { %2488 = vmatpush1.bf16.msra.mxu0 (!%p140_p2), %v3629_v3  ;;  %2446 = vmatprep.subr.bf16.mxu1 (!%p140_p2), %v3630_v4  ;;  %v3635_v7 = vld [vmem:[%s5187_s1 + $0x198] ss:$12 sps:$4 sm:$0xff] (!%p140_p2)   ;;  %v3638_v9 = vld [vmem:[%s5187_s1 + $0x1b4] ss:$12 sps:$4 sm:$0xff] (!%p140_p2)   ;;  %v3640_v10 = vld [vmem:[%s5187_s1 + $0x30] ss:$12 sps:$4 sm:$0xff] (!%p140_p2)  }
   0x9   : > { %2489 = vmatprep.subr.bf16.mxu0 (!%p140_p2), %v3632_v5  ;;  %v3641_v11 = vld [vmem:[%s5187_s1 + $0x1b0] ss:$12 sps:$4 sm:$0xff] (!%p140_p2)   ;;  %v3642_v12 = vld [vmem:[%s5187_s1 + $0x4c] ss:$12 sps:$4 sm:$0xff] (!%p140_p2)   ;;  %v3646_v14 = vld [vmem:[%s5187_s1 + $0x48] ss:$12 sps:$4 sm:$0xff] (!%p140_p2)  }
   0xa   : > { %v3644_v13 = vld [vmem:[%s5187_s1 + $0x1cc] ss:$12 sps:$4 sm:$0xff] (!%p140_p2)   ;;  %v3647_v15 = vld [vmem:[%s5187_s1 + $0x1c8] ss:$12 sps:$4 sm:$0xff] (!%p140_p2)   ;;  %v3648_v16 = vld [vmem:[%s5187_s1 + $0x64] ss:$12 sps:$4 sm:$0xff] (!%p140_p2)  }
   0xb   : > { %2447 = vmatpush1.bf16.msra.mxu1 (!%p140_p2), %v3634_v6  ;;  %v3650_v17 = vld [vmem:[%s5187_s1 + $0x1e4] ss:$12 sps:$4 sm:$0xff] (!%p140_p2)   ;;  %v3652_v18 = vld [vmem:[%s5187_s1 + $0x60] ss:$12 sps:$4 sm:$0xff] (!%p140_p2)   ;;  %v3654_v20 = vld [vmem:[%s5187_s1 + $0x7c] ss:$12 sps:$4 sm:$0xff] (!%p140_p2)  }
   0xc   : > { %2490 = vmatpush1.bf16.msra.mxu0 (!%p140_p2), %v3635_v7  ;;  %2448 = vmatprep.subr.bf16.mxu1 (!%p140_p2), %v3636_v8  ;;  %v3653_v19 = vld [vmem:[%s5187_s1 + $0x1e0] ss:$12 sps:$4 sm:$0xff] (!%p140_p2)   ;;  %v3656_v21 = vld [vmem:[%s5187_s1 + $0x1fc] ss:$12 sps:$4 sm:$0xff] (!%p140_p2)   ;;  %v3658_v22 = vld [vmem:[%s5187_s1 + $0x78] ss:$12 sps:$4 sm:$0xff] (!%p140_p2)  }
   0xd   : > { %2491 = vmatprep.subr.bf16.mxu0 %v3638_v9  ;;  %v3659_v23 = vld [vmem:[%s5187_s1 + $0x1f8] ss:$12 sps:$4 sm:$0xff]   ;;  %v3660_v24 = vld [vmem:[%s5187_s1 + $0x94] ss:$12 sps:$4 sm:$0xff]   ;;  %v3664_v26 = vld [vmem:[%s5187_s1 + $0x90] ss:$12 sps:$4 sm:$0xff]  }
   0xe   : > { %v3662_v25 = vld [vmem:[%s5187_s1 + $0x214] ss:$12 sps:$4 sm:$0xff]   ;;  %v3665_v27 = vld [vmem:[%s5187_s1 + $0x210] ss:$12 sps:$4 sm:$0xff]   ;;  %v3666_v28 = vld [vmem:[%s5187_s1 + $0xac] ss:$12 sps:$4 sm:$0xff]  }
   0xf   : > { %2449 = vmatpush1.bf16.msra.mxu1 %v3640_v10  ;;  %v3668_v29 = vld [vmem:[%s5187_s1 + $0x22c] ss:$12 sps:$4 sm:$0xff]   ;;  %v3670_v30 = vld [vmem:[%s5187_s1 + $0xa8] ss:$12 sps:$4 sm:$0xff]   ;;  %v3672_v32 = vld [vmem:[%s5187_s1 + $0xc4] ss:$12 sps:$4 sm:$0xff]  }
  0x10   : > { %2492 = vmatpush1.bf16.msra.mxu0 %v3641_v11  ;;  %2450 = vmatprep.subr.bf16.mxu1 %v3642_v12  ;;  %v3671_v31 = vld [vmem:[%s5187_s1 + $0x228] ss:$12 sps:$4 sm:$0xff]   ;;  %p166_p3 = scmp.lt.s32.totalorder %s3107_s24, 3  ;;  %v3674_v33 = vld [vmem:[%s5187_s1 + $0x244] ss:$12 sps:$4 sm:$0xff]   ;;  %vm2440_vm0 = vcmask 523264  }
  0x11   : > { %2493 = vmatprep.subr.bf16.mxu0 %v3644_v13  ;;  %v3676_v34 = vld [vmem:[%s5187_s1 + $0xc0] ss:$12 sps:$4 sm:$0xff]   ;;  %v3678_v36 = vld [vmem:[%s5187_s1 + $0xdc] ss:$12 sps:$4 sm:$0xff]   ;;  %v3682_v38 = vld [vmem:[%s5187_s1 + $0xd8] ss:$12 sps:$4 sm:$0xff]  }
  0x12   : > { %v3677_v35 = vld [vmem:[%s5187_s1 + $0x240] ss:$12 sps:$4 sm:$0xff]   ;;  %s5191_s24 = smov (!%p166_p3, %s3107_s24), 3  ;;  %v3680_v37 = vld [vmem:[%s5187_s1 + $0x25c] ss:$12 sps:$4 sm:$0xff]  }
  0x13   : > { %2451 = vmatpush1.bf16.msra.mxu1 %v3646_v14  ;;  %v3683_v39 = vld [vmem:[%s5187_s1 + $0x258] ss:$12 sps:$4 sm:$0xff]   ;;  %v3684_v40 = vld [vmem:[%s5187_s1 + $0xf4] ss:$12 sps:$4 sm:$0xff]   ;;  %s3613_s21 = smul.u32 56, %s5191_s24 }
  0x14   : > { %2494 = vmatpush1.bf16.msra.mxu0 %v3647_v15  ;;  %2452 = vmatprep.subr.bf16.mxu1 %v3648_v16  ;;  %v3686_v41 = vld [vmem:[%s5187_s1 + $0x274] ss:$12 sps:$4 sm:$0xff]   ;;  %v3688_v42 = vld [vmem:[%s5187_s1 + $0xf0] ss:$12 sps:$4 sm:$0xff]   ;;  %v3690_v44 = vld [vmem:[%s5187_s1 + $0x10c] ss:$12 sps:$4 sm:$0xff]  }
  0x15   : > { %2495 = vmatprep.subr.bf16.mxu0 %v3650_v17  ;;  %v3689_v43 = vld [vmem:[%s5187_s1 + $0x270] ss:$12 sps:$4 sm:$0xff]   ;;  %s4259_s13 = scalar_lea.vmem %s5186_s0, %s3613_s21  ;;  %v3692_v45 = vld [vmem:[%s5187_s1 + $0x28c] ss:$12 sps:$4 sm:$0xff]   ;;  %v3694_v46 = vld [vmem:[%s5187_s1 + $0x108] ss:$12 sps:$4 sm:$0xff]  }
  0x16   : > { %v3695_v47 = vld [vmem:[%s5187_s1 + $0x288] ss:$12 sps:$4 sm:$0xff]   ;;  %v3696_v48 = vld [vmem:[%s5187_s1 + $0x124] ss:$12 sps:$4 sm:$0xff]   ;;  %v3700_v52 = vld [vmem:[%s5187_s1 + $0x120] ss:$12 sps:$4 sm:$0xff]  }
  0x17   : > { %2453 = vmatpush1.bf16.msra.mxu1 %v3652_v18  ;;  %v4274_v49 = vld [vmem:[%s4259_s13 + $0x4] ss:$56 sps:$4 sm:$0xff]   ;;  %v3701_v53 = vld [vmem:[%s5187_s1 + $0x2a0] ss:$12 sps:$4 sm:$0xff]   ;;  %v3718_v0 = vld [vmem:[%s5187_s1 + $0x168] ss:$12 sps:$4 sm:$0xff]  }
  0x18   : > { %2496 = vmatpush1.bf16.msra.mxu0 %v3653_v19  ;;  %2454 = vmatprep.subr.bf16.mxu1 %v3654_v20  ;;  %v3698_v50 = vld [vmem:[%s5187_s1 + $0x2a4] ss:$12 sps:$4 sm:$0xff]   ;;  %v3702_v54 = vld [vmem:[%s5187_s1 + $0x13c] ss:$12 sps:$4 sm:$0xff]   ;;  %v3708_v58 = vld [vmem:[%s5187_s1 + $0x154] ss:$12 sps:$4 sm:$0xff]  }
  0x19   : > { %2497 = vmatprep.subr.bf16.mxu0 %v3656_v21  ;;  %v4280_v51 = vld [vmem:[%s4259_s13 + $0xc] ss:$56 sps:$4 sm:$0xff]   ;;  %2476 = vmatprep.mubr.bf16.mxu1 %v4274_v49  ;;  %v3704_v55 = vld [vmem:[%s5187_s1 + $0x2bc] ss:$12 sps:$4 sm:$0xff]   ;;  %v3710_v59 = vld [vmem:[%s5187_s1 + $0x2d4] ss:$12 sps:$4 sm:$0xff]  }
  0x1a   : > { %2519 = vmatprep.mubr.bf16.mxu0 %v4280_v51  ;;  %v3706_v56 = vld [vmem:[%s5187_s1 + $0x138] ss:$12 sps:$4 sm:$0xff]   ;;  %v3712_v60 = vld [vmem:[%s5187_s1 + $0x150] ss:$12 sps:$4 sm:$0xff]   ;;  %v3719_v1 = vld [vmem:[%s5187_s1 + $0x2e8] ss:$12 sps:$4 sm:$0xff]  }
  0x1b   : > { %2455 = vmatpush1.bf16.msra.mxu1 %v3658_v22  ;;  %v3707_v57 = vld [vmem:[%s5187_s1 + $0x2b8] ss:$12 sps:$4 sm:$0xff]   ;;  %v3713_v61 = vld [vmem:[%s5187_s1 + $0x2d0] ss:$12 sps:$4 sm:$0xff]   ;;  %v4336_v5 = vld [vmem:[%s4259_s13 + $0x8] ss:$56 sps:$4 sm:$0xff]  }
  0x1c   : > { %2498 = vmatpush1.bf16.msra.mxu0 %v3659_v23  ;;  %2456 = vmatprep.subr.bf16.mxu1 %v3660_v24  ;;  %v3714_v62 = vld [vmem:[%s5187_s1 + $0x16c] ss:$12 sps:$4 sm:$0xff]   ;;  %v3728_v2 = vld [vmem:[%s5187_s1 + $0x304] ss:$12 sps:$4 sm:$0xff]   ;;  %v3734_v8 = vld [vmem:[%s5187_s1 + $0x31c] ss:$12 sps:$4 sm:$0xff]  }
  0x1d   : > { %2499 = vmatprep.subr.bf16.mxu0 %v3662_v25  ;;  %v3716_v63 = vld [vmem:[%s5187_s1 + $0x2ec] ss:$12 sps:$4 sm:$0xff]   ;;  %v3731_v3 = vld [vmem:[%s5187_s1 + $0x904] ss:$12 sps:$4 sm:$0xff]   ;;  %v3737_v9 = vld [vmem:[%s5187_s1 + $0x91c] ss:$12 sps:$4 sm:$0xff]  }
  0x1e   : > { %v4333_v4 = vld [vmem:[%s4259_s13] ss:$56 sps:$4 sm:$0xff]   ;;  %v3738_v14 = vld [vmem:[%s5187_s1 + $0x330] ss:$12 sps:$4 sm:$0xff]   ;;  %v3744_v18 = vld [vmem:[%s5187_s1 + $0x348] ss:$12 sps:$4 sm:$0xff]  }
  0x1f   : > { %2457 = vmatpush1.bf16.msra.mxu1 %v3664_v26  ;;  %v3726_v6 = vld [vmem:[%s5187_s1 + $0x300] ss:$12 sps:$4 sm:$0xff]   ;;  %v3732_v10 = vld [vmem:[%s5187_s1 + $0x318] ss:$12 sps:$4 sm:$0xff]   ;;  %v3741_v15 = vld [vmem:[%s5187_s1 + $0x930] ss:$12 sps:$4 sm:$0xff]  }
  0x20   : > { %2500 = vmatpush1.bf16.msra.mxu0 %v3665_v27  ;;  %2458 = vmatprep.subr.bf16.mxu1 %v3666_v28  ;;  %v3729_v7 = vld [vmem:[%s5187_s1 + $0x900] ss:$12 sps:$4 sm:$0xff]   ;;  %v3735_v11 = vld [vmem:[%s5187_s1 + $0x918] ss:$12 sps:$4 sm:$0xff]   ;;  %v3747_v19 = vld [vmem:[%s5187_s1 + $0x948] ss:$12 sps:$4 sm:$0xff]  }
  0x21   : > { %2501 = vmatprep.subr.bf16.mxu0 %v3668_v29  ;;  %v3740_v12 = vld [vmem:[%s5187_s1 + $0x334] ss:$12 sps:$4 sm:$0xff]   ;;  %v3746_v16 = vld [vmem:[%s5187_s1 + $0x34c] ss:$12 sps:$4 sm:$0xff]   ;;  %v3752_v20 = vld [vmem:[%s5187_s1 + $0x364] ss:$12 sps:$4 sm:$0xff]  }
  0x22   : > { %v3743_v13 = vld [vmem:[%s5187_s1 + $0x934] ss:$12 sps:$4 sm:$0xff]   ;;  %v3749_v17 = vld [vmem:[%s5187_s1 + $0x94c] ss:$12 sps:$4 sm:$0xff]   ;;  %v3755_v21 = vld [vmem:[%s5187_s1 + $0x964] ss:$12 sps:$4 sm:$0xff]  }
  0x23   : > { %2459 = vmatpush1.bf16.msra.mxu1 %v3670_v30  ;;  %v3798_v22 = vld [vmem:[%s4259_s13 + $0x34] ss:$56 sps:$4 sm:$0xff]   ;;  %v3758_v25 = vld [vmem:[%s5187_s1 + $0x37c] ss:$12 sps:$4 sm:$0xff]   ;;  %v3756_v27 = vld [vmem:[%s5187_s1 + $0x378] ss:$12 sps:$4 sm:$0xff]  }
  0x24   : > { %2502 = vmatpush1.bf16.msra.mxu0 %v3671_v31  ;;  %2460 = vmatprep.subr.bf16.mxu1 %v3672_v32  ;;  %v3750_v23 = vld [vmem:[%s5187_s1 + $0x360] ss:$12 sps:$4 sm:$0xff]   ;;  %v3761_v26 = vld [vmem:[%s5187_s1 + $0x97c] ss:$12 sps:$4 sm:$0xff]   ;;  %v3759_v28 = vld [vmem:[%s5187_s1 + $0x978] ss:$12 sps:$4 sm:$0xff]  }
  0x25   : > { %2503 = vmatprep.subr.bf16.mxu0 %v3674_v33  ;;  %v3753_v24 = vld [vmem:[%s5187_s1 + $0x960] ss:$12 sps:$4 sm:$0xff]   ;;  %v3762_v31 = vld [vmem:[%s5187_s1 + $0x390] ss:$12 sps:$4 sm:$0xff]  }
  0x26   : > { %v3764_v29 = vld [vmem:[%s5187_s1 + $0x394] ss:$12 sps:$4 sm:$0xff]   ;;  %v3765_v32 = vld [vmem:[%s5187_s1 + $0x990] ss:$12 sps:$4 sm:$0xff]   ;;  %v3770_v33 = vld [vmem:[%s5187_s1 + $0x3ac] ss:$12 sps:$4 sm:$0xff]  }
  0x27   : > { %2461 = vmatpush1.bf16.msra.mxu1 %v3676_v34  ;;  %v3767_v30 = vld [vmem:[%s5187_s1 + $0x994] ss:$12 sps:$4 sm:$0xff]   ;;  %v3773_v34 = vld [vmem:[%s5187_s1 + $0x9ac] ss:$12 sps:$4 sm:$0xff]  }
  0x28   : > { %2504 = vmatpush1.bf16.msra.mxu0 %v3677_v35  ;;  %2462 = vmatprep.subr.bf16.mxu1 %v3678_v36  ;;  %v3768_v35 = vld [vmem:[%s5187_s1 + $0x3a8] ss:$12 sps:$4 sm:$0xff]  }
  0x29   : > { %2505 = vmatprep.subr.bf16.mxu0 %v3680_v37  ;;  %v3771_v36 = vld [vmem:[%s5187_s1 + $0x9a8] ss:$12 sps:$4 sm:$0xff]   ;;  %v3776_v37 = vld [vmem:[%s5187_s1 + $0x3c4] ss:$12 sps:$4 sm:$0xff]  }
  0x2b   : > { %2463 = vmatpush1.bf16.msra.mxu1 %v3682_v38  ;;  %v3779_v38 = vld [vmem:[%s5187_s1 + $0x9c4] ss:$12 sps:$4 sm:$0xff]  }
  0x2c   : > { %2506 = vmatpush1.bf16.msra.mxu0 %v3683_v39  ;;  %2464 = vmatprep.subr.bf16.mxu1 %v3684_v40  ;;  %v4439_v39 = vld [vmem:[%s4259_s13 + $0x14] ss:$56 sps:$4 sm:$0xff]  }
  0x2d   : > { %2507 = vmatprep.subr.bf16.mxu0 %v3686_v41  ;;  %v3774_v40 = vld [vmem:[%s5187_s1 + $0x3c0] ss:$12 sps:$4 sm:$0xff]  }
  0x2e   : > { %v3777_v41 = vld [vmem:[%s5187_s1 + $0x9c0] ss:$12 sps:$4 sm:$0xff]  }
  0x2f   : > { %2465 = vmatpush1.bf16.msra.mxu1 %v3688_v42  ;;  %v3782_v42 = vld [vmem:[%s5187_s1 + $0x3dc] ss:$12 sps:$4 sm:$0xff]  }
  0x30   : > { %2508 = vmatpush1.bf16.msra.mxu0 %v3689_v43  ;;  %2466 = vmatprep.subr.bf16.mxu1 %v3690_v44  ;;  %v3785_v43 = vld [vmem:[%s5187_s1 + $0x9dc] ss:$12 sps:$4 sm:$0xff]   ;;  %v3780_v44 = vld [vmem:[%s5187_s1 + $0x3d8] ss:$12 sps:$4 sm:$0xff]  }
  0x31   : > { %2509 = vmatprep.subr.bf16.mxu0 %v3692_v45  ;;  %v3783_v45 = vld [vmem:[%s5187_s1 + $0x9d8] ss:$12 sps:$4 sm:$0xff]  }
  0x33   : > { %2467 = vmatpush1.bf16.msra.mxu1 %v3694_v46  ;;  %v3788_v46 = vld [vmem:[%s5187_s1 + $0x3f4] ss:$12 sps:$4 sm:$0xff]  }
  0x34   : > { %2510 = vmatpush1.bf16.msra.mxu0 %v3695_v47  ;;  %2468 = vmatprep.subr.bf16.mxu1 %v3696_v48  ;;  %v3791_v47 = vld [vmem:[%s5187_s1 + $0x9f4] ss:$12 sps:$4 sm:$0xff]   ;;  %v3786_v48 = vld [vmem:[%s5187_s1 + $0x3f0] ss:$12 sps:$4 sm:$0xff]  }
  0x35   : > { %2511 = vmatprep.subr.bf16.mxu0 %v3698_v50  ;;  %v3789_v50 = vld [vmem:[%s5187_s1 + $0x9f0] ss:$12 sps:$4 sm:$0xff]  }
  0x37   : > { %2469 = vmatpush1.bf16.msra.mxu1 %v3700_v52  ;;  %v3794_v52 = vld [vmem:[%s5187_s1 + $0x40c] ss:$12 sps:$4 sm:$0xff]  }
  0x38   : > { %2512 = vmatpush1.bf16.msra.mxu0 %v3701_v53  ;;  %2470 = vmatprep.subr.bf16.mxu1 %v3702_v54  ;;  %v3797_v53 = vld [vmem:[%s5187_s1 + $0xa0c] ss:$12 sps:$4 sm:$0xff]   ;;  %v3792_v54 = vld [vmem:[%s5187_s1 + $0x408] ss:$12 sps:$4 sm:$0xff]  }
  0x39   : > { %2513 = vmatprep.subr.bf16.mxu0 %v3704_v55  ;;  %v3795_v55 = vld [vmem:[%s5187_s1 + $0xa08] ss:$12 sps:$4 sm:$0xff]  }
  0x3b   : > { %2471 = vmatpush1.bf16.msra.mxu1 %v3706_v56  ;;  %v3802_v56 = vld [vmem:[%s5187_s1 + $0x424] ss:$12 sps:$4 sm:$0xff]  }
  0x3c   : > { %2514 = vmatpush1.bf16.msra.mxu0 %v3707_v57  ;;  %2472 = vmatprep.subr.bf16.mxu1 %v3708_v58  ;;  %v3804_v57 = vld [vmem:[%s5187_s1 + $0xc8] ss:$12 sps:$4 sm:$0xff]   ;;  %v3800_v58 = vld [vmem:[%s5187_s1 + $0x420] ss:$12 sps:$4 sm:$0xff]  }
  0x3d   : > { %2515 = vmatprep.subr.bf16.mxu0 %v3710_v59  ;;  %v3803_v59 = vld [vmem:[%s4259_s13 + $0x30] ss:$56 sps:$4 sm:$0xff]  }
  0x3f   : > { %2473 = vmatpush1.bf16.msra.mxu1 %v3712_v60  ;;  %v3805_v60 = vld [vmem:[%s5187_s1 + $0x8] ss:$12 sps:$4 sm:$0xff]  }
  0x40   : > { %2516 = vmatpush1.bf16.msra.mxu0 %v3713_v61  ;;  %2474 = vmatprep.subr.bf16.mxu1 %v3714_v62  ;;  %v3808_v61 = vld [vmem:[%s5187_s1 + $0x43c] ss:$12 sps:$4 sm:$0xff]   ;;  %v3809_v62 = vld [vmem:[%s5187_s1 + $0xe0] ss:$12 sps:$4 sm:$0xff]  }
  0x41   : > { %2517 = vmatprep.subr.bf16.mxu0 %v3716_v63  ;;  %v3806_v63 = vld [vmem:[%s5187_s1 + $0x438] ss:$12 sps:$4 sm:$0xff]  }
  0x43   : > { %2475 = vmatpush1.bf16.msra.mxu1 %v3718_v0  ;;  %v3810_v0 = vld [vmem:[%s5187_s1 + $0x20] ss:$12 sps:$4 sm:$0xff]  }
  0x44   : > { %2518 = vmatpush1.bf16.msra.mxu0 %v3719_v1  ;;  %2702 = vmatprep.subr.bf16.mxu1 %v3731_v3  ;;  %v3813_v1 = vld [vmem:[%s5187_s1 + $0x454] ss:$12 sps:$4 sm:$0xff]   ;;  %v3811_v3 = vld [vmem:[%s5187_s1 + $0x450] ss:$12 sps:$4 sm:$0xff]  }
  0x45   : > { %2530 = vmatprep.subr.bf16.mxu0 %v3728_v2  ;;  %v3814_v2 = vld [vmem:[%s5187_s1 + $0xf8] ss:$12 sps:$4 sm:$0xff]  }
  0x46   : > { %2477 = vmatmul.mubr.bf16.vlgmr.msra.gmra.mrb[0].mxu1 %v4333_v4 }
  0x47   : > { %2520 = vmatmul.mubr.bf16.vlgmr.msra.gmra.mrb[0].mxu0 %v4336_v5  ;;  %2703 = vmatpush1.bf16.msra.mxu1 %v3729_v7  ;;  %v3818_v7 = vld [vmem:[%s5187_s1 + $0x46c] ss:$12 sps:$4 sm:$0xff]  }
  0x48   : > { %2531 = vmatpush1.bf16.msra.mxu0 %v3726_v6  ;;  %2704 = vmatprep.subr.bf16.mxu1 %v3737_v9  ;;  %v3815_v6 = vld [vmem:[%s5187_s1 + $0x38] ss:$12 sps:$4 sm:$0xff]   ;;  %v3820_v9 = vld [vmem:[%s5187_s1 + $0x50] ss:$12 sps:$4 sm:$0xff]  }
  0x49   : > { %2532 = vmatprep.subr.bf16.mxu0 %v3734_v8  ;;  %3449 = vmatprep.mubr.msk.bf16.mxu1 %vm2440_vm0, %v3798_v22  ;;  %v3819_v8 = vld [vmem:[%s5187_s1 + $0x110] ss:$12 sps:$4 sm:$0xff]   ;;  %v3838_v22 = vld [vmem:[%s5187_s1 + $0x98] ss:$12 sps:$4 sm:$0xff]  }
  0x4a   : > { %2562 = vmatprep.mubr.bf16.mxu0 %v4439_v39 }
  0x4b   : > { %2705 = vmatpush1.bf16.msra.mxu1 %v3735_v11  ;;  %v3827_v11 = vld [vmem:[%s5187_s1 + $0x128] ss:$12 sps:$4 sm:$0xff]  }
  0x4c   : > { %2533 = vmatpush1.bf16.msra.mxu0 %v3732_v10  ;;  %2706 = vmatprep.subr.bf16.mxu1 %v3743_v13  ;;  %v3826_v10 = vld [vmem:[%s5187_s1 + $0x484] ss:$12 sps:$4 sm:$0xff]   ;;  %v3824_v13 = vld [vmem:[%s5187_s1 + $0x480] ss:$12 sps:$4 sm:$0xff]  }
  0x4d   : > { %2534 = vmatprep.subr.bf16.mxu0 %v3740_v12  ;;  %v4541_v12 = vld [vmem:[%s4259_s13 + $0x10] ss:$56 sps:$4 sm:$0xff]  }
  0x4f   : > { %2707 = vmatpush1.bf16.msra.mxu1 %v3741_v15  ;;  %v3831_v15 = vld [vmem:[%s5187_s1 + $0x49c] ss:$12 sps:$4 sm:$0xff]  }
  0x50   : > { %2535 = vmatpush1.bf16.msra.mxu0 %v3738_v14  ;;  %2708 = vmatprep.subr.bf16.mxu1 %v3749_v17  ;;  %v3828_v14 = vld [vmem:[%s5187_s1 + $0x68] ss:$12 sps:$4 sm:$0xff]   ;;  %v3829_v17 = vld [vmem:[%s5187_s1 + $0x498] ss:$12 sps:$4 sm:$0xff]  }
  0x51   : > { %2536 = vmatprep.subr.bf16.mxu0 %v3746_v16  ;;  %v3832_v16 = vld [vmem:[%s5187_s1 + $0x140] ss:$12 sps:$4 sm:$0xff]  }
  0x53   : > { %2709 = vmatpush1.bf16.msra.mxu1 %v3747_v19  ;;  %v3836_v19 = vld [vmem:[%s5187_s1 + $0x4b4] ss:$12 sps:$4 sm:$0xff]  }
  0x54   : > { %2537 = vmatpush1.bf16.msra.mxu0 %v3744_v18  ;;  %2710 = vmatprep.subr.bf16.mxu1 %v3755_v21  ;;  %v3833_v18 = vld [vmem:[%s5187_s1 + $0x80] ss:$12 sps:$4 sm:$0xff]   ;;  %v3834_v21 = vld [vmem:[%s5187_s1 + $0x4b0] ss:$12 sps:$4 sm:$0xff]  }
  0x55   : > { %2538 = vmatprep.subr.bf16.mxu0 %v3752_v20  ;;  %v3837_v20 = vld [vmem:[%s5187_s1 + $0x158] ss:$12 sps:$4 sm:$0xff]  }
  0x57   : > { %2711 = vmatpush1.bf16.msra.mxu1 %v3753_v24  ;;  %v3842_v24 = vld [vmem:[%s5187_s1 + $0x170] ss:$12 sps:$4 sm:$0xff]  }
  0x58   : > { %2539 = vmatpush1.bf16.msra.mxu0 %v3750_v23  ;;  %2712 = vmatprep.subr.bf16.mxu1 %v3761_v26  ;;  %v3841_v23 = vld [vmem:[%s5187_s1 + $0x4cc] ss:$12 sps:$4 sm:$0xff]   ;;  %v3843_v26 = vld [vmem:[%s5187_s1 + $0xb0] ss:$12 sps:$4 sm:$0xff]  }
  0x59   : > { %2540 = vmatprep.subr.bf16.mxu0 %v3758_v25  ;;  %v3839_v25 = vld [vmem:[%s5187_s1 + $0x4c8] ss:$12 sps:$4 sm:$0xff]  }
  0x5b   : > { %2713 = vmatpush1.bf16.msra.mxu1 %v3759_v28  ;;  %v3847_v28 = vld [vmem:[%s5187_s1 + $0x248] ss:$12 sps:$4 sm:$0xff]  }
  0x5c   : > { %2541 = vmatpush1.bf16.msra.mxu0 %v3756_v27  ;;  %2714 = vmatprep.subr.bf16.mxu1 %v3767_v30  ;;  %v3846_v27 = vld [vmem:[%s5187_s1 + $0x4e4] ss:$12 sps:$4 sm:$0xff]   ;;  %v3848_v30 = vld [vmem:[%s5187_s1 + $0x188] ss:$12 sps:$4 sm:$0xff]  }
  0x5d   : > { %2542 = vmatprep.subr.bf16.mxu0 %v3764_v29  ;;  %v3844_v29 = vld [vmem:[%s5187_s1 + $0x4e0] ss:$12 sps:$4 sm:$0xff]  }
  0x5f   : > { %2715 = vmatpush1.bf16.msra.mxu1 %v3765_v32  ;;  %v3852_v32 = vld [vmem:[%s5187_s1 + $0x260] ss:$12 sps:$4 sm:$0xff]  }
  0x60   : > { %2543 = vmatpush1.bf16.msra.mxu0 %v3762_v31  ;;  %2716 = vmatprep.subr.bf16.mxu1 %v3773_v34  ;;  %v3851_v31 = vld [vmem:[%s5187_s1 + $0x4fc] ss:$12 sps:$4 sm:$0xff]   ;;  %v3853_v34 = vld [vmem:[%s5187_s1 + $0x1a0] ss:$12 sps:$4 sm:$0xff]  }
  0x61   : > { %2544 = vmatprep.subr.bf16.mxu0 %v3770_v33  ;;  %v3849_v33 = vld [vmem:[%s5187_s1 + $0x4f8] ss:$12 sps:$4 sm:$0xff]  }
  0x63   : > { %2717 = vmatpush1.bf16.msra.mxu1 %v3771_v36  ;;  %v3856_v36 = vld [vmem:[%s5187_s1 + $0x514] ss:$12 sps:$4 sm:$0xff]  }
  0x64   : > { %2545 = vmatpush1.bf16.msra.mxu0 %v3768_v35  ;;  %2718 = vmatprep.subr.bf16.mxu1 %v3779_v38  ;;  %v4612_v35 = vld [vmem:[%s4259_s13 + $0x1c] ss:$56 sps:$4 sm:$0xff]   ;;  %v3858_v38 = vld [vmem:[%s5187_s1 + $0x1b8] ss:$12 sps:$4 sm:$0xff]  }
  0x65   : > { %2546 = vmatprep.subr.bf16.mxu0 %v3776_v37  ;;  %v3857_v37 = vld [vmem:[%s5187_s1 + $0x278] ss:$12 sps:$4 sm:$0xff]  }
  0x67   : > { %2719 = vmatpush1.bf16.msra.mxu1 %v3777_v41  ;;  %v3859_v41 = vld [vmem:[%s5187_s1 + $0x528] ss:$12 sps:$4 sm:$0xff]  }
  0x68   : > { %2547 = vmatpush1.bf16.msra.mxu0 %v3774_v40  ;;  %2720 = vmatprep.subr.bf16.mxu1 %v3785_v43  ;;  %v3861_v40 = vld [vmem:[%s5187_s1 + $0x52c] ss:$12 sps:$4 sm:$0xff]   ;;  %v3866_v43 = vld [vmem:[%s5187_s1 + $0x544] ss:$12 sps:$4 sm:$0xff]  }
  0x69   : > { %2548 = vmatprep.subr.bf16.mxu0 %v3782_v42  ;;  %v3863_v42 = vld [vmem:[%s5187_s1 + $0x1d0] ss:$12 sps:$4 sm:$0xff]  }
  0x6b   : > { %2721 = vmatpush1.bf16.msra.mxu1 %v3783_v45  ;;  %v3864_v45 = vld [vmem:[%s5187_s1 + $0x540] ss:$12 sps:$4 sm:$0xff]  }
  0x6c   : > { %2549 = vmatpush1.bf16.msra.mxu0 %v3780_v44  ;;  %2722 = vmatprep.subr.bf16.mxu1 %v3791_v47  ;;  %v3867_v44 = vld [vmem:[%s5187_s1 + $0x2a8] ss:$12 sps:$4 sm:$0xff]  }
  0x6d   : > { %2550 = vmatprep.subr.bf16.mxu0 %v3788_v46  ;;  %v3868_v46 = vld [vmem:[%s5187_s1 + $0x1e8] ss:$12 sps:$4 sm:$0xff]  }
  0x6e   : > { %v3871_v47 = vld [vmem:[%s5187_s1 + $0x55c] ss:$12 sps:$4 sm:$0xff]  }
  0x6f   : > { %2723 = vmatpush1.bf16.msra.mxu1 %v3789_v50  ;;  %v3869_v50 = vld [vmem:[%s5187_s1 + $0x558] ss:$12 sps:$4 sm:$0xff]  }
  0x70   : > { %2551 = vmatpush1.bf16.msra.mxu0 %v3786_v48  ;;  %2724 = vmatprep.subr.bf16.mxu1 %v3797_v53  ;;  %v3872_v48 = vld [vmem:[%s5187_s1 + $0x2c0] ss:$12 sps:$4 sm:$0xff]  }
  0x71   : > { %2552 = vmatprep.subr.bf16.mxu0 %v3794_v52  ;;  %v3873_v52 = vld [vmem:[%s5187_s1 + $0x200] ss:$12 sps:$4 sm:$0xff]  }
  0x72   : > { %v3876_v53 = vld [vmem:[%s5187_s1 + $0x574] ss:$12 sps:$4 sm:$0xff]  }
  0x73   : > { %2725 = vmatpush1.bf16.msra.mxu1 %v3795_v55  ;;  %v3874_v55 = vld [vmem:[%s5187_s1 + $0x570] ss:$12 sps:$4 sm:$0xff]  }
  0x74   : > { %2553 = vmatpush1.bf16.msra.mxu0 %v3792_v54  ;;  %3453 = vmatprep.subr.bf16.mxu1 %v3804_v57  ;;  %v3877_v54 = vld [vmem:[%s5187_s1 + $0x2d8] ss:$12 sps:$4 sm:$0xff]  }
  0x75   : > { %2554 = vmatprep.subr.bf16.mxu0 %v3802_v56  ;;  %v3878_v56 = vld [vmem:[%s5187_s1 + $0x218] ss:$12 sps:$4 sm:$0xff]  }
  0x76   : > { %2735 = vmatmul.mubr.bf16.vlgmr.msra.gmra.mrb[4].mxu1 %v3803_v59  ;;  %v3881_v57 = vld [vmem:[%s5187_s1 + $0x58c] ss:$12 sps:$4 sm:$0xff]   ;;  %v3879_v59 = vld [vmem:[%s5187_s1 + $0x588] ss:$12 sps:$4 sm:$0xff]  }
  0x77   : > { %3454 = vmatpush3.bf16.msra.mxu1 %v3805_v60  ;;  %2777 = vmatprep.mubr.bf16.mxu1 %v4274_v49  ;;  %v3816_v49 = vld [vmem:[%s5187_s1 + $0x468] ss:$12 sps:$4 sm:$0xff]   ;;  %v3883_v60 = vld [vmem:[%s5187_s1 + $0x230] ss:$12 sps:$4 sm:$0xff]  }
  0x78   : > { %2555 = vmatpush1.bf16.msra.mxu0 %v3800_v58  ;;  %3455 = vmatprep.subr.bf16.mxu1 %v3809_v62  ;;  %v3882_v58 = vld [vmem:[%s5187_s1 + $0x2f0] ss:$12 sps:$4 sm:$0xff]   ;;  %v3887_v62 = vld [vmem:[%s5187_s1 + $0x3c8] ss:$12 sps:$4 sm:$0xff]  }
  0x79   : > { %2556 = vmatprep.subr.bf16.mxu0 %v3808_v61  ;;  %v3886_v61 = vld [vmem:[%s5187_s1 + $0x5a4] ss:$12 sps:$4 sm:$0xff]  }
  0x7b   : > { %3456 = vmatpush3.bf16.msra.mxu1 %v3810_v0  ;;  %v3888_v0 = vld [vmem:[%s5187_s1 + $0x308] ss:$12 sps:$4 sm:$0xff]  }
  0x7c   : > { %2557 = vmatpush1.bf16.msra.mxu0 %v3806_v63  ;;  %3457 = vmatprep.subr.bf16.mxu1 %v3814_v2  ;;  %v3884_v63 = vld [vmem:[%s5187_s1 + $0x5a0] ss:$12 sps:$4 sm:$0xff]  }
  0x7d   : > { %2558 = vmatprep.subr.bf16.mxu0 %v3813_v1  ;;  %v3891_v1 = vld [vmem:[%s5187_s1 + $0x5bc] ss:$12 sps:$4 sm:$0xff]   ;;  %v3892_v2 = vld [vmem:[%s5187_s1 + $0x3e0] ss:$12 sps:$4 sm:$0xff]  }
  0x7f   : > { %3458 = vmatpush3.bf16.msra.mxu1 %v3815_v6  ;;  %v3893_v6 = vld [vmem:[%s5187_s1 + $0x320] ss:$12 sps:$4 sm:$0xff]  }
  0x80   : > { %2559 = vmatpush1.bf16.msra.mxu0 %v3811_v3  ;;  %3459 = vmatprep.subr.bf16.mxu1 %v3819_v8  ;;  %v3889_v3 = vld [vmem:[%s5187_s1 + $0x5b8] ss:$12 sps:$4 sm:$0xff]  }
  0x81   : > { %2560 = vmatprep.subr.bf16.mxu0 %v3818_v7  ;;  %v3896_v7 = vld [vmem:[%s5187_s1 + $0x5d4] ss:$12 sps:$4 sm:$0xff]   ;;  %v3897_v8 = vld [vmem:[%s5187_s1 + $0x3f8] ss:$12 sps:$4 sm:$0xff]  }
  0x83   : > { %3460 = vmatpush3.bf16.msra.mxu1 %v3820_v9  ;;  %v3901_v9 = vld [vmem:[%s5187_s1 + $0x5ec] ss:$12 sps:$4 sm:$0xff]  }
  0x84   : > { %2561 = vmatpush1.bf16.msra.mxu0 %v3816_v49  ;;  %3461 = vmatprep.subr.bf16.mxu1 %v3827_v11  ;;  %v3898_v49 = vld [vmem:[%s5187_s1 + $0x338] ss:$12 sps:$4 sm:$0xff]   ;;  %v3903_v11 = vld [vmem:[%s5187_s1 + $0x350] ss:$12 sps:$4 sm:$0xff]  }
  0x85   : > { %2573 = vmatprep.subr.bf16.mxu0 %v3826_v10  ;;  %v3899_v10 = vld [vmem:[%s5187_s1 + $0x5e8] ss:$12 sps:$4 sm:$0xff]  }
  0x87   : > { %2563 = vmatmul.mubr.bf16.vlgmr.msra.gmra.mrb[0].mxu0 %v4541_v12  ;;  %3462 = vmatpush3.bf16.msra.mxu1 %v3828_v14  ;;  %v3910_v14 = vld [vmem:[%s5187_s1 + $0x428] ss:$12 sps:$4 sm:$0xff]  }
  0x88   : > { %2574 = vmatpush1.bf16.msra.mxu0 %v3824_v13  ;;  %3463 = vmatprep.subr.bf16.mxu1 %v3832_v16  ;;  %v3909_v13 = vld [vmem:[%s5187_s1 + $0x604] ss:$12 sps:$4 sm:$0xff]   ;;  %v3907_v16 = vld [vmem:[%s5187_s1 + $0x600] ss:$12 sps:$4 sm:$0xff]  }
  0x89   : > { %2575 = vmatprep.subr.bf16.mxu0 %v3831_v15  ;;  %2605 = vmatprep.mubr.bf16.mxu0 %v4612_v35  ;;  %v4745_v15 = vld [vmem:[%s4259_s13 + $0x18] ss:$56 sps:$4 sm:$0xff]  }
  0x8b   : > { %3464 = vmatpush3.bf16.msra.mxu1 %v3833_v18  ;;  %v3914_v18 = vld [vmem:[%s5187_s1 + $0x61c] ss:$12 sps:$4 sm:$0xff]  }
  0x8c   : > { %2576 = vmatpush1.bf16.msra.mxu0 %v3829_v17  ;;  %3465 = vmatprep.subr.bf16.mxu1 %v3837_v20  ;;  %v3911_v17 = vld [vmem:[%s5187_s1 + $0x368] ss:$12 sps:$4 sm:$0xff]   ;;  %v3912_v20 = vld [vmem:[%s5187_s1 + $0x618] ss:$12 sps:$4 sm:$0xff]  }
  0x8d   : > { %2577 = vmatprep.subr.bf16.mxu0 %v3836_v19  ;;  %v3915_v19 = vld [vmem:[%s5187_s1 + $0x440] ss:$12 sps:$4 sm:$0xff]  }
  0x8f   : > { %3466 = vmatpush3.bf16.msra.mxu1 %v3838_v22  ;;  %v3919_v22 = vld [vmem:[%s5187_s1 + $0x634] ss:$12 sps:$4 sm:$0xff]  }
  0x90   : > { %2578 = vmatpush1.bf16.msra.mxu0 %v3834_v21  ;;  %3467 = vmatprep.subr.bf16.mxu1 %v3842_v24  ;;  %v3916_v21 = vld [vmem:[%s5187_s1 + $0x380] ss:$12 sps:$4 sm:$0xff]   ;;  %v3917_v24 = vld [vmem:[%s5187_s1 + $0x630] ss:$12 sps:$4 sm:$0xff]  }
  0x91   : > { %2579 = vmatprep.subr.bf16.mxu0 %v3841_v23  ;;  %v3920_v23 = vld [vmem:[%s5187_s1 + $0x458] ss:$12 sps:$4 sm:$0xff]  }
  0x93   : > { %3468 = vmatpush3.bf16.msra.mxu1 %v3843_v26  ;;  %v3924_v26 = vld [vmem:[%s5187_s1 + $0x64c] ss:$12 sps:$4 sm:$0xff]  }
  0x94   : > { %2580 = vmatpush1.bf16.msra.mxu0 %v3839_v25  ;;  %3475 = vmatprep.subr.bf16.mxu1 %v3847_v28  ;;  %v3921_v25 = vld [vmem:[%s5187_s1 + $0x398] ss:$12 sps:$4 sm:$0xff]  }
  0x95   : > { %2581 = vmatprep.subr.bf16.mxu0 %v3846_v27  ;;  %v3925_v27 = vld [vmem:[%s5187_s1 + $0x470] ss:$12 sps:$4 sm:$0xff]  }
  0x96   : > { %2778 = vmatmul.mubr.bf16.vlgmr.msra.gmra.mrb[8].mxu1 %v4333_v4  ;;  %v3854_v4 = vld [vmem:[%s5187_s1 + $0x510] ss:$12 sps:$4 sm:$0xff]  }
  0x97   : > { %3476 = vmatpush3.bf16.msra.mxu1 %v3848_v30  ;;  %2818 = vmatprep.mubr.bf16.mxu1 %v4280_v51  ;;  %v3862_v51 = vld [vmem:[%s5187_s1 + $0x290] ss:$12 sps:$4 sm:$0xff]  }
  0x98   : > { %2582 = vmatpush1.bf16.msra.mxu0 %v3844_v29  ;;  %3477 = vmatprep.subr.bf16.mxu1 %v3852_v32  ;;  %v4785_v28 = vld [vmem:[%s4259_s13 + $0x24] ss:$56 sps:$4 sm:$0xff]   ;;  %v3922_v29 = vld [vmem:[%s5187_s1 + $0x648] ss:$12 sps:$4 sm:$0xff]  }
  0x99   : > { %2583 = vmatprep.subr.bf16.mxu0 %v3851_v31  ;;  %v3926_v30 = vld [vmem:[%s5187_s1 + $0x3b0] ss:$12 sps:$4 sm:$0xff]   ;;  %v3930_v32 = vld [vmem:[%s5187_s1 + $0x548] ss:$12 sps:$4 sm:$0xff]  }
  0x9a   : > { %v3929_v31 = vld [vmem:[%s5187_s1 + $0x664] ss:$12 sps:$4 sm:$0xff]  }
  0x9b   : > { %3478 = vmatpush3.bf16.msra.mxu1 %v3853_v34  ;;  %v3931_v34 = vld [vmem:[%s5187_s1 + $0x488] ss:$12 sps:$4 sm:$0xff]  }
  0x9c   : > { %2584 = vmatpush1.bf16.msra.mxu0 %v3849_v33  ;;  %3479 = vmatprep.subr.bf16.mxu1 %v3857_v37  ;;  %v3927_v33 = vld [vmem:[%s5187_s1 + $0x660] ss:$12 sps:$4 sm:$0xff]  }
  0x9d   : > { %2585 = vmatprep.subr.bf16.mxu0 %v3856_v36  ;;  %v3934_v36 = vld [vmem:[%s5187_s1 + $0x67c] ss:$12 sps:$4 sm:$0xff]   ;;  %v3935_v37 = vld [vmem:[%s5187_s1 + $0x560] ss:$12 sps:$4 sm:$0xff]  }
  0x9f   : > { %3480 = vmatpush3.bf16.msra.mxu1 %v3858_v38  ;;  %v3936_v38 = vld [vmem:[%s5187_s1 + $0x4a0] ss:$12 sps:$4 sm:$0xff]  }
  0xa0   : > { %2586 = vmatpush1.bf16.msra.mxu0 %v3854_v4  ;;  %3481 = vmatprep.subr.bf16.mxu1 %v3862_v51  ;;  %v3932_v4 = vld [vmem:[%s5187_s1 + $0x678] ss:$12 sps:$4 sm:$0xff]   ;;  %v3937_v51 = vld [vmem:[%s5187_s1 + $0x690] ss:$12 sps:$4 sm:$0xff]  }
  0xa1   : > { %2587 = vmatprep.subr.bf16.mxu0 %v3861_v40  ;;  %v3939_v40 = vld [vmem:[%s5187_s1 + $0x694] ss:$12 sps:$4 sm:$0xff]  }
  0xa3   : > { %3482 = vmatpush3.bf16.msra.mxu1 %v3863_v42  ;;  %v3944_v42 = vld [vmem:[%s5187_s1 + $0x6ac] ss:$12 sps:$4 sm:$0xff]  }
  0xa4   : > { %2588 = vmatpush1.bf16.msra.mxu0 %v3859_v41  ;;  %3483 = vmatprep.subr.bf16.mxu1 %v3867_v44  ;;  %v3941_v41 = vld [vmem:[%s5187_s1 + $0x4b8] ss:$12 sps:$4 sm:$0xff]   ;;  %v3946_v44 = vld [vmem:[%s5187_s1 + $0x4d0] ss:$12 sps:$4 sm:$0xff]  }
  0xa5   : > { %2589 = vmatprep.subr.bf16.mxu0 %v3866_v43  ;;  %v3945_v43 = vld [vmem:[%s5187_s1 + $0x590] ss:$12 sps:$4 sm:$0xff]  }
  0xa7   : > { %3484 = vmatpush3.bf16.msra.mxu1 %v3868_v46  ;;  %v3950_v46 = vld [vmem:[%s5187_s1 + $0x5a8] ss:$12 sps:$4 sm:$0xff]  }
  0xa8   : > { %2590 = vmatpush1.bf16.msra.mxu0 %v3864_v45  ;;  %3485 = vmatprep.subr.bf16.mxu1 %v3872_v48  ;;  %v3949_v45 = vld [vmem:[%s5187_s1 + $0x6c4] ss:$12 sps:$4 sm:$0xff]   ;;  %v3951_v48 = vld [vmem:[%s5187_s1 + $0x4e8] ss:$12 sps:$4 sm:$0xff]  }
  0xa9   : > { %2591 = vmatprep.subr.bf16.mxu0 %v3871_v47  ;;  %v3947_v47 = vld [vmem:[%s5187_s1 + $0x6c0] ss:$12 sps:$4 sm:$0xff]  }
  0xab   : > { %3486 = vmatpush3.bf16.msra.mxu1 %v3873_v52  ;;  %v3955_v52 = vld [vmem:[%s5187_s1 + $0x5c0] ss:$12 sps:$4 sm:$0xff]  }
  0xac   : > { %2592 = vmatpush1.bf16.msra.mxu0 %v3869_v50  ;;  %3487 = vmatprep.subr.bf16.mxu1 %v3877_v54  ;;  %v3954_v50 = vld [vmem:[%s5187_s1 + $0x6dc] ss:$12 sps:$4 sm:$0xff]   ;;  %v3956_v54 = vld [vmem:[%s5187_s1 + $0x500] ss:$12 sps:$4 sm:$0xff]  }
  0xad   : > { %2593 = vmatprep.subr.bf16.mxu0 %v3876_v53  ;;  %v3952_v53 = vld [vmem:[%s5187_s1 + $0x6d8] ss:$12 sps:$4 sm:$0xff]  }
  0xaf   : > { %3488 = vmatpush3.bf16.msra.mxu1 %v3878_v56  ;;  %v3960_v56 = vld [vmem:[%s5187_s1 + $0x5d8] ss:$12 sps:$4 sm:$0xff]  }
  0xb0   : > { %2594 = vmatpush1.bf16.msra.mxu0 %v3874_v55  ;;  %3489 = vmatprep.subr.bf16.mxu1 %v3882_v58  ;;  %v3959_v55 = vld [vmem:[%s5187_s1 + $0x6f4] ss:$12 sps:$4 sm:$0xff]   ;;  %v3961_v58 = vld [vmem:[%s5187_s1 + $0x518] ss:$12 sps:$4 sm:$0xff]  }
  0xb1   : > { %2595 = vmatprep.subr.bf16.mxu0 %v3881_v57  ;;  %v3957_v57 = vld [vmem:[%s5187_s1 + $0x6f0] ss:$12 sps:$4 sm:$0xff]  }
  0xb3   : > { %3490 = vmatpush3.bf16.msra.mxu1 %v3883_v60  ;;  %v3965_v60 = vld [vmem:[%s5187_s1 + $0x5f0] ss:$12 sps:$4 sm:$0xff]  }
  0xb4   : > { %2596 = vmatpush1.bf16.msra.mxu0 %v3879_v59  ;;  %3497 = vmatprep.subr.bf16.mxu1 %v3887_v62  ;;  %v3964_v59 = vld [vmem:[%s5187_s1 + $0x70c] ss:$12 sps:$4 sm:$0xff]   ;;  %v3966_v62 = vld [vmem:[%s5187_s1 + $0x530] ss:$12 sps:$4 sm:$0xff]  }
  0xb5   : > { %2597 = vmatprep.subr.bf16.mxu0 %v3886_v61  ;;  %v3962_v61 = vld [vmem:[%s5187_s1 + $0x708] ss:$12 sps:$4 sm:$0xff]  }
  0xb6   : > { %2819 = vmatmul.mubr.bf16.vlgmr.msra.gmra.mrb[12].mxu1 %v4336_v5  ;;  %v3894_v5 = vld [vmem:[%s5187_s1 + $0x5d0] ss:$12 sps:$4 sm:$0xff]  }
  0xb7   : > { %3498 = vmatpush3.bf16.msra.mxu1 %v3888_v0  ;;  %2859 = vmatprep.mubr.bf16.mxu1 %v4439_v39  ;;  %v3902_v39 = vld [vmem:[%s5187_s1 + $0x410] ss:$12 sps:$4 sm:$0xff]   ;;  %v3970_v0 = vld [vmem:[%s5187_s1 + $0x6c8] ss:$12 sps:$4 sm:$0xff]  }
  0xb8   : > { %2598 = vmatpush1.bf16.msra.mxu0 %v3884_v63  ;;  %3499 = vmatprep.subr.bf16.mxu1 %v3892_v2  ;;  %v3969_v63 = vld [vmem:[%s5187_s1 + $0x724] ss:$12 sps:$4 sm:$0xff]   ;;  %v3971_v2 = vld [vmem:[%s5187_s1 + $0x608] ss:$12 sps:$4 sm:$0xff]  }
  0xb9   : > { %2599 = vmatprep.subr.bf16.mxu0 %v3891_v1  ;;  %v3967_v1 = vld [vmem:[%s5187_s1 + $0x720] ss:$12 sps:$4 sm:$0xff]  }
  0xbb   : > { %3500 = vmatpush3.bf16.msra.mxu1 %v3893_v6  ;;  %v3975_v6 = vld [vmem:[%s5187_s1 + $0x6e0] ss:$12 sps:$4 sm:$0xff]  }
  0xbc   : > { %2600 = vmatpush1.bf16.msra.mxu0 %v3889_v3  ;;  %3501 = vmatprep.subr.bf16.mxu1 %v3897_v8  ;;  %v3974_v3 = vld [vmem:[%s5187_s1 + $0x73c] ss:$12 sps:$4 sm:$0xff]   ;;  %v3976_v8 = vld [vmem:[%s5187_s1 + $0x620] ss:$12 sps:$4 sm:$0xff]  }
  0xbd   : > { %2601 = vmatprep.subr.bf16.mxu0 %v3896_v7  ;;  %v3972_v7 = vld [vmem:[%s5187_s1 + $0x738] ss:$12 sps:$4 sm:$0xff]  }
  0xbf   : > { %3502 = vmatpush3.bf16.msra.mxu1 %v3898_v49  ;;  %v3980_v49 = vld [vmem:[%s5187_s1 + $0x6f8] ss:$12 sps:$4 sm:$0xff]  }
  0xc0   : > { %2602 = vmatpush1.bf16.msra.mxu0 %v3894_v5  ;;  %3503 = vmatprep.subr.bf16.mxu1 %v3902_v39  ;;  %v3979_v5 = vld [vmem:[%s5187_s1 + $0x754] ss:$12 sps:$4 sm:$0xff]   ;;  %v3981_v39 = vld [vmem:[%s5187_s1 + $0x638] ss:$12 sps:$4 sm:$0xff]  }
  0xc1   : > { %2603 = vmatprep.subr.bf16.mxu0 %v3901_v9  ;;  %v3977_v9 = vld [vmem:[%s5187_s1 + $0x750] ss:$12 sps:$4 sm:$0xff]  }
  0xc3   : > { %3504 = vmatpush3.bf16.msra.mxu1 %v3903_v11  ;;  %v3985_v11 = vld [vmem:[%s5187_s1 + $0x710] ss:$12 sps:$4 sm:$0xff]  }
  0xc4   : > { %2604 = vmatpush1.bf16.msra.mxu0 %v3899_v10  ;;  %3505 = vmatprep.subr.bf16.mxu1 %v3910_v14  ;;  %v3984_v10 = vld [vmem:[%s5187_s1 + $0x76c] ss:$12 sps:$4 sm:$0xff]   ;;  %v3986_v14 = vld [vmem:[%s5187_s1 + $0x650] ss:$12 sps:$4 sm:$0xff]  }
  0xc5   : > { %2616 = vmatprep.subr.bf16.mxu0 %v3909_v13  ;;  %v3982_v13 = vld [vmem:[%s5187_s1 + $0x768] ss:$12 sps:$4 sm:$0xff]  }
  0xc7   : > { %2606 = vmatmul.mubr.bf16.vlgmr.msra.gmra.mrb[0].mxu0 %v4745_v15  ;;  %3506 = vmatpush3.bf16.msra.mxu1 %v3911_v17  ;;  %v3993_v17 = vld [vmem:[%s5187_s1 + $0x728] ss:$12 sps:$4 sm:$0xff]  }
  0xc8   : > { %2617 = vmatpush1.bf16.msra.mxu0 %v3907_v16  ;;  %3507 = vmatprep.subr.bf16.mxu1 %v3915_v19  ;;  %v3987_v16 = vld [vmem:[%s4259_s13 + $0x20] ss:$56 sps:$4 sm:$0xff]   ;;  %v3994_v19 = vld [vmem:[%s5187_s1 + $0x668] ss:$12 sps:$4 sm:$0xff]  }
  0xc9   : > { %2618 = vmatprep.subr.bf16.mxu0 %v3914_v18  ;;  %2648 = vmatprep.mubr.bf16.mxu0 %v4785_v28  ;;  %v3990_v18 = vld [vmem:[%s5187_s1 + $0x780] ss:$12 sps:$4 sm:$0xff]  }
  0xcb   : > { %3508 = vmatpush3.bf16.msra.mxu1 %v3916_v21  ;;  %v3998_v21 = vld [vmem:[%s5187_s1 + $0x740] ss:$12 sps:$4 sm:$0xff]  }
  0xcc   : > { %2619 = vmatpush1.bf16.msra.mxu0 %v3912_v20  ;;  %3509 = vmatprep.subr.bf16.mxu1 %v3920_v23  ;;  %v3997_v20 = vld [vmem:[%s5187_s1 + $0x79c] ss:$12 sps:$4 sm:$0xff]   ;;  %v3999_v23 = vld [vmem:[%s5187_s1 + $0x680] ss:$12 sps:$4 sm:$0xff]  }
  0xcd   : > { %2620 = vmatprep.subr.bf16.mxu0 %v3919_v22  ;;  %v3995_v22 = vld [vmem:[%s5187_s1 + $0x798] ss:$12 sps:$4 sm:$0xff]  }
  0xcf   : > { %3510 = vmatpush3.bf16.msra.mxu1 %v3921_v25  ;;  %v4002_v25 = vld [vmem:[%s5187_s1 + $0x7b4] ss:$12 sps:$4 sm:$0xff]  }
  0xd0   : > { %2621 = vmatpush1.bf16.msra.mxu0 %v3917_v24  ;;  %3511 = vmatprep.subr.bf16.mxu1 %v3925_v27  ;;  %v4052_v24 = vld [vmem:[%s4259_s13 + $0x2c] ss:$56 sps:$4 sm:$0xff]   ;;  %v4000_v27 = vld [vmem:[%s5187_s1 + $0x7b0] ss:$12 sps:$4 sm:$0xff]  }
  0xd1   : > { %2622 = vmatprep.subr.bf16.mxu0 %v3924_v26  ;;  %v4003_v26 = vld [vmem:[%s5187_s1 + $0x758] ss:$12 sps:$4 sm:$0xff]  }
  0xd3   : > { %3512 = vmatpush3.bf16.msra.mxu1 %v3926_v30  ;;  %v4008_v30 = vld [vmem:[%s5187_s1 + $0x770] ss:$12 sps:$4 sm:$0xff]  }
  0xd4   : > { %2623 = vmatpush1.bf16.msra.mxu0 %v3922_v29  ;;  %3519 = vmatprep.subr.bf16.mxu1 %v3930_v32  ;;  %v4007_v29 = vld [vmem:[%s5187_s1 + $0x7cc] ss:$12 sps:$4 sm:$0xff]   ;;  %v4009_v32 = vld [vmem:[%s5187_s1 + $0x6b0] ss:$12 sps:$4 sm:$0xff]  }
  0xd5   : > { %2624 = vmatprep.subr.bf16.mxu0 %v3929_v31  ;;  %v4005_v31 = vld [vmem:[%s5187_s1 + $0x7c8] ss:$12 sps:$4 sm:$0xff]  }
  0xd6   : > { %2860 = vmatmul.mubr.bf16.vlgmr.msra.gmra.mrb[16].mxu1 %v4541_v12  ;;  %v3940_v12 = vld [vmem:[%s5187_s1 + $0x578] ss:$12 sps:$4 sm:$0xff]  }
  0xd7   : > { %3520 = vmatpush3.bf16.msra.mxu1 %v3931_v34  ;;  %2900 = vmatprep.mubr.bf16.mxu1 %v4612_v35  ;;  %v3942_v35 = vld [vmem:[%s5187_s1 + $0x6a8] ss:$12 sps:$4 sm:$0xff]  }
  0xd8   : > { %2625 = vmatpush1.bf16.msra.mxu0 %v3927_v33  ;;  %3521 = vmatprep.subr.bf16.mxu1 %v3935_v37  ;;  %v4012_v33 = vld [vmem:[%s5187_s1 + $0x7e4] ss:$12 sps:$4 sm:$0xff]   ;;  %v4013_v34 = vld [vmem:[%s5187_s1 + $0x848] ss:$12 sps:$4 sm:$0xff]  }
  0xd9   : > { %2626 = vmatprep.subr.bf16.mxu0 %v3934_v36  ;;  %v4010_v36 = vld [vmem:[%s5187_s1 + $0x7e0] ss:$12 sps:$4 sm:$0xff]   ;;  %v4014_v37 = vld [vmem:[%s5187_s1 + $0x788] ss:$12 sps:$4 sm:$0xff]  }
  0xdb   : > { %3522 = vmatpush3.bf16.msra.mxu1 %v3936_v38  ;;  %v4018_v38 = vld [vmem:[%s5187_s1 + $0x860] ss:$12 sps:$4 sm:$0xff]  }
  0xdc   : > { %2627 = vmatpush1.bf16.msra.mxu0 %v3932_v4  ;;  %3523 = vmatprep.subr.bf16.mxu1 %v3940_v12  ;;  %v4017_v4 = vld [vmem:[%s5187_s1 + $0x7fc] ss:$12 sps:$4 sm:$0xff]   ;;  %v4019_v12 = vld [vmem:[%s5187_s1 + $0x7a0] ss:$12 sps:$4 sm:$0xff]  }
  0xdd   : > { %2628 = vmatprep.subr.bf16.mxu0 %v3939_v40  ;;  %v4015_v40 = vld [vmem:[%s5187_s1 + $0x7f8] ss:$12 sps:$4 sm:$0xff]  }
  0xdf   : > { %3524 = vmatpush3.bf16.msra.mxu1 %v3941_v41  ;;  %v4023_v41 = vld [vmem:[%s5187_s1 + $0x878] ss:$12 sps:$4 sm:$0xff]  }
  0xe0   : > { %2629 = vmatpush1.bf16.msra.mxu0 %v3937_v51  ;;  %3525 = vmatprep.subr.bf16.mxu1 %v3945_v43  ;;  %v4022_v51 = vld [vmem:[%s5187_s1 + $0x814] ss:$12 sps:$4 sm:$0xff]  }
  0xe1   : > { %2630 = vmatprep.subr.bf16.mxu0 %v3944_v42 }
  0xe3   : > { %3526 = vmatpush3.bf16.msra.mxu1 %v3946_v44  ;;  %v4020_v44 = vld [vmem:[%s5187_s1 + $0x810] ss:$12 sps:$4 sm:$0xff]  }
  0xe4   : > { %2631 = vmatpush1.bf16.msra.mxu0 %v3942_v35  ;;  %3527 = vmatprep.subr.bf16.mxu1 %v3950_v46 }
  0xe5   : > { %2632 = vmatprep.subr.bf16.mxu0 %v3949_v45  ;;  %v4024_v45 = vld [vmem:[%s5187_s1 + $0x7b8] ss:$12 sps:$4 sm:$0xff]  }
  0xe7   : > { %3528 = vmatpush3.bf16.msra.mxu1 %v3951_v48  ;;  %v4028_v48 = vld [vmem:[%s5187_s1 + $0x890] ss:$12 sps:$4 sm:$0xff]  }
  0xe8   : > { %2633 = vmatpush1.bf16.msra.mxu0 %v3947_v47  ;;  %3529 = vmatprep.subr.bf16.mxu1 %v3955_v52  ;;  %v4027_v47 = vld [vmem:[%s5187_s1 + $0x82c] ss:$12 sps:$4 sm:$0xff]   ;;  %v4029_v52 = vld [vmem:[%s5187_s1 + $0x7d0] ss:$12 sps:$4 sm:$0xff]  }
  0xe9   : > { %2634 = vmatprep.subr.bf16.mxu0 %v3954_v50  ;;  %v4025_v50 = vld [vmem:[%s5187_s1 + $0x828] ss:$12 sps:$4 sm:$0xff]  }
  0xeb   : > { %3530 = vmatpush3.bf16.msra.mxu1 %v3956_v54  ;;  %v4033_v54 = vld [vmem:[%s5187_s1 + $0x8a8] ss:$12 sps:$4 sm:$0xff]  }
  0xec   : > { %2635 = vmatpush1.bf16.msra.mxu0 %v3952_v53  ;;  %3531 = vmatprep.subr.bf16.mxu1 %v3960_v56  ;;  %v4032_v53 = vld [vmem:[%s5187_s1 + $0x844] ss:$12 sps:$4 sm:$0xff]   ;;  %v4034_v56 = vld [vmem:[%s5187_s1 + $0x7e8] ss:$12 sps:$4 sm:$0xff]  }
  0xed   : > { %2636 = vmatprep.subr.bf16.mxu0 %v3959_v55  ;;  %v4030_v55 = vld [vmem:[%s5187_s1 + $0x840] ss:$12 sps:$4 sm:$0xff]  }
  0xef   : > { %3532 = vmatpush3.bf16.msra.mxu1 %v3961_v58  ;;  %v4038_v58 = vld [vmem:[%s5187_s1 + $0x8c0] ss:$12 sps:$4 sm:$0xff]  }
  0xf0   : > { %2637 = vmatpush1.bf16.msra.mxu0 %v3957_v57  ;;  %3533 = vmatprep.subr.bf16.mxu1 %v3965_v60  ;;  %v4037_v57 = vld [vmem:[%s5187_s1 + $0x85c] ss:$12 sps:$4 sm:$0xff]   ;;  %v4039_v60 = vld [vmem:[%s5187_s1 + $0x800] ss:$12 sps:$4 sm:$0xff]  }
  0xf1   : > { %2638 = vmatprep.subr.bf16.mxu0 %v3964_v59  ;;  %v4035_v59 = vld [vmem:[%s5187_s1 + $0x858] ss:$12 sps:$4 sm:$0xff]  }
  0xf3   : > { %3534 = vmatpush3.bf16.msra.mxu1 %v3966_v62  ;;  %v4043_v62 = vld [vmem:[%s5187_s1 + $0x8d8] ss:$12 sps:$4 sm:$0xff]  }
  0xf4   : > { %2639 = vmatpush1.bf16.msra.mxu0 %v3962_v61  ;;  %3541 = vmatprep.subr.bf16.mxu1 %v3970_v0  ;;  %v4042_v61 = vld [vmem:[%s5187_s1 + $0x874] ss:$12 sps:$4 sm:$0xff]   ;;  %v4044_v0 = vld [vmem:[%s5187_s1 + $0x818] ss:$12 sps:$4 sm:$0xff]  }
  0xf5   : > { %2640 = vmatprep.subr.bf16.mxu0 %v3969_v63  ;;  %v4040_v63 = vld [vmem:[%s5187_s1 + $0x870] ss:$12 sps:$4 sm:$0xff]  }
  0xf6   : > { %2901 = vmatmul.mubr.bf16.vlgmr.msra.gmra.mrb[20].mxu1 %v4745_v15  ;;  %v3992_v15 = vld [vmem:[%s5187_s1 + $0x784] ss:$12 sps:$4 sm:$0xff]  }
  0xf7   : > { %3542 = vmatpush3.bf16.msra.mxu1 %v3971_v2  ;;  %2941 = vmatprep.mubr.bf16.mxu1 %v4785_v28  ;;  %v4004_v28 = vld [vmem:[%s5187_s1 + $0x698] ss:$12 sps:$4 sm:$0xff]   ;;  %v4048_v2 = vld [vmem:[%s5187_s1 + $0x8f0] ss:$12 sps:$4 sm:$0xff]  }
  0xf8   : > { %2641 = vmatpush1.bf16.msra.mxu0 %v3967_v1  ;;  %3543 = vmatprep.subr.bf16.mxu1 %v3975_v6  ;;  %v4047_v1 = vld [vmem:[%s5187_s1 + $0x88c] ss:$12 sps:$4 sm:$0xff]   ;;  %v4049_v6 = vld [vmem:[%s5187_s1 + $0x830] ss:$12 sps:$4 sm:$0xff]  }
  0xf9   : > { %2642 = vmatprep.subr.bf16.mxu0 %v3974_v3  ;;  %v4045_v3 = vld [vmem:[%s5187_s1 + $0x888] ss:$12 sps:$4 sm:$0xff]  }
  0xfb   : > { %3544 = vmatpush3.bf16.msra.mxu1 %v3976_v8  ;;  %v4050_v8 = vld [vmem:[%s4259_s13 + $0x28] ss:$56 sps:$4 sm:$0xff]  }
  0xfc   : > { %2643 = vmatpush1.bf16.msra.mxu0 %v3972_v7  ;;  %3545 = vmatprep.subr.bf16.mxu1 %v3980_v49  ;;  %v4055_v7 = vld [vmem:[%s5187_s1 + $0x8a4] ss:$12 sps:$4 sm:$0xff]   ;;  %v4056_v49 = vld [vmem:[%s5187_s1 + $0x908] ss:$12 sps:$4 sm:$0xff]  }
  0xfd   : > { %2644 = vmatprep.subr.bf16.mxu0 %v3979_v5  ;;  %v4053_v5 = vld [vmem:[%s5187_s1 + $0x8a0] ss:$12 sps:$4 sm:$0xff]  }
  0xff   : > { %3546 = vmatpush3.bf16.msra.mxu1 %v3981_v39  ;;  %v4059_v39 = vld [vmem:[%s5187_s1 + $0x8bc] ss:$12 sps:$4 sm:$0xff]  }
 0x100   : > { %2645 = vmatpush1.bf16.msra.mxu0 %v3977_v9  ;;  %3547 = vmatprep.subr.bf16.mxu1 %v3985_v11  ;;  %v4087_v9 = vmov 0   ;;  %v4060_v11 = vld [vmem:[%s5187_s1 + $0x920] ss:$12 sps:$4 sm:$0xff]  }
 0x101   : > { %2646 = vmatprep.subr.bf16.mxu0 %v3984_v10  ;;  %v4057_v10 = vld [vmem:[%s5187_s1 + $0x8b8] ss:$12 sps:$4 sm:$0xff]  }
 0x103   : > { %3548 = vmatpush3.bf16.msra.mxu1 %v3986_v14  ;;  %v4077_v14 = vld [vmem:[%s4259_s13 + $0x34] ss:$56 sps:$4 sm:$0xff]  }
 0x104   : > { %2647 = vmatpush1.bf16.msra.mxu0 %v3982_v13  ;;  %3549 = vmatprep.subr.bf16.mxu1 %v3993_v17  ;;  %v4063_v13 = vld [vmem:[%s5187_s1 + $0x8d4] ss:$12 sps:$4 sm:$0xff]   ;;  %v4067_v17 = vld [vmem:[%s5187_s1 + $0x8ec] ss:$12 sps:$4 sm:$0xff]  }
 0x105   : > { %2659 = vmatprep.subr.bf16.mxu0 %v3992_v15  ;;  %v4061_v15 = vld [vmem:[%s5187_s1 + $0x8d0] ss:$12 sps:$4 sm:$0xff]  }
 0x107   : > { %2649 = vmatmul.mubr.bf16.vlgmr.msra.gmra.mrb[0].mxu0 %v3987_v16  ;;  %3550 = vmatpush3.bf16.msra.mxu1 %v3994_v19  ;;  %v4068_v19 = vld [vmem:[%s5187_s1 + $0x950] ss:$12 sps:$4 sm:$0xff]  }
 0x108   : > { %2660 = vmatpush1.bf16.msra.mxu0 %v3990_v18  ;;  %3551 = vmatprep.subr.bf16.mxu1 %v3998_v21  ;;  %v4065_v18 = vld [vmem:[%s5187_s1 + $0x8e8] ss:$12 sps:$4 sm:$0xff]   ;;  %v4070_v21 = vld [vmem:[%s5187_s1 + $0x980] ss:$12 sps:$4 sm:$0xff]  }
 0x109   : > { %2661 = vmatprep.subr.bf16.mxu0 %v3997_v20  ;;  %2691 = vmatprep.mubr.bf16.mxu0 %v4052_v24  ;;  %v4069_v20 = vld [vmem:[%s5187_s1 + $0x968] ss:$12 sps:$4 sm:$0xff]  }
 0x10b   : > { %3552 = vmatpush3.bf16.msra.mxu1 %v3999_v23 }
 0x10c   : > { %2662 = vmatpush1.bf16.msra.mxu0 %v3995_v22  ;;  %3553 = vmatprep.subr.bf16.mxu1 %v4003_v26 }
 0x10d   : > { %2663 = vmatprep.subr.bf16.mxu0 %v4002_v25  ;;  %v4071_v25 = vld [vmem:[%s5187_s1 + $0x998] ss:$12 sps:$4 sm:$0xff]  }
 0x10f   : > { %3554 = vmatpush3.bf16.msra.mxu1 %v4004_v28  ;;  %v4073_v28 = vld [vmem:[%s5187_s1 + $0x9c8] ss:$12 sps:$4 sm:$0xff]  }
 0x110   : > { %2664 = vmatpush1.bf16.msra.mxu0 %v4000_v27  ;;  %3555 = vmatprep.subr.bf16.mxu1 %v4008_v30  ;;  %v4072_v27 = vld [vmem:[%s5187_s1 + $0x9b0] ss:$12 sps:$4 sm:$0xff]   ;;  %v4075_v30 = vld [vmem:[%s5187_s1 + $0x9f8] ss:$12 sps:$4 sm:$0xff]  }
 0x111   : > { %2665 = vmatprep.subr.bf16.mxu0 %v4007_v29  ;;  %v4074_v29 = vld [vmem:[%s5187_s1 + $0x9e0] ss:$12 sps:$4 sm:$0xff]  }
 0x113   : > { %3556 = vmatpush3.bf16.msra.mxu1 %v4009_v32  ;;  %v4078_v32 = vld [vmem:[%s4259_s13 + $0x30] ss:$56 sps:$4 sm:$0xff]   ;;  %s3614_s13 = smul.u32 24, %s5191_s24 }
 0x114   : > { %2666 = vmatpush1.bf16.msra.mxu0 %v4005_v31  ;;  %3563 = vmatprep.subr.bf16.mxu1 %v4013_v34  ;;  %v4076_v31 = vld [vmem:[%s5187_s1 + $0xa10] ss:$12 sps:$4 sm:$0xff]  }
 0x115   : > { %2667 = vmatprep.subr.bf16.mxu0 %v4012_v33  ;;  %s177_s18 = scalar_lea.vmem %s5189_s3, %s3614_s13 }
 0x116   : > { %2942 = vmatmul.mubr.bf16.vlgmr.msra.gmra.mrb[24].mxu1 %v3987_v16  ;;  %v4064_v16 = vld [vmem:[%s5187_s1 + $0x938] ss:$12 sps:$4 sm:$0xff]  }
 0x117   : > { %3564 = vmatpush3.bf16.msra.mxu1 %v4014_v37  ;;  %2982 = vmatprep.mubr.bf16.mxu1 %v4052_v24 }
 0x118   : > { %2668 = vmatpush1.bf16.msra.mxu0 %v4010_v36  ;;  %3565 = vmatprep.subr.bf16.mxu1 %v4018_v38 }
 0x119   : > { %2669 = vmatprep.subr.bf16.mxu0 %v4017_v4  ;;  %v5022_v42 = vpop.f32.mrb[0].mxu1 }
 0x11a   : > { %v5024_v43 = vpop.f32.mrb[1].mxu1 }
 0x11b   : > { %v5026_v35 = vpop.f32.mrb[2].mxu1  ;;  %3566 = vmatpush3.bf16.msra.mxu1 %v4019_v12 }
 0x11c   : > { %2670 = vmatpush1.bf16.msra.mxu0 %v4015_v40  ;;  %v5034_v46 = vpop.f32.mrb[3].mxu1  ;;  %3567 = vmatprep.subr.bf16.mxu1 %v4023_v41  ;;  %v628_v40 = vlaneseq  ;;  %v626_v41 = vld [vmem:[%s5188_s2] sm:$0x7] }
 0x11d   : > { %2671 = vmatprep.subr.bf16.mxu0 %v4022_v51 }
 0x11e   : > { %v629_v12 = vshrl.u32 %v628_v40, 7 }
 0x11f   : > { %3568 = vmatpush3.bf16.msra.mxu1 %v4024_v45 }
 0x120   : > { %2672 = vmatpush1.bf16.msra.mxu0 %v4020_v44  ;;  %3569 = vmatprep.subr.bf16.mxu1 %v4028_v48  ;;  %v638_v51 = vsub.s32 2, %v629_v12 }
 0x121   : > { %2673 = vmatprep.subr.bf16.mxu0 %v4027_v47 }
 0x122   : > { %v639_v44 = vrot.slane %v626_v41, %v638_v51 }
 0x123   : > { %3570 = vmatpush3.bf16.msra.mxu1 %v4029_v52 }
 0x124   : > { %2674 = vmatpush1.bf16.msra.mxu0 %v4025_v50  ;;  %3571 = vmatprep.subr.bf16.mxu1 %v4033_v54 }
 0x125   : > { %2675 = vmatprep.subr.bf16.mxu0 %v4032_v53 }
 0x127   : > { %3572 = vmatpush3.bf16.msra.mxu1 %v4034_v56 }
 0x128   : > { %2676 = vmatpush1.bf16.msra.mxu0 %v4030_v55  ;;  %3573 = vmatprep.subr.bf16.mxu1 %v4038_v58 }
 0x129   : > { %2677 = vmatprep.subr.bf16.mxu0 %v4037_v57 }
 0x12b   : > { %3574 = vmatpush3.bf16.msra.mxu1 %v4039_v60 }
 0x12c   : > { %2678 = vmatpush1.bf16.msra.mxu0 %v4035_v59  ;;  %3575 = vmatprep.subr.bf16.mxu1 %v4043_v62 }
 0x12d   : > { %2679 = vmatprep.subr.bf16.mxu0 %v4042_v61 }
 0x12f   : > { %3576 = vmatpush3.bf16.msra.mxu1 %v4044_v0 }
 0x130   : > { %2680 = vmatpush1.bf16.msra.mxu0 %v4040_v63  ;;  %3577 = vmatprep.subr.bf16.mxu1 %v4048_v2 }
 0x131   : > { %2681 = vmatprep.subr.bf16.mxu0 %v4047_v1 }
 0x133   : > { %3578 = vmatpush3.bf16.msra.mxu1 %v4049_v6 }
 0x134   : > { %2682 = vmatpush1.bf16.msra.mxu0 %v4045_v3  ;;  %2991 = vmatprep.subr.bf16.mxu1 %v4087_v9 }
 0x135   : > { %2683 = vmatprep.subr.bf16.mxu0 %v4055_v7 }
 0x136   : > { %2983 = vmatmul.mubr.bf16.vlgmr.msra.gmra.mrb[28].mxu1 %v4050_v8 }
 0x137   : > { %2992 = vmatpush1.bf16.msra.mxu1 %v4056_v49  ;;  %3450 = vmatprep.mubr.msk.bf16.mxu1 %vm2440_vm0, %v4077_v14 }
 0x138   : > { %2684 = vmatpush1.bf16.msra.mxu0 %v4053_v5  ;;  %2993 = vmatprep.subr.bf16.mxu1 %v4087_v9 }
 0x139   : > { %2685 = vmatprep.subr.bf16.mxu0 %v4059_v39 }
 0x13b   : > { %2994 = vmatpush1.bf16.msra.mxu1 %v4060_v11 }
 0x13c   : > { %2686 = vmatpush1.bf16.msra.mxu0 %v4057_v10  ;;  %2995 = vmatprep.subr.bf16.mxu1 %v4087_v9 }
 0x13d   : > { %2687 = vmatprep.subr.bf16.mxu0 %v4063_v13 }
 0x13f   : > { %2996 = vmatpush1.bf16.msra.mxu1 %v4064_v16 }
 0x140   : > { %2688 = vmatpush1.bf16.msra.mxu0 %v4061_v15  ;;  %2997 = vmatprep.subr.bf16.mxu1 %v4087_v9 }
 0x141   : > { %2689 = vmatprep.subr.bf16.mxu0 %v4067_v17 }
 0x143   : > { %2998 = vmatpush1.bf16.msra.mxu1 %v4068_v19 }
 0x144   : > { %2690 = vmatpush1.bf16.msra.mxu0 %v4065_v18  ;;  %2999 = vmatprep.subr.bf16.mxu1 %v4087_v9 }
 0x147   : > { %2692 = vmatmul.mubr.bf16.vlgmr.msra.gmra.mrb[0].mxu0 %v4050_v8  ;;  %3000 = vmatpush1.bf16.msra.mxu1 %v4069_v20 }
 0x148   : > { %3001 = vmatprep.subr.bf16.mxu1 %v4087_v9 }
 0x149   : > { %v5141_v22 = vpop.f32.mrb[4].mxu1 }
 0x14a   : > { %v5143_v23 = vpop.f32.mrb[5].mxu1 }
 0x14b   : > { %v5145_v24 = vpop.f32.mrb[6].mxu1  ;;  %3002 = vmatpush1.bf16.msra.mxu1 %v4070_v21 }
 0x14c   : > { %v5150_v26 = vpop.f32.mrb[7].mxu1  ;;  %3003 = vmatprep.subr.bf16.mxu1 %v4087_v9 }
 0x14f   : > { %3004 = vmatpush1.bf16.msra.mxu1 %v4071_v25 }
 0x150   : > { %3005 = vmatprep.subr.bf16.mxu1 %v4087_v9 }
 0x153   : > { %3006 = vmatpush1.bf16.msra.mxu1 %v4072_v27 }
 0x154   : > { %3007 = vmatprep.subr.bf16.mxu1 %v4087_v9 }
 0x157   : > { %3008 = vmatpush1.bf16.msra.mxu1 %v4073_v28 }
 0x158   : > { %3009 = vmatprep.subr.bf16.mxu1 %v4087_v9 }
 0x15b   : > { %3010 = vmatpush1.bf16.msra.mxu1 %v4074_v29 }
 0x15c   : > { %3011 = vmatprep.subr.bf16.mxu1 %v4087_v9 }
 0x15f   : > { %3012 = vmatpush1.bf16.msra.mxu1 %v4075_v30  ;;  %v630_v30 = vsub.s32 0, %v629_v12 }
 0x160   : > { %3013 = vmatprep.subr.bf16.mxu1 %v4087_v9 }
 0x163   : > { %3014 = vmatpush1.bf16.msra.mxu1 %v4076_v31  ;;  %v634_v31 = vsub.s32 1, %v629_v12 }
 0x166   : > { %3024 = vmatmul.mubr.bf16.vlgmr.msra.gmra.mrb[32].mxu1 %v4078_v32  ;;  %v631_v32 = vrot.slane %v626_v41, %v630_v30 }
 0x169   : > { %v3469_v33 = vpop.f32.mrb[8].mxu1 }
 0x16a   : > { %v3470_v34 = vpop.f32.mrb[9].mxu1 }
 0x16b   : > { %v3471_v36 = vadd.f32 %v3470_v34, %v3469_v33  ;;  %v3472_v37 = vpop.f32.mrb[10].mxu1  ;;  %v635_v33 = vrot.slane %v626_v41, %v634_v31  ;;  %v2479_v34 = vadd.f32 %v5022_v42, %v631_v32 }
 0x16c   : > { %v3473_v4 = vpop.f32.mrb[11].mxu1 }
 0x16d   : > { %v3474_v38 = vadd.f32 %v3473_v4, %v3472_v37  ;;  %v2780_v48 = vadd.f32 %v3471_v36, %v639_v44  ;;  %v2481_v36 = vadd.f32 %v5024_v43, %v635_v33  ;;  %v2483_v4 = vadd.f32 %v5026_v35, %v631_v32 }
 0x16e   : > { %v2485_v51 = vadd.f32 %v5034_v46, %v635_v33 }
 0x16f   : > { %v2783_v54 = vadd.f32 %v3474_v38, %v639_v44 }
 0x189   : > { %v3491_v45 = vpop.f32.mrb[12].mxu1 }
 0x18a   : > { %v3492_v47 = vpop.f32.mrb[13].mxu1 }
 0x18b   : > { %v3493_v50 = vadd.f32 %v3492_v47, %v3491_v45  ;;  %v3494_v52 = vpop.f32.mrb[14].mxu1 }
 0x18c   : > { %v3495_v53 = vpop.f32.mrb[15].mxu1 }
 0x18d   : > { %v2821_v55 = vadd.f32 %v3493_v50, %v2780_v48  ;;  %v3496_v56 = vadd.f32 %v3495_v53, %v3494_v52 }
 0x18f   : > { %v2824_v57 = vadd.f32 %v3496_v56, %v2783_v54 }
 0x1a9   : > { %v3513_v58 = vpop.f32.mrb[16].mxu1 }
 0x1aa   : > { %v3514_v59 = vpop.f32.mrb[17].mxu1 }
 0x1ab   : > { %v3515_v60 = vadd.f32 %v3514_v59, %v3513_v58  ;;  %v3516_v61 = vpop.f32.mrb[18].mxu1 }
 0x1ac   : > { %v3517_v62 = vpop.f32.mrb[19].mxu1 }
 0x1ad   : > { %v2862_v63 = vadd.f32 %v3515_v60, %v2821_v55  ;;  %v3518_v0 = vadd.f32 %v3517_v62, %v3516_v61 }
 0x1af   : > { %v2865_v1 = vadd.f32 %v3518_v0, %v2824_v57 }
 0x1c9   : > { %v3535_v2 = vpop.f32.mrb[20].mxu1 }
 0x1ca   : > { %v3536_v3 = vpop.f32.mrb[21].mxu1 }
 0x1cb   : > { %v3537_v6 = vadd.f32 %v3536_v3, %v3535_v2  ;;  %v3538_v7 = vpop.f32.mrb[22].mxu1 }
 0x1cc   : > { %v3539_v8 = vpop.f32.mrb[23].mxu1 }
 0x1cd   : > { %v2903_v5 = vadd.f32 %v3537_v6, %v2862_v63  ;;  %v3540_v49 = vadd.f32 %v3539_v8, %v3538_v7 }
 0x1cf   : > { %v2906_v9 = vadd.f32 %v3540_v49, %v2865_v1 }
 0x1e9   : > { %v3557_v39 = vpop.f32.mrb[24].mxu1 }
 0x1ea   : > { %v3558_v10 = vpop.f32.mrb[25].mxu1 }
 0x1eb   : > { %v3559_v11 = vadd.f32 %v3558_v10, %v3557_v39  ;;  %v3560_v13 = vpop.f32.mrb[26].mxu1 }
 0x1ec   : > { %v3561_v14 = vpop.f32.mrb[27].mxu1 }
 0x1ed   : > { %v2944_v15 = vadd.f32 %v3559_v11, %v2903_v5  ;;  %v3562_v16 = vadd.f32 %v3561_v14, %v3560_v13 }
 0x1ef   : > { %v2947_v17 = vadd.f32 %v3562_v16, %v2906_v9 }
 0x209   : > { %v3579_v18 = vpop.f32.mrb[28].mxu1 }
 0x20a   : > { %v3580_v19 = vpop.f32.mrb[29].mxu1 }
 0x20b   : > { %v3581_v20 = vadd.f32 %v3580_v19, %v3579_v18  ;;  %v3582_v21 = vpop.f32.mrb[30].mxu1 }
 0x20c   : > { %v3583_v25 = vpop.f32.mrb[31].mxu1 }
 0x20d   : > { %v3584_v27 = vadd.f32 %v3583_v25, %v3582_v21  ;;  %v2985_v28 = vadd.f32 %v3581_v20, %v2944_v15 }
 0x20f   : > { %v2988_v29 = vadd.f32 %v3584_v27, %v2947_v17 }
 0x21a   : > { %v2693_v37 = vpop.f32.mrb[0].mxu0 }
 0x21b   : > { %v3586_v38 = vadd.f32 %v2693_v37, %v2479_v34  ;;  %v2695_v40 = vpop.f32.mrb[1].mxu0 }
 0x21c   : > { %v3589_v44 = vadd.f32 %v2695_v40, %v2481_v36  ;;  %v2697_v45 = vpop.f32.mrb[2].mxu0 }
 0x21d   : > { %v3587_v47 = vadd.f32 %v3586_v38, %v5141_v22  ;;  %v3592_v48 = vadd.f32 %v2697_v45, %v2483_v4  ;;  %v2699_v12 = vpop.f32.mrb[3].mxu0 }
 0x21e   : > { %v3590_v42 = vadd.f32 %v3589_v44, %v5143_v23  ;;  %v3595_v43 = vadd.f32 %v2699_v12, %v2485_v51 }
 0x21f   : > { %v3032_v41 = vmax.f32 %v3587_v47, 0.0  ;;  %v3593_v35 = vadd.f32 %v3592_v48, %v5145_v24 }
 0x220   : > { %v3033_v50 = vmax.f32 %v3590_v42, 0.0  ;;  %v3596_v52 = vadd.f32 %v3595_v43, %v5150_v26 }
 0x221   : > { %3038 = vst [vmem:[%s177_s18] sm:$0xff] %v3032_v41  ;;  %v3035_v46 = vmax.f32 %v3593_v35, 0.0 }
 0x222   : > { %3039 = vst [vmem:[%s177_s18 + $0x8] sm:$0xff] %v3033_v50  ;;  %v3036_v53 = vmax.f32 %v3596_v52, 0.0 }
 0x223   : > { %3041 = vst [vmem:[%s177_s18 + $0x18] sm:$0xff] %v3035_v46 }
 0x224   : > { %3042 = vst [vmem:[%s177_s18 + $0x20] sm:$0xff] %v3036_v53 }
 0x239   : > { %v3025_v22 = vpop.f32.mrb[32].mxu1 }
 0x23a   : > { %v3026_v54 = vadd.f32 %v3025_v22, %v2985_v28  ;;  %v3027_v55 = vpop.f32.mrb[33].mxu1 }
 0x23b   : > { %v3028_v56 = vpop.f32.mrb[34].mxu1 }
 0x23c   : > { %v3034_v57 = vmax.f32 %v3026_v54, 0.0  ;;  %v3029_v58 = vadd.f32 %v3028_v56, %v2988_v29  ;;  %v3030_v23 = vpop.f32.mrb[35].mxu1 }
 0x23e   : > { %3040 = vst [vmem:[%s177_s18 + $0x10] sm:$0xff] %v3034_v57  ;;  %v3037_v59 = vmax.f32 %v3029_v58, 0.0 }
 0x240   : > { %3043 = vst [vmem:[%s177_s18 + $0x28] sm:$0xff] %v3037_v59 }
 0x241 PF: > { %s13_s12 = sadd.s32 1, %s4085_s12  }
 0x242   : > { %p10_p4 = scmp.ge.s32.totalorder %s13_s12, 4  }
 0x244   :  { %12 = sbr.rel (!%p10_p4) target bundleno = 1 (0x1), region = 62 }

// kernel: inception_d_forward.13
= control target key start
LH: loop header
LB: loop body
LE: loop exit
PB: predicated region body
PF: predicated region fallthrough
CT: control target
= control target key end

     0   :  { %s327_s6 = smov 0   ;;  %s329_s7 = smov 0   ;;  %s387_s0 = inlined_call_operand.vmem [shape: f32[3,32,8], index: 0, kind: input, shape index: {}]   ;;  %s388_s1 = inlined_call_operand.vmem [shape: f32[32,8], index: 1, kind: output, shape index: {}]  }
   0x1   :  { %s331_s8 = smov 0  }
   0x2 LB: > { %s255_s9 = sadd.s32 4294967295, %s315_s8   ;;  %s344_s10 = sadd.s32 1, %s315_s8   ;;  %s315_s8 = sphi %s331_s8, %s391_s8   ;;  %s311_s7 = sphi %s329_s7, %s390_s7   ;;  %s307_s6 = sphi %s327_s6, %s389_s6  }
   0x3   : > { %s15_s11 = ssub.s32 %s315_s8, %s344_s10  ;;  %s18_s12 = sadd.s32 1, %s311_s7 }
   0x4   : > { %p16_p0 = scmp.eq.s32.totalorder %s15_s11, 0  ;;  %p25_p1 = scmp.ne.s32.totalorder %s311_s7, %s307_s6 }
   0x5   : > { %p26_p2 = scmp.eq.s32.totalorder %s315_s8, 0  ;;  %p258_p4 = scmp.ge.s32.totalorder %s315_s8, 2 }
   0x6   : > { %s353_s13 = scalar_select %p16_p0, %s311_s7, %s18_s12  }
   0x7   : > { %p27_p3 = por %p26_p2, %p25_p1  ;;  %77 = sbr.rel (%p258_p4) target bundleno = 21 (0x15), region = 16 }
   0xe   : > { %80 = sbr.rel (!%p27_p3) target bundleno = 21 (0x15), region = 20  ;;  %s82_s14 = sand.u32 (%p27_p3), 1, %s311_s7  }
   0xf   : > { %s266_s15 = sshll.u32 (%p27_p3), %s315_s8, 4  ;;  %s267_s16 = smul.u32 (%p27_p3), 48, %s82_s14 }
  0x10   : > { %s87_s19 = scalar_lea.vmem (%p27_p3), %s387_s0, %s266_s15 }
  0x11   : > { %v125_v0 = vld [vmem:[%s87_s19] sm:$0xff] (%p27_p3)  ;;  %v127_v1 = vld [vmem:[%s87_s19 + $0x8] sm:$0xff] (%p27_p3)  ;;  %s84_s20 = scalar_lea.vmem (%p27_p3), [#allocation2], %s267_s16 }
  0x12   : > { %v129_v2 = vld [vmem:[%s87_s19 + $0x20] sm:$0xff] (%p27_p3)  ;;  %v131_v3 = vld [vmem:[%s87_s19 + $0x28] sm:$0xff] (%p27_p3)  ;;  %126 = vst [vmem:[%s84_s20] sm:$0xff] (%p27_p3), %v125_v0  ;;  %128 = vst [vmem:[%s84_s20 + $0x8] sm:$0xff] (%p27_p3), %v127_v1 }
  0x13   : > { %v133_v4 = vld [vmem:[%s87_s19 + $0x40] sm:$0xff] (%p27_p3)  ;;  %v135_v5 = vld [vmem:[%s87_s19 + $0x48] sm:$0xff] (%p27_p3)  ;;  %130 = vst [vmem:[%s84_s20 + $0x10] sm:$0xff] (%p27_p3), %v129_v2  ;;  %132 = vst [vmem:[%s84_s20 + $0x18] sm:$0xff] (%p27_p3), %v131_v3 }
  0x14   : > { %134 = vst [vmem:[%s84_s20 + $0x20] sm:$0xff] (%p27_p3), %v133_v4  ;;  %136 = vst [vmem:[%s84_s20 + $0x28] sm:$0xff] (%p27_p3), %v135_v5 }
  0x15 PF: > { %p261_p5 = scmp.ge.s32.totalorder %s315_s8, 1  ;;  %p141_p6 = scmp.lt.s32.totalorder %s315_s8, 3 }
  0x17   : > { %p142_p7 = pnand %p261_p5, %p141_p6 }
  0x18   : > { %s148_s21 = sand.u32 (!%p142_p7), 1, %s307_s6   ;;  %s262_s22 = sshll.u32 (!%p142_p7), %s255_s9, 1  ;;  %vm180_vm0 = vcmask (!%p142_p7), 64512  }
  0x19   : > { %145 = sbr.rel (%p142_p7) target bundleno = 37 (0x25), region = 58  ;;  %p169_p8 = scmp.lt.s32.totalorder (!%p142_p7), %s262_s22, 3 }
  0x1a   : > { %s268_s23 = smul.u32 (!%p142_p7), 48, %s148_s21 }
  0x1c   : > { %s150_s24 = scalar_lea.vmem (!%p142_p7), [#allocation2], %s268_s23 }
  0x1d   : > { %v174_v6 = vld [vmem:[%s150_s24] sm:$0xff] (!%p142_p7)  ;;  %v176_v7 = vld [vmem:[%s150_s24 + $0x10] sm:$0xff] (!%p142_p7)  ;;  %v175_v12 = vld [vmem:[%s150_s24 + $0x8] sm:$0xff] (!%p142_p7) }
  0x1e   : > { %v178_v8 = vld [vmem:[%s150_s24 + $0x20] sm:$0xff] (!%p142_p7)  ;;  %v181_v9 = vsel (!%p142_p7), %vm180_vm0, %v174_v6, -inf  ;;  %v182_v10 = vsel (!%p142_p7), %vm180_vm0, %v176_v7, -inf  ;;  %v177_v13 = vld [vmem:[%s150_s24 + $0x18] sm:$0xff] (!%p142_p7)  ;;  %v179_v14 = vld [vmem:[%s150_s24 + $0x28] sm:$0xff] (!%p142_p7)  ;;  %v186_v16 = vsel (!%p142_p7), %vm180_vm0, %v175_v12, -inf }
  0x1f   : > { %v183_v11 = vsel (!%p142_p7), %vm180_vm0, %v178_v8, -inf  ;;  %v187_v17 = vsel (!%p142_p7), %vm180_vm0, %v177_v13, -inf  ;;  %v188_v18 = vsel (!%p142_p7), %vm180_vm0, %v179_v14, -inf }
  0x20   : > { %s393_s22 = smov (!%p169_p8, %s262_s22), 3  ;;  %v184_v15 = vmax.f32 %v181_v9, %v183_v11  ;;  %v189_v19 = vmax.f32 %v186_v16, %v188_v18 }
  0x21   : > { %s263_s25 = sshll.u32 %s393_s22, 3 }
  0x22   : > { %s172_s28 = scalar_lea.vmem %s388_s1, %s263_s25  ;;  %v185_v20 = vmax.f32 %v184_v15, %v182_v10  ;;  %v190_v21 = vmax.f32 %v189_v19, %v187_v17 }
  0x24   : > { %191 = vst.msk [vmem:[%s172_s28] sm:$0xff] %vm180_vm0, %v185_v20  ;;  %192 = vst.msk [vmem:[%s172_s28 + $0x8] sm:$0xff] %vm180_vm0, %v190_v21 }
  0x25 PF: > { %p8_p9 = scmp.ge.s32.totalorder %s344_s10, 4   ;;  %s389_s6 = smov %s311_s7 }
  0x26   : > { %s390_s7 = smov %s353_s13  ;;  %s391_s8 = smov %s344_s10 }
  0x27   :  { %10 = sbr.rel (!%p8_p9) target bundleno = 2 (0x2), region = 97 }

</bundles_post_ra>
